<compile_context>
chip_gen: v6e
topology: v6e:2x2x1
jax: 0.10.0
libtpu: 0.0.40
codegen_flags: <defaults>
</compile_context>

<pallas_src>
import functools

import jax
import jax.numpy as jnp
from jax import lax
from jax.experimental import pallas as pl
from jax.experimental.pallas import tpu as pltpu


def _ru(x, m):
    return ((x + m - 1) // m) * m


def _largest_divisor_leq(n, target):
    d = max(1, min(n, target))
    while n % d:
        d -= 1
    return d


def _vmem_limit(est_bytes):
    # generous headroom, capped below v7x's 64 MiB physical per-core VMEM
    return int(min(max(2 * est_bytes, 16 << 20), 64 << 20))


# ----------------------------------------------------------------------------
# Kernel 1: stacked-LSTM recurrence (all layers, time-chunked, state resident)
# ----------------------------------------------------------------------------
def _stacked_lstm_kernel(num_layers, x_ref, *refs):
    """refs = (w_ih_0, w_hh_0, b_0, ..., y, h_n, c_n).

    x:    (Tc, Bt, I0_pad)  f32, layer-0 input chunk (zero padded)
    w_ih: (I_pad_l, 4*H_pad) bf16, gate blocks lane-aligned (PyTorch i,f,g,o)
    w_hh: (H_pad,   4*H_pad) bf16
    b:    (1, 4*H_pad)       f32, b_ih + b_hh, padded gate cols are 0
    y:    (Tc, Bt, H_pad)    f32, top-layer hidden states for this chunk
    h_n/c_n: (L, Bt, H_pad)  f32, running per-layer state (resident across chunks)
    """
    w_refs = refs[:3 * num_layers]
    y_ref, h_ref, c_ref = refs[3 * num_layers:]
    h_pad = h_ref.shape[-1]
    t_chunk = x_ref.shape[0]

    @pl.when(pl.program_id(1) == 0)          # first time-chunk: zero state
    def _():
        h_ref[...] = jnp.zeros_like(h_ref)
        c_ref[...] = jnp.zeros_like(c_ref)

    # Hoist the small (1, 4*H_pad) bias reads; rely on implicit sublane
    # broadcast in `gates + b` (no (Bt, 4*H_pad) broadcast copies).
    biases = [w_refs[3 * l + 2][...] for l in range(num_layers)]

    def step(t, carry):
        inp = x_ref[t]                                      # (Bt, I0_pad) f32
        for l in range(num_layers):
            h_prev = h_ref[l]                               # (Bt, H_pad) f32
            c_prev = c_ref[l]
            # Two accumulated MXU dots (bf16 operands, f32 accumulation); no concat.
            gates = (
                jnp.dot(inp.astype(jnp.bfloat16), w_refs[3 * l][...],
                        preferred_element_type=jnp.float32)
                + jnp.dot(h_prev.astype(jnp.bfloat16), w_refs[3 * l + 1][...],
                          preferred_element_type=jnp.float32)
                + biases[l]
            )
            # Gate slices are 128-lane aligned (H padded to 128) -> plain selects.
            i_g = jax.nn.sigmoid(gates[:, 0 * h_pad:1 * h_pad])
            f_g = jax.nn.sigmoid(gates[:, 1 * h_pad:2 * h_pad])
            g_g = jnp.tanh(gates[:, 2 * h_pad:3 * h_pad])
            o_g = jax.nn.sigmoid(gates[:, 3 * h_pad:4 * h_pad])
            # TODO(synk): on v6e/v7x the gate nonlinearities could run in bf16
            # (bf16 EUP); kept f32 so the same kernel is correct/fast on v5e.
            c_new = f_g * c_prev + i_g * g_g
            h_new = o_g * jnp.tanh(c_new)
            h_ref[l] = h_new
            c_ref[l] = c_new
            inp = h_new
        y_ref[t] = inp                                      # lane-dense store
        return carry

    unroll = t_chunk if t_chunk <= 8 else 2                 # partial unroll for LLO overlap
    lax.fori_loop(0, t_chunk, step, 0, unroll=unroll)


def stacked_lstm_pallas(x_pad, layers, h_pad, t_chunk):
    """x_pad: (T, B_pad, I0_pad) f32.  layers: [{'w_ih','w_hh','b'}, ...] packed.

    Returns y (T, B_pad, H_pad), h_n (L, B_pad, H_pad), c_n (L, B_pad, H_pad).
    """
    T, B_pad, i0p = x_pad.shape
    L = len(layers)
    assert T % t_chunk == 0

    # One batch tile unless batch is big enough to split across v7x's 2 TCs.
    if B_pad >= 256 and (B_pad // 2) % 8 == 0:
        b_tile = B_pad // 2
    else:
        b_tile = B_pad
    assert B_pad % b_tile == 0

    in_specs = [pl.BlockSpec((t_chunk, b_tile, i0p), lambda b, tc: (tc, b, 0))]
    flat_w = []
    for lyr in layers:
        for name in ("w_ih", "w_hh", "b"):
            arr = lyr[name]
            in_specs.append(
                pl.BlockSpec(arr.shape, lambda b, tc: (0, 0),
                             pipeline_mode=pl.Buffered(1)))  # grid-invariant: single buffer
            flat_w.append(arr)

    out_specs = [
        pl.BlockSpec((t_chunk, b_tile, h_pad), lambda b, tc: (tc, b, 0)),
        # constant index across the time-chunk axis -> resident state carry
        pl.BlockSpec((L, b_tile, h_pad), lambda b, tc: (0, b, 0)),
        pl.BlockSpec((L, b_tile, h_pad), lambda b, tc: (0, b, 0)),
    ]

    est = (
        2 * t_chunk * b_tile * i0p * 4
        + 2 * t_chunk * b_tile * h_pad * 4
        + 2 * 2 * L * b_tile * h_pad * 4
        + sum(int(a.size) * a.dtype.itemsize for a in flat_w)
    )

    kernel = functools.partial(_stacked_lstm_kernel, L)
    y, h, c = pl.pallas_call(
        kernel,
        out_shape=(
            jax.ShapeDtypeStruct((T, B_pad, h_pad), jnp.float32),
            jax.ShapeDtypeStruct((L, B_pad, h_pad), jnp.float32),
            jax.ShapeDtypeStruct((L, B_pad, h_pad), jnp.float32),
        ),
        grid_spec=pltpu.PrefetchScalarGridSpec(
            num_scalar_prefetch=0,
            grid=(B_pad // b_tile, T // t_chunk),
            in_specs=in_specs,
            out_specs=out_specs,
        ),
        compiler_params=pltpu.CompilerParams(
            dimension_semantics=("parallel", "arbitrary"),
            vmem_limit_bytes=_vmem_limit(est),
        ),
    )(x_pad, *flat_w)
    return y, h, c


# ----------------------------------------------------------------------------
# Kernel 2: vocab projection + log_softmax, vocab-tiled with online logsumexp
# ----------------------------------------------------------------------------
def _proj_logsoftmax_kernel(y_ref, w_ref, src_ref, o_ref, m_sc, l_sc):
    """y: (t_tile, B_pad, Hp) f32; w: (Hp, tv) bf16; src: (B_pad, tv) f32
    (precomputed h_src @ W_src + b, -1e30 on padded vocab cols);
    o: (t_tile, B_pad, V_pad) resident row-slab; m/l: online-lse scratch."""
    j = pl.program_id(1)
    n_v = pl.num_programs(1)
    tt, bp, hp = y_ref.shape
    tv = w_ref.shape[1]

    @pl.when(j == 0)
    def _():
        m_sc[...] = jnp.full_like(m_sc, -jnp.inf)
        l_sc[...] = jnp.zeros_like(l_sc)

    yb = y_ref[...].reshape(tt * bp, hp).astype(jnp.bfloat16)
    logits = jnp.dot(yb, w_ref[...], preferred_element_type=jnp.float32)
    logits = logits.reshape(tt, bp, tv) + src_ref[...][None, :, :]

    # online logsumexp over vocab tiles
    m_prev = m_sc[...]
    m_new = jnp.maximum(m_prev, jnp.max(logits, axis=-1, keepdims=True))
    l_sc[...] = (l_sc[...] * jnp.exp(m_prev - m_new)
                 + jnp.sum(jnp.exp(logits - m_new), axis=-1, keepdims=True))
    m_sc[...] = m_new

    # Store raw logits of this vocab tile into the resident output row-slab.
    # Static 128-aligned lane slices gated by pl.when (no dynamic lane indexing).
    n_v_static = o_ref.shape[-1] // tv
    for k in range(n_v_static):
        @pl.when(j == k)
        def _(k=k):
            o_ref[:, :, k * tv:(k + 1) * tv] = logits

    @pl.when(j == n_v - 1)                    # cheap one-shot normalization
    def _():
        lse = m_sc[...] + jnp.log(l_sc[...])
        o_ref[...] = o_ref[...] - lse


def proj_logsoftmax_pallas(y_pad, w_y, src_pad, t_tile, tv):
    """y_pad: (T, B_pad, Hp) f32; w_y: (Hp, V_pad) bf16; src_pad: (B_pad, V_pad) f32."""
    T, B_pad, Hp = y_pad.shape
    V_pad = w_y.shape[1]
    assert T % t_tile == 0 and V_pad % tv == 0

    est = (
        2 * t_tile * B_pad * Hp * 4
        + 2 * Hp * tv * 2
        + 2 * B_pad * tv * 4
        + 2 * t_tile * B_pad * V_pad * 4
        + 2 * 2 * t_tile * B_pad * 4
    )

    return pl.pallas_call(
        _proj_logsoftmax_kernel,
        out_shape=jax.ShapeDtypeStruct((T, B_pad, V_pad), jnp.float32),
        grid_spec=pltpu.PrefetchScalarGridSpec(
            num_scalar_prefetch=0,
            grid=(T // t_tile, V_pad // tv),
            in_specs=[
                pl.BlockSpec((t_tile, B_pad, Hp), lambda i, j: (i, 0, 0)),
                pl.BlockSpec((Hp, tv), lambda i, j: (0, j)),      # weight streams over V
                pl.BlockSpec((B_pad, tv), lambda i, j: (0, j)),
            ],
            out_specs=pl.BlockSpec((t_tile, B_pad, V_pad), lambda i, j: (i, 0, 0)),
            scratch_shapes=[
                pltpu.VMEM((t_tile, B_pad, 1), jnp.float32),   # running max
                pltpu.VMEM((t_tile, B_pad, 1), jnp.float32),   # running sum
            ],
        ),
        compiler_params=pltpu.CompilerParams(
            dimension_semantics=("parallel", "arbitrary"),
            vmem_limit_bytes=_vmem_limit(est),
        ),
    )(y_pad, w_y, src_pad)


# ----------------------------------------------------------------------------
# One-time parameter packing (transpose, split, pad, bf16 cast)
# ----------------------------------------------------------------------------
def pack_decoder_params(params, hidden_size, weights_dtype=jnp.bfloat16):
    H = hidden_size
    Hp = _ru(H, 128)

    packed_layers = []
    for lyr in params["lstm"]:
        w_ih = lyr["w_ih"]                      # (4H, I)  PyTorch layout
        w_hh = lyr["w_hh"]                      # (4H, H)
        bias = lyr["b_ih"] + lyr["b_hh"]        # (4H,)
        I = w_ih.shape[1]
        Ip = _ru(I, 128)
        Wih = jnp.zeros((Ip, 4 * Hp), jnp.float32)
        Whh = jnp.zeros((Hp, 4 * Hp), jnp.float32)
        bvec = jnp.zeros((1, 4 * Hp), jnp.float32)
        wih_t, whh_t = w_ih.T, w_hh.T
        for g in range(4):                      # gate order i, f, g, o (PyTorch)
            Wih = Wih.at[:I, g * Hp:g * Hp + H].set(wih_t[:, g * H:(g + 1) * H])
            Whh = Whh.at[:H, g * Hp:g * Hp + H].set(whh_t[:, g * H:(g + 1) * H])
            bvec = bvec.at[0, g * Hp:g * Hp + H].set(bias[g * H:(g + 1) * H])
        # Padded gate cols have zero weight & bias -> sigmoid(0)=0.5, tanh(0)=0
        # -> padded h/c columns stay exactly 0 and never pollute real state.
        packed_layers.append({
            "w_ih": Wih.astype(weights_dtype),
            "w_hh": Whh.astype(weights_dtype),
            "b": bvec,                           # bias stays f32 (added post-accumulation)
            "in_pad": Ip,
        })

    V, F = params["lin_w"].shape                # F = 3H; feat = [y(H), h_src(2H)]
    Vp = _ru(V, 128)
    # y-part of the projection is streamed inside the Pallas kernel (bf16);
    # the src-part is hoisted out of the kernel and computed once per forward.
    w_y = jnp.zeros((Hp, Vp), jnp.float32).at[:H, :V].set(params["lin_w"][:, :H].T)
    w_src = params["lin_w"][:, H:].T            # (2H, V) f32
    return {
        "embedding": params["embedding"],
        "lstm": packed_layers,
        "w_y": w_y.astype(weights_dtype),
        "w_src": w_src,
        "lin_b": params["lin_b"],
        "H": H, "Hp": Hp, "V": V, "Vp": Vp,
        "I0": params["lstm"][0]["w_ih"].shape[1],
        "I0p": packed_layers[0]["in_pad"],
        "num_layers": len(packed_layers),
    }


def _proj_tiles(T, B_pad, V_pad):
    # target >= ~256 matmul rows per tile, but keep >= 2 parallel T-tiles (v7x)
    t_target = max(1, 256 // B_pad)
    if T >= 2:
        t_target = min(t_target, max(1, T // 2))
    t_tile = _largest_divisor_leq(T, t_target)
    # keep the resident (t_tile, B_pad, V_pad) f32 output row-slab modest
    while t_tile > 1 and t_tile * B_pad * V_pad * 4 > (12 << 20):
        t_tile = _largest_divisor_leq(T, t_tile - 1)
    tv = 128 * _largest_divisor_leq(V_pad // 128, 4)   # vocab tile <= 512 lanes
    return t_tile, tv


# ----------------------------------------------------------------------------
# BasicDecoder forward (eval mode)
# ----------------------------------------------------------------------------
def basic_decoder_forward(packed, trg, z, encoded_src, *, t_chunk_target=32):
    """trg: (T, B) int32, z: (B, L) f32, encoded_src: (S, B, 2H) f32."""
    T, B = trg.shape
    H, Hp = packed["H"], packed["Hp"]
    I0, I0p = packed["I0"], packed["I0p"]
    V, Vp = packed["V"], packed["Vp"]

    emb = packed["embedding"][trg]                                   # (T, B, E)  XLA gather
    # TODO(synk): word-dropout mask is bernoulli(1 - word_dpt); word_dpt=0.0 -> identity.
    z_rep = jnp.broadcast_to(z[None, :, :], (T, B, z.shape[-1]))
    x = jnp.concatenate([emb, z_rep], axis=2)                        # (T, B, E+L)

    B_pad = _ru(B, 8)
    x_pad = jnp.zeros((T, B_pad, I0p), jnp.float32).at[:, :B, :I0].set(x)

    t_chunk = _largest_divisor_leq(T, t_chunk_target)
    y_pad, h_n_pad, c_n_pad = stacked_lstm_pallas(x_pad, packed["lstm"], Hp, t_chunk)

    h_n = h_n_pad[:, :B, :H]                                         # (L, B, H)
    c_n = c_n_pad[:, :B, :H]

    # TODO(synk): inter-layer + output nn.Dropout(p=0.3) are identity in eval mode.

    # Hoist the T-invariant source-context term: computed ONCE per forward,
    # not once per timestep (tiny (B, 2H) x (2H, V) matmul, plain XLA).
    h_src = encoded_src[-1]                                          # (B, 2H)
    src_logits = h_src @ packed["w_src"] + packed["lin_b"]           # (B, V) f32
    src_pad = jnp.zeros((B_pad, Vp), jnp.float32)
    src_pad = src_pad.at[:, V:].set(-1e30)       # padded vocab cols never win the softmax
    src_pad = src_pad.at[:B, :V].set(src_logits)

    t_tile, tv = _proj_tiles(T, B_pad, Vp)
    out_pad = proj_logsoftmax_pallas(y_pad, packed["w_y"], src_pad, t_tile, tv)
    output = out_pad[:, :B, :V]                                      # (T, B, V)
    return output, (h_n, c_n)


# ----------------------------------------------------------------------------
# Pure-JAX f32 reference (for correctness check)
# ----------------------------------------------------------------------------
def _lstm_layer_ref(x, w_ih, w_hh, b_ih, b_hh):
    T, B, I = x.shape
    H = w_hh.shape[1]

    def step(carry, x_t):
        h, c = carry
        gates = x_t @ w_ih.T + h @ w_hh.T + b_ih + b_hh
        i = jax.nn.sigmoid(gates[:, :H])
        f = jax.nn.sigmoid(gates[:, H:2 * H])
        g = jnp.tanh(gates[:, 2 * H:3 * H])
        o = jax.nn.sigmoid(gates[:, 3 * H:])
        c = f * c + i * g
        h = o * jnp.tanh(c)
        return (h, c), h

    (h, c), ys = lax.scan(step, (jnp.zeros((B, H)), jnp.zeros((B, H))), x)
    return ys, h, c


def basic_decoder_forward_ref(params, trg, z, encoded_src):
    T, B = trg.shape
    emb = params["embedding"][trg]
    z_rep = jnp.broadcast_to(z[None, :, :], (T, B, z.shape[-1]))
    x = jnp.concatenate([emb, z_rep], axis=2)
    layer_in = x
    hs, cs = [], []
    for lyr in params["lstm"]:
        layer_in, h, c = _lstm_layer_ref(
            layer_in, lyr["w_ih"], lyr["w_hh"], lyr["b_ih"], lyr["b_hh"])
        hs.append(h)
        cs.append(c)
    h_src = encoded_src[-1]
    h_src_rep = jnp.broadcast_to(h_src[None, :, :], (T, B, h_src.shape[-1]))
    feat = jnp.concatenate([layer_in, h_src_rep], axis=2)
    logits = feat @ params["lin_w"].T + params["lin_b"]
    return (jax.nn.log_softmax(logits, axis=2),
            (jnp.stack(hs, 0), jnp.stack(cs, 0)))


# ----------------------------------------------------------------------------
# Deterministic parameter init (PyTorch-layout raw params)
# ----------------------------------------------------------------------------
def init_params(key, vocab_size, embed_size, hidden_size, latent_size, num_layers):
    keys = jax.random.split(key, 3 + 4 * num_layers)
    params = {
        "embedding": 0.1 * jax.random.normal(
            keys[0], (vocab_size, embed_size), jnp.float32),
        "lin_w": 0.1 * jax.random.normal(
            keys[1], (vocab_size, 3 * hidden_size), jnp.float32),
        "lin_b": 0.1 * jax.random.normal(keys[2], (vocab_size,), jnp.float32),
        "lstm": [],
    }
    in_sz = embed_size + latent_size
    for l in range(num_layers):
        kw = keys[3 + 4 * l: 3 + 4 * (l + 1)]
        params["lstm"].append({
            "w_ih": 0.1 * jax.random.normal(kw[0], (4 * hidden_size, in_sz), jnp.float32),
            "w_hh": 0.1 * jax.random.normal(kw[1], (4 * hidden_size, hidden_size), jnp.float32),
            "b_ih": 0.1 * jax.random.normal(kw[2], (4 * hidden_size,), jnp.float32),
            "b_hh": 0.1 * jax.random.normal(kw[3], (4 * hidden_size,), jnp.float32),
        })
        in_sz = hidden_size
    return params


# ----------------------------------------------------------------------------
if __name__ == "__main__":
    # vocab chosen >128 so the vocab-tiled online-logsumexp path (2 V tiles)
    # and the multi-chunk LSTM state carry (t_chunk_target=4 -> 2 chunks) both run.
    vocab_size, embed_size, hidden_size, latent_size, num_layers = 1000, 16, 32, 8, 2
    T, B, S = 8, 4, 5

    key = jax.random.PRNGKey(0)
    kp, k1, k2, k3 = jax.random.split(key, 4)

    params = init_params(kp, vocab_size, embed_size, hidden_size, latent_size, num_layers)
    packed = pack_decoder_params(params, hidden_size)   # one-time pack (bf16 weights)

    trg = jax.random.randint(k1, (T, B), 0, vocab_size, dtype=jnp.int32)
    z = jax.random.normal(k2, (B, latent_size), jnp.float32)
    encoded_src = jax.random.normal(k3, (S, B, 2 * hidden_size), jnp.float32)

    output, (h_n, c_n) = basic_decoder_forward(
        packed, trg, z, encoded_src, t_chunk_target=4)
    jax.block_until_ready((output, h_n, c_n))

    # sanity check against the pure-JAX f32 reference (tolerance loosened for
    # the bf16 weight path; accumulation is f32)
    ref_out, (ref_h, ref_c) = basic_decoder_forward_ref(params, trg, z, encoded_src)
    assert output.shape == (T, B, vocab_size)
    assert h_n.shape == (num_layers, B, hidden_size)
    assert c_n.shape == (num_layers, B, hidden_size)
    assert jnp.allclose(output, ref_out, atol=3e-2, rtol=3e-2)
    assert jnp.allclose(h_n, ref_h, atol=3e-2, rtol=3e-2)
    assert jnp.allclose(c_n, ref_c, atol=3e-2, rtol=3e-2)

    print("KERNEL_OK")
</pallas_src>

<mosaic_0001>
module attributes {stable_mosaic.version = 11 : i64} {
  func.func @_stacked_lstm_kernel(%arg0: i32, %arg1: i32, %arg2: memref<4x8x128xf32, #tpu.memory_space<vmem>>, %arg3: memref<128x512xbf16, #tpu.memory_space<vmem>>, %arg4: memref<128x512xbf16, #tpu.memory_space<vmem>>, %arg5: memref<1x512xf32, #tpu.memory_space<vmem>>, %arg6: memref<128x512xbf16, #tpu.memory_space<vmem>>, %arg7: memref<128x512xbf16, #tpu.memory_space<vmem>>, %arg8: memref<1x512xf32, #tpu.memory_space<vmem>>, %arg9: memref<4x8x128xf32, #tpu.memory_space<vmem>>, %arg10: memref<2x8x128xf32, #tpu.memory_space<vmem>>, %arg11: memref<2x8x128xf32, #tpu.memory_space<vmem>>) attributes {dimension_semantics = [#tpu.dimension_semantics<parallel>, #tpu.dimension_semantics<arbitrary>], iteration_bounds = array<i64: 1, 2>, scalar_prefetch = 0 : i64, scratch_operands = 0 : i64, tpu.core_type = #tpu.core_type<tc>, window_params = [{transform_indices = @transform_0, window_bounds = array<i64: 4, 8, 128>}, {pipeline_mode = #tpu.pipeline_mode<synchronous>, transform_indices = @transform_1, window_bounds = array<i64: 128, 512>}, {pipeline_mode = #tpu.pipeline_mode<synchronous>, transform_indices = @transform_2, window_bounds = array<i64: 128, 512>}, {pipeline_mode = #tpu.pipeline_mode<synchronous>, transform_indices = @transform_3, window_bounds = array<i64: 1, 512>}, {pipeline_mode = #tpu.pipeline_mode<synchronous>, transform_indices = @transform_4, window_bounds = array<i64: 128, 512>}, {pipeline_mode = #tpu.pipeline_mode<synchronous>, transform_indices = @transform_5, window_bounds = array<i64: 128, 512>}, {pipeline_mode = #tpu.pipeline_mode<synchronous>, transform_indices = @transform_6, window_bounds = array<i64: 1, 512>}, {transform_indices = @transform_7, window_bounds = array<i64: 4, 8, 128>}, {transform_indices = @transform_8, window_bounds = array<i64: 2, 8, 128>}, {transform_indices = @transform_9, window_bounds = array<i64: 2, 8, 128>}]} {
    %c0_i32 = arith.constant 0 : i32
    %0 = arith.cmpi eq, %arg1, %c0_i32 : i32
    %1 = arith.extui %0 : i1 to i32
    %c0_i32_0 = arith.constant 0 : i32
    %2 = arith.cmpi ne, %1, %c0_i32_0 : i32
    scf.if %2 {
      %cst_187 = arith.constant 0.000000e+00 : f32
      %385 = vector.broadcast %cst_187 : f32 to vector<2x8x128xf32>
      %c0_188 = arith.constant 0 : index
      %c0_189 = arith.constant 0 : index
      %c0_190 = arith.constant 0 : index
      %386 = vector.load %arg10[%c0_188, %c0_189, %c0_190] : memref<2x8x128xf32, #tpu.memory_space<vmem>>, vector<2x8x128xf32>
      tpu.vector_store %arg10[%c0_188, %c0_189, %c0_190], %385 {strides = array<i32>} : memref<2x8x128xf32, #tpu.memory_space<vmem>>, vector<2x8x128xf32>,
      %cst_191 = arith.constant 0.000000e+00 : f32
      %387 = vector.broadcast %cst_191 : f32 to vector<2x8x128xf32>
      %c0_192 = arith.constant 0 : index
      %c0_193 = arith.constant 0 : index
      %c0_194 = arith.constant 0 : index
      %388 = vector.load %arg11[%c0_192, %c0_193, %c0_194] : memref<2x8x128xf32, #tpu.memory_space<vmem>>, vector<2x8x128xf32>
      tpu.vector_store %arg11[%c0_192, %c0_193, %c0_194], %387 {strides = array<i32>} : memref<2x8x128xf32, #tpu.memory_space<vmem>>, vector<2x8x128xf32>,
    } else {
    }
    %c0 = arith.constant 0 : index
    %c0_1 = arith.constant 0 : index
    %3 = vector.load %arg5[%c0, %c0_1] : memref<1x512xf32, #tpu.memory_space<vmem>>, vector<1x512xf32>
    %c0_2 = arith.constant 0 : index
    %c0_3 = arith.constant 0 : index
    %4 = vector.load %arg8[%c0_2, %c0_3] : memref<1x512xf32, #tpu.memory_space<vmem>>, vector<1x512xf32>
    %c0_i32_4 = arith.constant 0 : i32
    %5 = arith.index_cast %c0_i32_4 : i32 to index
    %c0_5 = arith.constant 0 : index
    %c0_6 = arith.constant 0 : index
    %6 = vector.load %arg2[%5, %c0_5, %c0_6] : memref<4x8x128xf32, #tpu.memory_space<vmem>>, vector<1x8x128xf32>
    %7 = vector.shape_cast %6 : vector<1x8x128xf32> to vector<8x128xf32>
    %c0_7 = arith.constant 0 : index
    %c0_8 = arith.constant 0 : index
    %c0_9 = arith.constant 0 : index
    %8 = vector.load %arg10[%c0_7, %c0_8, %c0_9] : memref<2x8x128xf32, #tpu.memory_space<vmem>>, vector<1x8x128xf32>
    %9 = vector.shape_cast %8 : vector<1x8x128xf32> to vector<8x128xf32>
    %c0_10 = arith.constant 0 : index
    %c0_11 = arith.constant 0 : index
    %c0_12 = arith.constant 0 : index
    %10 = vector.load %arg11[%c0_10, %c0_11, %c0_12] : memref<2x8x128xf32, #tpu.memory_space<vmem>>, vector<1x8x128xf32>
    %11 = vector.shape_cast %10 : vector<1x8x128xf32> to vector<8x128xf32>
    %12 = arith.truncf %7 : vector<8x128xf32> to vector<8x128xbf16>
    %c0_13 = arith.constant 0 : index
    %c0_14 = arith.constant 0 : index
    %13 = vector.load %arg3[%c0_13, %c0_14] : memref<128x512xbf16, #tpu.memory_space<vmem>>, vector<128x512xbf16>
    %cst = arith.constant dense<0.000000e+00> : vector<8x512xf32>
    %14 = tpu.matmul %12, %13, %cst {dimension_numbers = #tpu.dot_dimension_numbers<[1], [0], [0], [1], [0, 0, 1, 1], [], []>} : vector<8x128xbf16>, vector<128x512xbf16>, vector<8x512xf32> -> vector<8x512xf32>
    %15 = arith.truncf %9 : vector<8x128xf32> to vector<8x128xbf16>
    %c0_15 = arith.constant 0 : index
    %c0_16 = arith.constant 0 : index
    %16 = vector.load %arg4[%c0_15, %c0_16] : memref<128x512xbf16, #tpu.memory_space<vmem>>, vector<128x512xbf16>
    %cst_17 = arith.constant dense<0.000000e+00> : vector<8x512xf32>
    %17 = tpu.matmul %15, %16, %cst_17 {dimension_numbers = #tpu.dot_dimension_numbers<[1], [0], [0], [1], [0, 0, 1, 1], [], []>} : vector<8x128xbf16>, vector<128x512xbf16>, vector<8x512xf32> -> vector<8x512xf32>
    %18 = arith.addf %14, %17 : vector<8x512xf32>
    %19 = vector.broadcast %3 : vector<1x512xf32> to vector<8x512xf32>
    %20 = arith.addf %18, %19 : vector<8x512xf32>
    %21 = vector.extract_strided_slice %20 {offsets = [0, 0], sizes = [8, 128], strides = [1, 1]} : vector<8x512xf32> to vector<8x128xf32>
    %22 = arith.negf %21 : vector<8x128xf32>
    %23 = math.exp %22 : vector<8x128xf32>
    %cst_18 = arith.constant 1.000000e+00 : f32
    %24 = vector.broadcast %cst_18 : f32 to vector<8x128xf32>
    %25 = arith.addf %24, %23 : vector<8x128xf32>
    %26 = arith.divf %24, %25 : vector<8x128xf32>
    %27 = vector.extract_strided_slice %20 {offsets = [0, 128], sizes = [8, 128], strides = [1, 1]} : vector<8x512xf32> to vector<8x128xf32>
    %28 = arith.negf %27 : vector<8x128xf32>
    %29 = math.exp %28 : vector<8x128xf32>
    %cst_19 = arith.constant 1.000000e+00 : f32
    %30 = vector.broadcast %cst_19 : f32 to vector<8x128xf32>
    %31 = arith.addf %30, %29 : vector<8x128xf32>
    %32 = arith.divf %30, %31 : vector<8x128xf32>
    %33 = vector.extract_strided_slice %20 {offsets = [0, 256], sizes = [8, 128], strides = [1, 1]} : vector<8x512xf32> to vector<8x128xf32>
    %34 = math.tanh %33 : vector<8x128xf32>
    %35 = vector.extract_strided_slice %20 {offsets = [0, 384], sizes = [8, 128], strides = [1, 1]} : vector<8x512xf32> to vector<8x128xf32>
    %36 = arith.negf %35 : vector<8x128xf32>
    %37 = math.exp %36 : vector<8x128xf32>
    %cst_20 = arith.constant 1.000000e+00 : f32
    %38 = vector.broadcast %cst_20 : f32 to vector<8x128xf32>
    %39 = arith.addf %38, %37 : vector<8x128xf32>
    %40 = arith.divf %38, %39 : vector<8x128xf32>
    %41 = arith.mulf %32, %11 : vector<8x128xf32>
    %42 = arith.mulf %26, %34 : vector<8x128xf32>
    %43 = arith.addf %41, %42 : vector<8x128xf32>
    %44 = math.tanh %43 : vector<8x128xf32>
    %45 = arith.mulf %40, %44 : vector<8x128xf32>
    %c0_21 = arith.constant 0 : index
    %c0_22 = arith.constant 0 : index
    %c0_23 = arith.constant 0 : index
    %46 = vector.load %arg10[%c0_21, %c0_22, %c0_23] : memref<2x8x128xf32, #tpu.memory_space<vmem>>, vector<1x8x128xf32>
    %47 = vector.shape_cast %46 : vector<1x8x128xf32> to vector<8x128xf32>
    %48 = vector.shape_cast %45 : vector<8x128xf32> to vector<1x8x128xf32>
    tpu.vector_store %arg10[%c0_21, %c0_22, %c0_23], %48 {strides = array<i32>} : memref<2x8x128xf32, #tpu.memory_space<vmem>>, vector<1x8x128xf32>,
    %c0_24 = arith.constant 0 : index
    %c0_25 = arith.constant 0 : index
    %c0_26 = arith.constant 0 : index
    %49 = vector.load %arg11[%c0_24, %c0_25, %c0_26] : memref<2x8x128xf32, #tpu.memory_space<vmem>>, vector<1x8x128xf32>
    %50 = vector.shape_cast %49 : vector<1x8x128xf32> to vector<8x128xf32>
    %51 = vector.shape_cast %43 : vector<8x128xf32> to vector<1x8x128xf32>
    tpu.vector_store %arg11[%c0_24, %c0_25, %c0_26], %51 {strides = array<i32>} : memref<2x8x128xf32, #tpu.memory_space<vmem>>, vector<1x8x128xf32>,
    %c1 = arith.constant 1 : index
    %c0_27 = arith.constant 0 : index
    %c0_28 = arith.constant 0 : index
    %52 = vector.load %arg10[%c1, %c0_27, %c0_28] : memref<2x8x128xf32, #tpu.memory_space<vmem>>, vector<1x8x128xf32>
    %53 = vector.shape_cast %52 : vector<1x8x128xf32> to vector<8x128xf32>
    %c1_29 = arith.constant 1 : index
    %c0_30 = arith.constant 0 : index
    %c0_31 = arith.constant 0 : index
    %54 = vector.load %arg11[%c1_29, %c0_30, %c0_31] : memref<2x8x128xf32, #tpu.memory_space<vmem>>, vector<1x8x128xf32>
    %55 = vector.shape_cast %54 : vector<1x8x128xf32> to vector<8x128xf32>
    %56 = arith.truncf %45 : vector<8x128xf32> to vector<8x128xbf16>
    %c0_32 = arith.constant 0 : index
    %c0_33 = arith.constant 0 : index
    %57 = vector.load %arg6[%c0_32, %c0_33] : memref<128x512xbf16, #tpu.memory_space<vmem>>, vector<128x512xbf16>
    %cst_34 = arith.constant dense<0.000000e+00> : vector<8x512xf32>
    %58 = tpu.matmul %56, %57, %cst_34 {dimension_numbers = #tpu.dot_dimension_numbers<[1], [0], [0], [1], [0, 0, 1, 1], [], []>} : vector<8x128xbf16>, vector<128x512xbf16>, vector<8x512xf32> -> vector<8x512xf32>
    %59 = arith.truncf %53 : vector<8x128xf32> to vector<8x128xbf16>
    %c0_35 = arith.constant 0 : index
    %c0_36 = arith.constant 0 : index
    %60 = vector.load %arg7[%c0_35, %c0_36] : memref<128x512xbf16, #tpu.memory_space<vmem>>, vector<128x512xbf16>
    %cst_37 = arith.constant dense<0.000000e+00> : vector<8x512xf32>
    %61 = tpu.matmul %59, %60, %cst_37 {dimension_numbers = #tpu.dot_dimension_numbers<[1], [0], [0], [1], [0, 0, 1, 1], [], []>} : vector<8x128xbf16>, vector<128x512xbf16>, vector<8x512xf32> -> vector<8x512xf32>
    %62 = arith.addf %58, %61 : vector<8x512xf32>
    %63 = vector.broadcast %4 : vector<1x512xf32> to vector<8x512xf32>
    %64 = arith.addf %62, %63 : vector<8x512xf32>
    %65 = vector.extract_strided_slice %64 {offsets = [0, 0], sizes = [8, 128], strides = [1, 1]} : vector<8x512xf32> to vector<8x128xf32>
    %66 = arith.negf %65 : vector<8x128xf32>
    %67 = math.exp %66 : vector<8x128xf32>
    %cst_38 = arith.constant 1.000000e+00 : f32
    %68 = vector.broadcast %cst_38 : f32 to vector<8x128xf32>
    %69 = arith.addf %68, %67 : vector<8x128xf32>
    %70 = arith.divf %68, %69 : vector<8x128xf32>
    %71 = vector.extract_strided_slice %64 {offsets = [0, 128], sizes = [8, 128], strides = [1, 1]} : vector<8x512xf32> to vector<8x128xf32>
    %72 = arith.negf %71 : vector<8x128xf32>
    %73 = math.exp %72 : vector<8x128xf32>
    %cst_39 = arith.constant 1.000000e+00 : f32
    %74 = vector.broadcast %cst_39 : f32 to vector<8x128xf32>
    %75 = arith.addf %74, %73 : vector<8x128xf32>
    %76 = arith.divf %74, %75 : vector<8x128xf32>
    %77 = vector.extract_strided_slice %64 {offsets = [0, 256], sizes = [8, 128], strides = [1, 1]} : vector<8x512xf32> to vector<8x128xf32>
    %78 = math.tanh %77 : vector<8x128xf32>
    %79 = vector.extract_strided_slice %64 {offsets = [0, 384], sizes = [8, 128], strides = [1, 1]} : vector<8x512xf32> to vector<8x128xf32>
    %80 = arith.negf %79 : vector<8x128xf32>
    %81 = math.exp %80 : vector<8x128xf32>
    %cst_40 = arith.constant 1.000000e+00 : f32
    %82 = vector.broadcast %cst_40 : f32 to vector<8x128xf32>
    %83 = arith.addf %82, %81 : vector<8x128xf32>
    %84 = arith.divf %82, %83 : vector<8x128xf32>
    %85 = arith.mulf %76, %55 : vector<8x128xf32>
    %86 = arith.mulf %70, %78 : vector<8x128xf32>
    %87 = arith.addf %85, %86 : vector<8x128xf32>
    %88 = math.tanh %87 : vector<8x128xf32>
    %89 = arith.mulf %84, %88 : vector<8x128xf32>
    %c1_41 = arith.constant 1 : index
    %c0_42 = arith.constant 0 : index
    %c0_43 = arith.constant 0 : index
    %90 = vector.load %arg10[%c1_41, %c0_42, %c0_43] : memref<2x8x128xf32, #tpu.memory_space<vmem>>, vector<1x8x128xf32>
    %91 = vector.shape_cast %90 : vector<1x8x128xf32> to vector<8x128xf32>
    %92 = vector.shape_cast %89 : vector<8x128xf32> to vector<1x8x128xf32>
    tpu.vector_store %arg10[%c1_41, %c0_42, %c0_43], %92 {strides = array<i32>} : memref<2x8x128xf32, #tpu.memory_space<vmem>>, vector<1x8x128xf32>,
    %c1_44 = arith.constant 1 : index
    %c0_45 = arith.constant 0 : index
    %c0_46 = arith.constant 0 : index
    %93 = vector.load %arg11[%c1_44, %c0_45, %c0_46] : memref<2x8x128xf32, #tpu.memory_space<vmem>>, vector<1x8x128xf32>
    %94 = vector.shape_cast %93 : vector<1x8x128xf32> to vector<8x128xf32>
    %95 = vector.shape_cast %87 : vector<8x128xf32> to vector<1x8x128xf32>
    tpu.vector_store %arg11[%c1_44, %c0_45, %c0_46], %95 {strides = array<i32>} : memref<2x8x128xf32, #tpu.memory_space<vmem>>, vector<1x8x128xf32>,
    %96 = arith.index_cast %c0_i32_4 : i32 to index
    %c0_47 = arith.constant 0 : index
    %c0_48 = arith.constant 0 : index
    %97 = vector.load %arg9[%96, %c0_47, %c0_48] : memref<4x8x128xf32, #tpu.memory_space<vmem>>, vector<1x8x128xf32>
    %98 = vector.shape_cast %97 : vector<1x8x128xf32> to vector<8x128xf32>
    %99 = vector.shape_cast %89 : vector<8x128xf32> to vector<1x8x128xf32>
    tpu.vector_store %arg9[%96, %c0_47, %c0_48], %99 {strides = array<i32>} : memref<4x8x128xf32, #tpu.memory_space<vmem>>, vector<1x8x128xf32>,
    %c1_i32 = arith.constant 1 : i32
    %100 = arith.index_cast %c1_i32 : i32 to index
    %c0_49 = arith.constant 0 : index
    %c0_50 = arith.constant 0 : index
    %101 = vector.load %arg2[%100, %c0_49, %c0_50] : memref<4x8x128xf32, #tpu.memory_space<vmem>>, vector<1x8x128xf32>
    %102 = vector.shape_cast %101 : vector<1x8x128xf32> to vector<8x128xf32>
    %c0_51 = arith.constant 0 : index
    %c0_52 = arith.constant 0 : index
    %c0_53 = arith.constant 0 : index
    %103 = vector.load %arg10[%c0_51, %c0_52, %c0_53] : memref<2x8x128xf32, #tpu.memory_space<vmem>>, vector<1x8x128xf32>
    %104 = vector.shape_cast %103 : vector<1x8x128xf32> to vector<8x128xf32>
    %c0_54 = arith.constant 0 : index
    %c0_55 = arith.constant 0 : index
    %c0_56 = arith.constant 0 : index
    %105 = vector.load %arg11[%c0_54, %c0_55, %c0_56] : memref<2x8x128xf32, #tpu.memory_space<vmem>>, vector<1x8x128xf32>
    %106 = vector.shape_cast %105 : vector<1x8x128xf32> to vector<8x128xf32>
    %107 = arith.truncf %102 : vector<8x128xf32> to vector<8x128xbf16>
    %c0_57 = arith.constant 0 : index
    %c0_58 = arith.constant 0 : index
    %108 = vector.load %arg3[%c0_57, %c0_58] : memref<128x512xbf16, #tpu.memory_space<vmem>>, vector<128x512xbf16>
    %cst_59 = arith.constant dense<0.000000e+00> : vector<8x512xf32>
    %109 = tpu.matmul %107, %108, %cst_59 {dimension_numbers = #tpu.dot_dimension_numbers<[1], [0], [0], [1], [0, 0, 1, 1], [], []>} : vector<8x128xbf16>, vector<128x512xbf16>, vector<8x512xf32> -> vector<8x512xf32>
    %110 = arith.truncf %104 : vector<8x128xf32> to vector<8x128xbf16>
    %c0_60 = arith.constant 0 : index
    %c0_61 = arith.constant 0 : index
    %111 = vector.load %arg4[%c0_60, %c0_61] : memref<128x512xbf16, #tpu.memory_space<vmem>>, vector<128x512xbf16>
    %cst_62 = arith.constant dense<0.000000e+00> : vector<8x512xf32>
    %112 = tpu.matmul %110, %111, %cst_62 {dimension_numbers = #tpu.dot_dimension_numbers<[1], [0], [0], [1], [0, 0, 1, 1], [], []>} : vector<8x128xbf16>, vector<128x512xbf16>, vector<8x512xf32> -> vector<8x512xf32>
    %113 = arith.addf %109, %112 : vector<8x512xf32>
    %114 = vector.broadcast %3 : vector<1x512xf32> to vector<8x512xf32>
    %115 = arith.addf %113, %114 : vector<8x512xf32>
    %116 = vector.extract_strided_slice %115 {offsets = [0, 0], sizes = [8, 128], strides = [1, 1]} : vector<8x512xf32> to vector<8x128xf32>
    %117 = arith.negf %116 : vector<8x128xf32>
    %118 = math.exp %117 : vector<8x128xf32>
    %cst_63 = arith.constant 1.000000e+00 : f32
    %119 = vector.broadcast %cst_63 : f32 to vector<8x128xf32>
    %120 = arith.addf %119, %118 : vector<8x128xf32>
    %121 = arith.divf %119, %120 : vector<8x128xf32>
    %122 = vector.extract_strided_slice %115 {offsets = [0, 128], sizes = [8, 128], strides = [1, 1]} : vector<8x512xf32> to vector<8x128xf32>
    %123 = arith.negf %122 : vector<8x128xf32>
    %124 = math.exp %123 : vector<8x128xf32>
    %cst_64 = arith.constant 1.000000e+00 : f32
    %125 = vector.broadcast %cst_64 : f32 to vector<8x128xf32>
    %126 = arith.addf %125, %124 : vector<8x128xf32>
    %127 = arith.divf %125, %126 : vector<8x128xf32>
    %128 = vector.extract_strided_slice %115 {offsets = [0, 256], sizes = [8, 128], strides = [1, 1]} : vector<8x512xf32> to vector<8x128xf32>
    %129 = math.tanh %128 : vector<8x128xf32>
    %130 = vector.extract_strided_slice %115 {offsets = [0, 384], sizes = [8, 128], strides = [1, 1]} : vector<8x512xf32> to vector<8x128xf32>
    %131 = arith.negf %130 : vector<8x128xf32>
    %132 = math.exp %131 : vector<8x128xf32>
    %cst_65 = arith.constant 1.000000e+00 : f32
    %133 = vector.broadcast %cst_65 : f32 to vector<8x128xf32>
    %134 = arith.addf %133, %132 : vector<8x128xf32>
    %135 = arith.divf %133, %134 : vector<8x128xf32>
    %136 = arith.mulf %127, %106 : vector<8x128xf32>
    %137 = arith.mulf %121, %129 : vector<8x128xf32>
    %138 = arith.addf %136, %137 : vector<8x128xf32>
    %139 = math.tanh %138 : vector<8x128xf32>
    %140 = arith.mulf %135, %139 : vector<8x128xf32>
    %c0_66 = arith.constant 0 : index
    %c0_67 = arith.constant 0 : index
    %c0_68 = arith.constant 0 : index
    %141 = vector.load %arg10[%c0_66, %c0_67, %c0_68] : memref<2x8x128xf32, #tpu.memory_space<vmem>>, vector<1x8x128xf32>
    %142 = vector.shape_cast %141 : vector<1x8x128xf32> to vector<8x128xf32>
    %143 = vector.shape_cast %140 : vector<8x128xf32> to vector<1x8x128xf32>
    tpu.vector_store %arg10[%c0_66, %c0_67, %c0_68], %143 {strides = array<i32>} : memref<2x8x128xf32, #tpu.memory_space<vmem>>, vector<1x8x128xf32>,
    %c0_69 = arith.constant 0 : index
    %c0_70 = arith.constant 0 : index
    %c0_71 = arith.constant 0 : index
    %144 = vector.load %arg11[%c0_69, %c0_70, %c0_71] : memref<2x8x128xf32, #tpu.memory_space<vmem>>, vector<1x8x128xf32>
    %145 = vector.shape_cast %144 : vector<1x8x128xf32> to vector<8x128xf32>
    %146 = vector.shape_cast %138 : vector<8x128xf32> to vector<1x8x128xf32>
    tpu.vector_store %arg11[%c0_69, %c0_70, %c0_71], %146 {strides = array<i32>} : memref<2x8x128xf32, #tpu.memory_space<vmem>>, vector<1x8x128xf32>,
    %c1_72 = arith.constant 1 : index
    %c0_73 = arith.constant 0 : index
    %c0_74 = arith.constant 0 : index
    %147 = vector.load %arg10[%c1_72, %c0_73, %c0_74] : memref<2x8x128xf32, #tpu.memory_space<vmem>>, vector<1x8x128xf32>
    %148 = vector.shape_cast %147 : vector<1x8x128xf32> to vector<8x128xf32>
    %c1_75 = arith.constant 1 : index
    %c0_76 = arith.constant 0 : index
    %c0_77 = arith.constant 0 : index
    %149 = vector.load %arg11[%c1_75, %c0_76, %c0_77] : memref<2x8x128xf32, #tpu.memory_space<vmem>>, vector<1x8x128xf32>
    %150 = vector.shape_cast %149 : vector<1x8x128xf32> to vector<8x128xf32>
    %151 = arith.truncf %140 : vector<8x128xf32> to vector<8x128xbf16>
    %c0_78 = arith.constant 0 : index
    %c0_79 = arith.constant 0 : index
    %152 = vector.load %arg6[%c0_78, %c0_79] : memref<128x512xbf16, #tpu.memory_space<vmem>>, vector<128x512xbf16>
    %cst_80 = arith.constant dense<0.000000e+00> : vector<8x512xf32>
    %153 = tpu.matmul %151, %152, %cst_80 {dimension_numbers = #tpu.dot_dimension_numbers<[1], [0], [0], [1], [0, 0, 1, 1], [], []>} : vector<8x128xbf16>, vector<128x512xbf16>, vector<8x512xf32> -> vector<8x512xf32>
    %154 = arith.truncf %148 : vector<8x128xf32> to vector<8x128xbf16>
    %c0_81 = arith.constant 0 : index
    %c0_82 = arith.constant 0 : index
    %155 = vector.load %arg7[%c0_81, %c0_82] : memref<128x512xbf16, #tpu.memory_space<vmem>>, vector<128x512xbf16>
    %cst_83 = arith.constant dense<0.000000e+00> : vector<8x512xf32>
    %156 = tpu.matmul %154, %155, %cst_83 {dimension_numbers = #tpu.dot_dimension_numbers<[1], [0], [0], [1], [0, 0, 1, 1], [], []>} : vector<8x128xbf16>, vector<128x512xbf16>, vector<8x512xf32> -> vector<8x512xf32>
    %157 = arith.addf %153, %156 : vector<8x512xf32>
    %158 = vector.broadcast %4 : vector<1x512xf32> to vector<8x512xf32>
    %159 = arith.addf %157, %158 : vector<8x512xf32>
    %160 = vector.extract_strided_slice %159 {offsets = [0, 0], sizes = [8, 128], strides = [1, 1]} : vector<8x512xf32> to vector<8x128xf32>
    %161 = arith.negf %160 : vector<8x128xf32>
    %162 = math.exp %161 : vector<8x128xf32>
    %cst_84 = arith.constant 1.000000e+00 : f32
    %163 = vector.broadcast %cst_84 : f32 to vector<8x128xf32>
    %164 = arith.addf %163, %162 : vector<8x128xf32>
    %165 = arith.divf %163, %164 : vector<8x128xf32>
    %166 = vector.extract_strided_slice %159 {offsets = [0, 128], sizes = [8, 128], strides = [1, 1]} : vector<8x512xf32> to vector<8x128xf32>
    %167 = arith.negf %166 : vector<8x128xf32>
    %168 = math.exp %167 : vector<8x128xf32>
    %cst_85 = arith.constant 1.000000e+00 : f32
    %169 = vector.broadcast %cst_85 : f32 to vector<8x128xf32>
    %170 = arith.addf %169, %168 : vector<8x128xf32>
    %171 = arith.divf %169, %170 : vector<8x128xf32>
    %172 = vector.extract_strided_slice %159 {offsets = [0, 256], sizes = [8, 128], strides = [1, 1]} : vector<8x512xf32> to vector<8x128xf32>
    %173 = math.tanh %172 : vector<8x128xf32>
    %174 = vector.extract_strided_slice %159 {offsets = [0, 384], sizes = [8, 128], strides = [1, 1]} : vector<8x512xf32> to vector<8x128xf32>
    %175 = arith.negf %174 : vector<8x128xf32>
    %176 = math.exp %175 : vector<8x128xf32>
    %cst_86 = arith.constant 1.000000e+00 : f32
    %177 = vector.broadcast %cst_86 : f32 to vector<8x128xf32>
    %178 = arith.addf %177, %176 : vector<8x128xf32>
    %179 = arith.divf %177, %178 : vector<8x128xf32>
    %180 = arith.mulf %171, %150 : vector<8x128xf32>
    %181 = arith.mulf %165, %173 : vector<8x128xf32>
    %182 = arith.addf %180, %181 : vector<8x128xf32>
    %183 = math.tanh %182 : vector<8x128xf32>
    %184 = arith.mulf %179, %183 : vector<8x128xf32>
    %c1_87 = arith.constant 1 : index
    %c0_88 = arith.constant 0 : index
    %c0_89 = arith.constant 0 : index
    %185 = vector.load %arg10[%c1_87, %c0_88, %c0_89] : memref<2x8x128xf32, #tpu.memory_space<vmem>>, vector<1x8x128xf32>
    %186 = vector.shape_cast %185 : vector<1x8x128xf32> to vector<8x128xf32>
    %187 = vector.shape_cast %184 : vector<8x128xf32> to vector<1x8x128xf32>
    tpu.vector_store %arg10[%c1_87, %c0_88, %c0_89], %187 {strides = array<i32>} : memref<2x8x128xf32, #tpu.memory_space<vmem>>, vector<1x8x128xf32>,
    %c1_90 = arith.constant 1 : index
    %c0_91 = arith.constant 0 : index
    %c0_92 = arith.constant 0 : index
    %188 = vector.load %arg11[%c1_90, %c0_91, %c0_92] : memref<2x8x128xf32, #tpu.memory_space<vmem>>, vector<1x8x128xf32>
    %189 = vector.shape_cast %188 : vector<1x8x128xf32> to vector<8x128xf32>
    %190 = vector.shape_cast %182 : vector<8x128xf32> to vector<1x8x128xf32>
    tpu.vector_store %arg11[%c1_90, %c0_91, %c0_92], %190 {strides = array<i32>} : memref<2x8x128xf32, #tpu.memory_space<vmem>>, vector<1x8x128xf32>,
    %191 = arith.index_cast %c1_i32 : i32 to index
    %c0_93 = arith.constant 0 : index
    %c0_94 = arith.constant 0 : index
    %192 = vector.load %arg9[%191, %c0_93, %c0_94] : memref<4x8x128xf32, #tpu.memory_space<vmem>>, vector<1x8x128xf32>
    %193 = vector.shape_cast %192 : vector<1x8x128xf32> to vector<8x128xf32>
    %194 = vector.shape_cast %184 : vector<8x128xf32> to vector<1x8x128xf32>
    tpu.vector_store %arg9[%191, %c0_93, %c0_94], %194 {strides = array<i32>} : memref<4x8x128xf32, #tpu.memory_space<vmem>>, vector<1x8x128xf32>,
    %c2_i32 = arith.constant 2 : i32
    %195 = arith.index_cast %c2_i32 : i32 to index
    %c0_95 = arith.constant 0 : index
    %c0_96 = arith.constant 0 : index
    %196 = vector.load %arg2[%195, %c0_95, %c0_96] : memref<4x8x128xf32, #tpu.memory_space<vmem>>, vector<1x8x128xf32>
    %197 = vector.shape_cast %196 : vector<1x8x128xf32> to vector<8x128xf32>
    %c0_97 = arith.constant 0 : index
    %c0_98 = arith.constant 0 : index
    %c0_99 = arith.constant 0 : index
    %198 = vector.load %arg10[%c0_97, %c0_98, %c0_99] : memref<2x8x128xf32, #tpu.memory_space<vmem>>, vector<1x8x128xf32>
    %199 = vector.shape_cast %198 : vector<1x8x128xf32> to vector<8x128xf32>
    %c0_100 = arith.constant 0 : index
    %c0_101 = arith.constant 0 : index
    %c0_102 = arith.constant 0 : index
    %200 = vector.load %arg11[%c0_100, %c0_101, %c0_102] : memref<2x8x128xf32, #tpu.memory_space<vmem>>, vector<1x8x128xf32>
    %201 = vector.shape_cast %200 : vector<1x8x128xf32> to vector<8x128xf32>
    %202 = arith.truncf %197 : vector<8x128xf32> to vector<8x128xbf16>
    %c0_103 = arith.constant 0 : index
    %c0_104 = arith.constant 0 : index
    %203 = vector.load %arg3[%c0_103, %c0_104] : memref<128x512xbf16, #tpu.memory_space<vmem>>, vector<128x512xbf16>
    %cst_105 = arith.constant dense<0.000000e+00> : vector<8x512xf32>
    %204 = tpu.matmul %202, %203, %cst_105 {dimension_numbers = #tpu.dot_dimension_numbers<[1], [0], [0], [1], [0, 0, 1, 1], [], []>} : vector<8x128xbf16>, vector<128x512xbf16>, vector<8x512xf32> -> vector<8x512xf32>
    %205 = arith.truncf %199 : vector<8x128xf32> to vector<8x128xbf16>
    %c0_106 = arith.constant 0 : index
    %c0_107 = arith.constant 0 : index
    %206 = vector.load %arg4[%c0_106, %c0_107] : memref<128x512xbf16, #tpu.memory_space<vmem>>, vector<128x512xbf16>
    %cst_108 = arith.constant dense<0.000000e+00> : vector<8x512xf32>
    %207 = tpu.matmul %205, %206, %cst_108 {dimension_numbers = #tpu.dot_dimension_numbers<[1], [0], [0], [1], [0, 0, 1, 1], [], []>} : vector<8x128xbf16>, vector<128x512xbf16>, vector<8x512xf32> -> vector<8x512xf32>
    %208 = arith.addf %204, %207 : vector<8x512xf32>
    %209 = vector.broadcast %3 : vector<1x512xf32> to vector<8x512xf32>
    %210 = arith.addf %208, %209 : vector<8x512xf32>
    %211 = vector.extract_strided_slice %210 {offsets = [0, 0], sizes = [8, 128], strides = [1, 1]} : vector<8x512xf32> to vector<8x128xf32>
    %212 = arith.negf %211 : vector<8x128xf32>
    %213 = math.exp %212 : vector<8x128xf32>
    %cst_109 = arith.constant 1.000000e+00 : f32
    %214 = vector.broadcast %cst_109 : f32 to vector<8x128xf32>
    %215 = arith.addf %214, %213 : vector<8x128xf32>
    %216 = arith.divf %214, %215 : vector<8x128xf32>
    %217 = vector.extract_strided_slice %210 {offsets = [0, 128], sizes = [8, 128], strides = [1, 1]} : vector<8x512xf32> to vector<8x128xf32>
    %218 = arith.negf %217 : vector<8x128xf32>
    %219 = math.exp %218 : vector<8x128xf32>
    %cst_110 = arith.constant 1.000000e+00 : f32
    %220 = vector.broadcast %cst_110 : f32 to vector<8x128xf32>
    %221 = arith.addf %220, %219 : vector<8x128xf32>
    %222 = arith.divf %220, %221 : vector<8x128xf32>
    %223 = vector.extract_strided_slice %210 {offsets = [0, 256], sizes = [8, 128], strides = [1, 1]} : vector<8x512xf32> to vector<8x128xf32>
    %224 = math.tanh %223 : vector<8x128xf32>
    %225 = vector.extract_strided_slice %210 {offsets = [0, 384], sizes = [8, 128], strides = [1, 1]} : vector<8x512xf32> to vector<8x128xf32>
    %226 = arith.negf %225 : vector<8x128xf32>
    %227 = math.exp %226 : vector<8x128xf32>
    %cst_111 = arith.constant 1.000000e+00 : f32
    %228 = vector.broadcast %cst_111 : f32 to vector<8x128xf32>
    %229 = arith.addf %228, %227 : vector<8x128xf32>
    %230 = arith.divf %228, %229 : vector<8x128xf32>
    %231 = arith.mulf %222, %201 : vector<8x128xf32>
    %232 = arith.mulf %216, %224 : vector<8x128xf32>
    %233 = arith.addf %231, %232 : vector<8x128xf32>
    %234 = math.tanh %233 : vector<8x128xf32>
    %235 = arith.mulf %230, %234 : vector<8x128xf32>
    %c0_112 = arith.constant 0 : index
    %c0_113 = arith.constant 0 : index
    %c0_114 = arith.constant 0 : index
    %236 = vector.load %arg10[%c0_112, %c0_113, %c0_114] : memref<2x8x128xf32, #tpu.memory_space<vmem>>, vector<1x8x128xf32>
    %237 = vector.shape_cast %236 : vector<1x8x128xf32> to vector<8x128xf32>
    %238 = vector.shape_cast %235 : vector<8x128xf32> to vector<1x8x128xf32>
    tpu.vector_store %arg10[%c0_112, %c0_113, %c0_114], %238 {strides = array<i32>} : memref<2x8x128xf32, #tpu.memory_space<vmem>>, vector<1x8x128xf32>,
    %c0_115 = arith.constant 0 : index
    %c0_116 = arith.constant 0 : index
    %c0_117 = arith.constant 0 : index
    %239 = vector.load %arg11[%c0_115, %c0_116, %c0_117] : memref<2x8x128xf32, #tpu.memory_space<vmem>>, vector<1x8x128xf32>
    %240 = vector.shape_cast %239 : vector<1x8x128xf32> to vector<8x128xf32>
    %241 = vector.shape_cast %233 : vector<8x128xf32> to vector<1x8x128xf32>
    tpu.vector_store %arg11[%c0_115, %c0_116, %c0_117], %241 {strides = array<i32>} : memref<2x8x128xf32, #tpu.memory_space<vmem>>, vector<1x8x128xf32>,
    %c1_118 = arith.constant 1 : index
    %c0_119 = arith.constant 0 : index
    %c0_120 = arith.constant 0 : index
    %242 = vector.load %arg10[%c1_118, %c0_119, %c0_120] : memref<2x8x128xf32, #tpu.memory_space<vmem>>, vector<1x8x128xf32>
    %243 = vector.shape_cast %242 : vector<1x8x128xf32> to vector<8x128xf32>
    %c1_121 = arith.constant 1 : index
    %c0_122 = arith.constant 0 : index
    %c0_123 = arith.constant 0 : index
    %244 = vector.load %arg11[%c1_121, %c0_122, %c0_123] : memref<2x8x128xf32, #tpu.memory_space<vmem>>, vector<1x8x128xf32>
    %245 = vector.shape_cast %244 : vector<1x8x128xf32> to vector<8x128xf32>
    %246 = arith.truncf %235 : vector<8x128xf32> to vector<8x128xbf16>
    %c0_124 = arith.constant 0 : index
    %c0_125 = arith.constant 0 : index
    %247 = vector.load %arg6[%c0_124, %c0_125] : memref<128x512xbf16, #tpu.memory_space<vmem>>, vector<128x512xbf16>
    %cst_126 = arith.constant dense<0.000000e+00> : vector<8x512xf32>
    %248 = tpu.matmul %246, %247, %cst_126 {dimension_numbers = #tpu.dot_dimension_numbers<[1], [0], [0], [1], [0, 0, 1, 1], [], []>} : vector<8x128xbf16>, vector<128x512xbf16>, vector<8x512xf32> -> vector<8x512xf32>
    %249 = arith.truncf %243 : vector<8x128xf32> to vector<8x128xbf16>
    %c0_127 = arith.constant 0 : index
    %c0_128 = arith.constant 0 : index
    %250 = vector.load %arg7[%c0_127, %c0_128] : memref<128x512xbf16, #tpu.memory_space<vmem>>, vector<128x512xbf16>
    %cst_129 = arith.constant dense<0.000000e+00> : vector<8x512xf32>
    %251 = tpu.matmul %249, %250, %cst_129 {dimension_numbers = #tpu.dot_dimension_numbers<[1], [0], [0], [1], [0, 0, 1, 1], [], []>} : vector<8x128xbf16>, vector<128x512xbf16>, vector<8x512xf32> -> vector<8x512xf32>
    %252 = arith.addf %248, %251 : vector<8x512xf32>
    %253 = vector.broadcast %4 : vector<1x512xf32> to vector<8x512xf32>
    %254 = arith.addf %252, %253 : vector<8x512xf32>
    %255 = vector.extract_strided_slice %254 {offsets = [0, 0], sizes = [8, 128], strides = [1, 1]} : vector<8x512xf32> to vector<8x128xf32>
    %256 = arith.negf %255 : vector<8x128xf32>
    %257 = math.exp %256 : vector<8x128xf32>
    %cst_130 = arith.constant 1.000000e+00 : f32
    %258 = vector.broadcast %cst_130 : f32 to vector<8x128xf32>
    %259 = arith.addf %258, %257 : vector<8x128xf32>
    %260 = arith.divf %258, %259 : vector<8x128xf32>
    %261 = vector.extract_strided_slice %254 {offsets = [0, 128], sizes = [8, 128], strides = [1, 1]} : vector<8x512xf32> to vector<8x128xf32>
    %262 = arith.negf %261 : vector<8x128xf32>
    %263 = math.exp %262 : vector<8x128xf32>
    %cst_131 = arith.constant 1.000000e+00 : f32
    %264 = vector.broadcast %cst_131 : f32 to vector<8x128xf32>
    %265 = arith.addf %264, %263 : vector<8x128xf32>
    %266 = arith.divf %264, %265 : vector<8x128xf32>
    %267 = vector.extract_strided_slice %254 {offsets = [0, 256], sizes = [8, 128], strides = [1, 1]} : vector<8x512xf32> to vector<8x128xf32>
    %268 = math.tanh %267 : vector<8x128xf32>
    %269 = vector.extract_strided_slice %254 {offsets = [0, 384], sizes = [8, 128], strides = [1, 1]} : vector<8x512xf32> to vector<8x128xf32>
    %270 = arith.negf %269 : vector<8x128xf32>
    %271 = math.exp %270 : vector<8x128xf32>
    %cst_132 = arith.constant 1.000000e+00 : f32
    %272 = vector.broadcast %cst_132 : f32 to vector<8x128xf32>
    %273 = arith.addf %272, %271 : vector<8x128xf32>
    %274 = arith.divf %272, %273 : vector<8x128xf32>
    %275 = arith.mulf %266, %245 : vector<8x128xf32>
    %276 = arith.mulf %260, %268 : vector<8x128xf32>
    %277 = arith.addf %275, %276 : vector<8x128xf32>
    %278 = math.tanh %277 : vector<8x128xf32>
    %279 = arith.mulf %274, %278 : vector<8x128xf32>
    %c1_133 = arith.constant 1 : index
    %c0_134 = arith.constant 0 : index
    %c0_135 = arith.constant 0 : index
    %280 = vector.load %arg10[%c1_133, %c0_134, %c0_135] : memref<2x8x128xf32, #tpu.memory_space<vmem>>, vector<1x8x128xf32>
    %281 = vector.shape_cast %280 : vector<1x8x128xf32> to vector<8x128xf32>
    %282 = vector.shape_cast %279 : vector<8x128xf32> to vector<1x8x128xf32>
    tpu.vector_store %arg10[%c1_133, %c0_134, %c0_135], %282 {strides = array<i32>} : memref<2x8x128xf32, #tpu.memory_space<vmem>>, vector<1x8x128xf32>,
    %c1_136 = arith.constant 1 : index
    %c0_137 = arith.constant 0 : index
    %c0_138 = arith.constant 0 : index
    %283 = vector.load %arg11[%c1_136, %c0_137, %c0_138] : memref<2x8x128xf32, #tpu.memory_space<vmem>>, vector<1x8x128xf32>
    %284 = vector.shape_cast %283 : vector<1x8x128xf32> to vector<8x128xf32>
    %285 = vector.shape_cast %277 : vector<8x128xf32> to vector<1x8x128xf32>
    tpu.vector_store %arg11[%c1_136, %c0_137, %c0_138], %285 {strides = array<i32>} : memref<2x8x128xf32, #tpu.memory_space<vmem>>, vector<1x8x128xf32>,
    %286 = arith.index_cast %c2_i32 : i32 to index
    %c0_139 = arith.constant 0 : index
    %c0_140 = arith.constant 0 : index
    %287 = vector.load %arg9[%286, %c0_139, %c0_140] : memref<4x8x128xf32, #tpu.memory_space<vmem>>, vector<1x8x128xf32>
    %288 = vector.shape_cast %287 : vector<1x8x128xf32> to vector<8x128xf32>
    %289 = vector.shape_cast %279 : vector<8x128xf32> to vector<1x8x128xf32>
    tpu.vector_store %arg9[%286, %c0_139, %c0_140], %289 {strides = array<i32>} : memref<4x8x128xf32, #tpu.memory_space<vmem>>, vector<1x8x128xf32>,
    %c3_i32 = arith.constant 3 : i32
    %290 = arith.index_cast %c3_i32 : i32 to index
    %c0_141 = arith.constant 0 : index
    %c0_142 = arith.constant 0 : index
    %291 = vector.load %arg2[%290, %c0_141, %c0_142] : memref<4x8x128xf32, #tpu.memory_space<vmem>>, vector<1x8x128xf32>
    %292 = vector.shape_cast %291 : vector<1x8x128xf32> to vector<8x128xf32>
    %c0_143 = arith.constant 0 : index
    %c0_144 = arith.constant 0 : index
    %c0_145 = arith.constant 0 : index
    %293 = vector.load %arg10[%c0_143, %c0_144, %c0_145] : memref<2x8x128xf32, #tpu.memory_space<vmem>>, vector<1x8x128xf32>
    %294 = vector.shape_cast %293 : vector<1x8x128xf32> to vector<8x128xf32>
    %c0_146 = arith.constant 0 : index
    %c0_147 = arith.constant 0 : index
    %c0_148 = arith.constant 0 : index
    %295 = vector.load %arg11[%c0_146, %c0_147, %c0_148] : memref<2x8x128xf32, #tpu.memory_space<vmem>>, vector<1x8x128xf32>
    %296 = vector.shape_cast %295 : vector<1x8x128xf32> to vector<8x128xf32>
    %297 = arith.truncf %292 : vector<8x128xf32> to vector<8x128xbf16>
    %c0_149 = arith.constant 0 : index
    %c0_150 = arith.constant 0 : index
    %298 = vector.load %arg3[%c0_149, %c0_150] : memref<128x512xbf16, #tpu.memory_space<vmem>>, vector<128x512xbf16>
    %cst_151 = arith.constant dense<0.000000e+00> : vector<8x512xf32>
    %299 = tpu.matmul %297, %298, %cst_151 {dimension_numbers = #tpu.dot_dimension_numbers<[1], [0], [0], [1], [0, 0, 1, 1], [], []>} : vector<8x128xbf16>, vector<128x512xbf16>, vector<8x512xf32> -> vector<8x512xf32>
    %300 = arith.truncf %294 : vector<8x128xf32> to vector<8x128xbf16>
    %c0_152 = arith.constant 0 : index
    %c0_153 = arith.constant 0 : index
    %301 = vector.load %arg4[%c0_152, %c0_153] : memref<128x512xbf16, #tpu.memory_space<vmem>>, vector<128x512xbf16>
    %cst_154 = arith.constant dense<0.000000e+00> : vector<8x512xf32>
    %302 = tpu.matmul %300, %301, %cst_154 {dimension_numbers = #tpu.dot_dimension_numbers<[1], [0], [0], [1], [0, 0, 1, 1], [], []>} : vector<8x128xbf16>, vector<128x512xbf16>, vector<8x512xf32> -> vector<8x512xf32>
    %303 = arith.addf %299, %302 : vector<8x512xf32>
    %304 = vector.broadcast %3 : vector<1x512xf32> to vector<8x512xf32>
    %305 = arith.addf %303, %304 : vector<8x512xf32>
    %306 = vector.extract_strided_slice %305 {offsets = [0, 0], sizes = [8, 128], strides = [1, 1]} : vector<8x512xf32> to vector<8x128xf32>
    %307 = arith.negf %306 : vector<8x128xf32>
    %308 = math.exp %307 : vector<8x128xf32>
    %cst_155 = arith.constant 1.000000e+00 : f32
    %309 = vector.broadcast %cst_155 : f32 to vector<8x128xf32>
    %310 = arith.addf %309, %308 : vector<8x128xf32>
    %311 = arith.divf %309, %310 : vector<8x128xf32>
    %312 = vector.extract_strided_slice %305 {offsets = [0, 128], sizes = [8, 128], strides = [1, 1]} : vector<8x512xf32> to vector<8x128xf32>
    %313 = arith.negf %312 : vector<8x128xf32>
    %314 = math.exp %313 : vector<8x128xf32>
    %cst_156 = arith.constant 1.000000e+00 : f32
    %315 = vector.broadcast %cst_156 : f32 to vector<8x128xf32>
    %316 = arith.addf %315, %314 : vector<8x128xf32>
    %317 = arith.divf %315, %316 : vector<8x128xf32>
    %318 = vector.extract_strided_slice %305 {offsets = [0, 256], sizes = [8, 128], strides = [1, 1]} : vector<8x512xf32> to vector<8x128xf32>
    %319 = math.tanh %318 : vector<8x128xf32>
    %320 = vector.extract_strided_slice %305 {offsets = [0, 384], sizes = [8, 128], strides = [1, 1]} : vector<8x512xf32> to vector<8x128xf32>
    %321 = arith.negf %320 : vector<8x128xf32>
    %322 = math.exp %321 : vector<8x128xf32>
    %cst_157 = arith.constant 1.000000e+00 : f32
    %323 = vector.broadcast %cst_157 : f32 to vector<8x128xf32>
    %324 = arith.addf %323, %322 : vector<8x128xf32>
    %325 = arith.divf %323, %324 : vector<8x128xf32>
    %326 = arith.mulf %317, %296 : vector<8x128xf32>
    %327 = arith.mulf %311, %319 : vector<8x128xf32>
    %328 = arith.addf %326, %327 : vector<8x128xf32>
    %329 = math.tanh %328 : vector<8x128xf32>
    %330 = arith.mulf %325, %329 : vector<8x128xf32>
    %c0_158 = arith.constant 0 : index
    %c0_159 = arith.constant 0 : index
    %c0_160 = arith.constant 0 : index
    %331 = vector.load %arg10[%c0_158, %c0_159, %c0_160] : memref<2x8x128xf32, #tpu.memory_space<vmem>>, vector<1x8x128xf32>
    %332 = vector.shape_cast %331 : vector<1x8x128xf32> to vector<8x128xf32>
    %333 = vector.shape_cast %330 : vector<8x128xf32> to vector<1x8x128xf32>
    tpu.vector_store %arg10[%c0_158, %c0_159, %c0_160], %333 {strides = array<i32>} : memref<2x8x128xf32, #tpu.memory_space<vmem>>, vector<1x8x128xf32>,
    %c0_161 = arith.constant 0 : index
    %c0_162 = arith.constant 0 : index
    %c0_163 = arith.constant 0 : index
    %334 = vector.load %arg11[%c0_161, %c0_162, %c0_163] : memref<2x8x128xf32, #tpu.memory_space<vmem>>, vector<1x8x128xf32>
    %335 = vector.shape_cast %334 : vector<1x8x128xf32> to vector<8x128xf32>
    %336 = vector.shape_cast %328 : vector<8x128xf32> to vector<1x8x128xf32>
    tpu.vector_store %arg11[%c0_161, %c0_162, %c0_163], %336 {strides = array<i32>} : memref<2x8x128xf32, #tpu.memory_space<vmem>>, vector<1x8x128xf32>,
    %c1_164 = arith.constant 1 : index
    %c0_165 = arith.constant 0 : index
    %c0_166 = arith.constant 0 : index
    %337 = vector.load %arg10[%c1_164, %c0_165, %c0_166] : memref<2x8x128xf32, #tpu.memory_space<vmem>>, vector<1x8x128xf32>
    %338 = vector.shape_cast %337 : vector<1x8x128xf32> to vector<8x128xf32>
    %c1_167 = arith.constant 1 : index
    %c0_168 = arith.constant 0 : index
    %c0_169 = arith.constant 0 : index
    %339 = vector.load %arg11[%c1_167, %c0_168, %c0_169] : memref<2x8x128xf32, #tpu.memory_space<vmem>>, vector<1x8x128xf32>
    %340 = vector.shape_cast %339 : vector<1x8x128xf32> to vector<8x128xf32>
    %341 = arith.truncf %330 : vector<8x128xf32> to vector<8x128xbf16>
    %c0_170 = arith.constant 0 : index
    %c0_171 = arith.constant 0 : index
    %342 = vector.load %arg6[%c0_170, %c0_171] : memref<128x512xbf16, #tpu.memory_space<vmem>>, vector<128x512xbf16>
    %cst_172 = arith.constant dense<0.000000e+00> : vector<8x512xf32>
    %343 = tpu.matmul %341, %342, %cst_172 {dimension_numbers = #tpu.dot_dimension_numbers<[1], [0], [0], [1], [0, 0, 1, 1], [], []>} : vector<8x128xbf16>, vector<128x512xbf16>, vector<8x512xf32> -> vector<8x512xf32>
    %344 = arith.truncf %338 : vector<8x128xf32> to vector<8x128xbf16>
    %c0_173 = arith.constant 0 : index
    %c0_174 = arith.constant 0 : index
    %345 = vector.load %arg7[%c0_173, %c0_174] : memref<128x512xbf16, #tpu.memory_space<vmem>>, vector<128x512xbf16>
    %cst_175 = arith.constant dense<0.000000e+00> : vector<8x512xf32>
    %346 = tpu.matmul %344, %345, %cst_175 {dimension_numbers = #tpu.dot_dimension_numbers<[1], [0], [0], [1], [0, 0, 1, 1], [], []>} : vector<8x128xbf16>, vector<128x512xbf16>, vector<8x512xf32> -> vector<8x512xf32>
    %347 = arith.addf %343, %346 : vector<8x512xf32>
    %348 = vector.broadcast %4 : vector<1x512xf32> to vector<8x512xf32>
    %349 = arith.addf %347, %348 : vector<8x512xf32>
    %350 = vector.extract_strided_slice %349 {offsets = [0, 0], sizes = [8, 128], strides = [1, 1]} : vector<8x512xf32> to vector<8x128xf32>
    %351 = arith.negf %350 : vector<8x128xf32>
    %352 = math.exp %351 : vector<8x128xf32>
    %cst_176 = arith.constant 1.000000e+00 : f32
    %353 = vector.broadcast %cst_176 : f32 to vector<8x128xf32>
    %354 = arith.addf %353, %352 : vector<8x128xf32>
    %355 = arith.divf %353, %354 : vector<8x128xf32>
    %356 = vector.extract_strided_slice %349 {offsets = [0, 128], sizes = [8, 128], strides = [1, 1]} : vector<8x512xf32> to vector<8x128xf32>
    %357 = arith.negf %356 : vector<8x128xf32>
    %358 = math.exp %357 : vector<8x128xf32>
    %cst_177 = arith.constant 1.000000e+00 : f32
    %359 = vector.broadcast %cst_177 : f32 to vector<8x128xf32>
    %360 = arith.addf %359, %358 : vector<8x128xf32>
    %361 = arith.divf %359, %360 : vector<8x128xf32>
    %362 = vector.extract_strided_slice %349 {offsets = [0, 256], sizes = [8, 128], strides = [1, 1]} : vector<8x512xf32> to vector<8x128xf32>
    %363 = math.tanh %362 : vector<8x128xf32>
    %364 = vector.extract_strided_slice %349 {offsets = [0, 384], sizes = [8, 128], strides = [1, 1]} : vector<8x512xf32> to vector<8x128xf32>
    %365 = arith.negf %364 : vector<8x128xf32>
    %366 = math.exp %365 : vector<8x128xf32>
    %cst_178 = arith.constant 1.000000e+00 : f32
    %367 = vector.broadcast %cst_178 : f32 to vector<8x128xf32>
    %368 = arith.addf %367, %366 : vector<8x128xf32>
    %369 = arith.divf %367, %368 : vector<8x128xf32>
    %370 = arith.mulf %361, %340 : vector<8x128xf32>
    %371 = arith.mulf %355, %363 : vector<8x128xf32>
    %372 = arith.addf %370, %371 : vector<8x128xf32>
    %373 = math.tanh %372 : vector<8x128xf32>
    %374 = arith.mulf %369, %373 : vector<8x128xf32>
    %c1_179 = arith.constant 1 : index
    %c0_180 = arith.constant 0 : index
    %c0_181 = arith.constant 0 : index
    %375 = vector.load %arg10[%c1_179, %c0_180, %c0_181] : memref<2x8x128xf32, #tpu.memory_space<vmem>>, vector<1x8x128xf32>
    %376 = vector.shape_cast %375 : vector<1x8x128xf32> to vector<8x128xf32>
    %377 = vector.shape_cast %374 : vector<8x128xf32> to vector<1x8x128xf32>
    tpu.vector_store %arg10[%c1_179, %c0_180, %c0_181], %377 {strides = array<i32>} : memref<2x8x128xf32, #tpu.memory_space<vmem>>, vector<1x8x128xf32>,
    %c1_182 = arith.constant 1 : index
    %c0_183 = arith.constant 0 : index
    %c0_184 = arith.constant 0 : index
    %378 = vector.load %arg11[%c1_182, %c0_183, %c0_184] : memref<2x8x128xf32, #tpu.memory_space<vmem>>, vector<1x8x128xf32>
    %379 = vector.shape_cast %378 : vector<1x8x128xf32> to vector<8x128xf32>
    %380 = vector.shape_cast %372 : vector<8x128xf32> to vector<1x8x128xf32>
    tpu.vector_store %arg11[%c1_182, %c0_183, %c0_184], %380 {strides = array<i32>} : memref<2x8x128xf32, #tpu.memory_space<vmem>>, vector<1x8x128xf32>,
    %381 = arith.index_cast %c3_i32 : i32 to index
    %c0_185 = arith.constant 0 : index
    %c0_186 = arith.constant 0 : index
    %382 = vector.load %arg9[%381, %c0_185, %c0_186] : memref<4x8x128xf32, #tpu.memory_space<vmem>>, vector<1x8x128xf32>
    %383 = vector.shape_cast %382 : vector<1x8x128xf32> to vector<8x128xf32>
    %384 = vector.shape_cast %374 : vector<8x128xf32> to vector<1x8x128xf32>
    tpu.vector_store %arg9[%381, %c0_185, %c0_186], %384 {strides = array<i32>} : memref<4x8x128xf32, #tpu.memory_space<vmem>>, vector<1x8x128xf32>,
    %c4_i32 = arith.constant 4 : i32
    return
  }
  func.func @transform_0(%arg0: i32, %arg1: i32) -> (i32, i32, i32) {
    %c0_i32 = arith.constant 0 : i32
    %c0_i32_0 = arith.constant 0 : i32
    return %arg1, %arg0, %c0_i32 : i32, i32, i32
  }
  func.func @transform_1(%arg0: i32, %arg1: i32) -> (i32, i32) {
    %c0_i32 = arith.constant 0 : i32
    %c0_i32_0 = arith.constant 0 : i32
    %c0_i32_1 = arith.constant 0 : i32
    return %c0_i32, %c0_i32_0 : i32, i32
  }
  func.func @transform_2(%arg0: i32, %arg1: i32) -> (i32, i32) {
    %c0_i32 = arith.constant 0 : i32
    %c0_i32_0 = arith.constant 0 : i32
    %c0_i32_1 = arith.constant 0 : i32
    return %c0_i32, %c0_i32_0 : i32, i32
  }
  func.func @transform_3(%arg0: i32, %arg1: i32) -> (i32, i32) {
    %c0_i32 = arith.constant 0 : i32
    %c0_i32_0 = arith.constant 0 : i32
    %c0_i32_1 = arith.constant 0 : i32
    return %c0_i32, %c0_i32_0 : i32, i32
  }
  func.func @transform_4(%arg0: i32, %arg1: i32) -> (i32, i32) {
    %c0_i32 = arith.constant 0 : i32
    %c0_i32_0 = arith.constant 0 : i32
    %c0_i32_1 = arith.constant 0 : i32
    return %c0_i32, %c0_i32_0 : i32, i32
  }
  func.func @transform_5(%arg0: i32, %arg1: i32) -> (i32, i32) {
    %c0_i32 = arith.constant 0 : i32
    %c0_i32_0 = arith.constant 0 : i32
    %c0_i32_1 = arith.constant 0 : i32
    return %c0_i32, %c0_i32_0 : i32, i32
  }
  func.func @transform_6(%arg0: i32, %arg1: i32) -> (i32, i32) {
    %c0_i32 = arith.constant 0 : i32
    %c0_i32_0 = arith.constant 0 : i32
    %c0_i32_1 = arith.constant 0 : i32
    return %c0_i32, %c0_i32_0 : i32, i32
  }
  func.func @transform_7(%arg0: i32, %arg1: i32) -> (i32, i32, i32) {
    %c0_i32 = arith.constant 0 : i32
    %c0_i32_0 = arith.constant 0 : i32
    return %arg1, %arg0, %c0_i32 : i32, i32, i32
  }
  func.func @transform_8(%arg0: i32, %arg1: i32) -> (i32, i32, i32) {
    %c0_i32 = arith.constant 0 : i32
    %c0_i32_0 = arith.constant 0 : i32
    %c0_i32_1 = arith.constant 0 : i32
    return %c0_i32, %arg0, %c0_i32_0 : i32, i32, i32
  }
  func.func @transform_9(%arg0: i32, %arg1: i32) -> (i32, i32, i32) {
    %c0_i32 = arith.constant 0 : i32
    %c0_i32_0 = arith.constant 0 : i32
    %c0_i32_1 = arith.constant 0 : i32
    return %c0_i32, %arg0, %c0_i32_0 : i32, i32, i32
  }
}

</mosaic_0001>

<bundles_post_ra>
// kernel: tpu_custom_call.1
= control target key start
LH: loop header
LB: loop body
LE: loop exit
PB: predicated region body
PF: predicated region fallthrough
CT: control target
= control target key end

     0   :  { %s8211_s0 = inlined_call_operand.hbm [shape: f32[8,8,128], index: 0, kind: input, shape index: {}]   ;;  %s8212_s1 = inlined_call_operand.hbm [shape: bf16[128,512], index: 1, kind: input, shape index: {}]   ;;  %s8213_s2 = inlined_call_operand.hbm [shape: bf16[128,512], index: 2, kind: input, shape index: {}]   ;;  %s8214_s3 = inlined_call_operand.vmem [shape: f32[1,512], index: 3, kind: input, shape index: {}]   ;;  %s8215_s4 = inlined_call_operand.hbm [shape: bf16[128,512], index: 4, kind: input, shape index: {}]   ;;  %s8216_s5 = inlined_call_operand.hbm [shape: bf16[128,512], index: 5, kind: input, shape index: {}]   ;;  %s8217_s6 = inlined_call_operand.vmem [shape: f32[1,512], index: 6, kind: input, shape index: {}]   ;;  %s8218_s7 = inlined_call_operand.hbm [shape: f32[8,8,128], index: 7, kind: output, shape index: {0}]   ;;  %s8219_s8 = inlined_call_operand.hbm [shape: f32[2,8,128], index: 8, kind: output, shape index: {1}]   ;;  %s8220_s9 = inlined_call_operand.hbm [shape: f32[2,8,128], index: 9, kind: output, shape index: {2}]  }
   0x1   :  { %8348 = sst [smem:[#allocation103_spill]] %s8212_s1 }
   0x2   :  { %8349 = sst [smem:[#allocation104_spill]] %s8213_s2 }
   0x3   :  { %8350 = sst [smem:[#allocation105_spill]] %s8215_s4 }
   0x4   :  { %8351 = sst [smem:[#allocation106_spill]] %s8216_s5 }
   0x5   :  { %15 = vsyncpa [#allocation3], 0 }
   0x6   :  { %17 = vsyncpa [#allocation3 + $0x1], 0 }
   0x7   :  { %18 = vsyncpa [#allocation6], 0 }
   0x8   :  { %19 = vsyncpa [#allocation9], 0 }
   0x9   :  { %20 = vsyncpa [#allocation4], 0 }
   0xa   :  { %22 = vsyncpa [#allocation4 + $0x1], 0 }
   0xb   :  { %23 = vsyncpa [#allocation13], 0  ;;  %s6953_s30 = smov 0   ;;  %s6955_s10 = smov 0  }
   0xc   :  { %s6957_s11 = smov 0   ;;  %s6959_s12 = smov 0  }
   0xd   :  { %s6961_s13 = smov 0   ;;  %s6963_s14 = smov 0  }
   0xe LB: > { %s5352_s15 = sadd.s32 4294967295, %s6885_s14   ;;  %s5353_s16 = sadd.s32 4294967294, %s6885_s14   ;;  %s6885_s14 = sphi %s6963_s14, %s29_s14   ;;  %s6881_s13 = sphi %s6961_s13, %s8617_s13   ;;  %s6877_s12 = sphi %s6959_s12, %s8616_s12   ;;  %s6873_s11 = sphi %s6957_s11, %s8615_s11   ;;  %s6869_s10 = sphi %s6955_s10, %s8614_s10   ;;  %s6865_s30 = sphi %s6953_s30, %s8613_s30  }
   0xf   : > { %p63_p0 = scmp.ne.s32.totalorder %s6869_s10, %s6865_s30  ;;  %p6987_p1 = scmp.eq.s32.totalorder %s5352_s15, 0 }
  0x10   : > { %p6991_p2 = scmp.eq.s32.totalorder %s5352_s15, 1  ;;  %p221_p3 = scmp.eq.s32.totalorder %s5353_s16, 1 }
  0x11   : > { %p6997_p4 = por %p6987_p1, %p63_p0  ;;  %p5354_p5 = scmp.ge.s32.totalorder %s6885_s14, 1 }
  0x12   : > { %p7002_p6 = por %p221_p3, %p63_p0  ;;  %p280_p7 = scmp.lt.s32.totalorder %s6885_s14, 3 }
  0x13   : > { %s6887_s22 = smov [#allocation5]   ;;  %s6888_s25 = smov [#allocation8]  }
  0x14   : > { %s8355_s20 = scalar_select %p7002_p6, 1, 0 }
  0x15   : > { %p7007_p8 = pnand %p5354_p5, %p280_p7  ;;  %s292_s23 = sshll.u32 %s6887_s22, 4  ;;  %s293_s23 = int_to_ptr.vmem [resolvable:$true] %s292_s23 }
  0x16   : > { %8356 = sst [smem:[#allocation20_spill]] %s8355_s20  ;;  %s321_s26 = sshll.u32 %s6888_s25, 4  ;;  %s322_s26 = int_to_ptr.vmem [resolvable:$true] %s321_s26 }
  0x17   : > { %p5952_p9 = pneg %p7007_p8  ;;  %s6889_s27 = smov [#allocation7]  }
  0x18   : > { %s305_s28 = sshll.u32 %s6889_s27, 4  ;;  %s6624_s29 = scalar_lea.vmem %s293_s23, 4096  ;;  %s306_s28 = int_to_ptr.vmem [resolvable:$true] %s305_s28 }
  0x19   : > { %p7016_p11 = pnand %p5952_p9, %p6987_p1  ;;  %p6625_p13 = scmp.ne.s32.totalorder %s293_s23, %s6624_s29 }
  0x1a   : > { %p6632_p5 = scmp.lt.s32.totalorder %s293_s23, %s293_s23  ;;  %p6633_p7 = scmp.lt.s32.totalorder %s6624_s29, %s6624_s29 }
  0x1b   : > { %p6615_p12 = pneg %p7016_p11 }
  0x1c   : > { %p6634_p9 = por %p6633_p7, %p6632_p5 }
  0x1d   : > { %p6627_p0 = pnand %p6625_p13, %p6615_p12 }
  0x1f   : > { %p6628_p3 = pneg %p6627_p0 }
  0x21   : > { %p6635_p10 = pnand %p6634_p9, %p6628_p3 }
  0x23   : > { %6638 = shalt.err (!%p6635_p10)
}
  0x24   : > { %s6890_s15 = smov 256   ;;  %s6891_s16 = smov 16  }
  0x25   : > { %s8359_s1 = sld [smem:[#allocation103_spill]]  ;;  %s6650_s27 = scalar_lea.vmem %s322_s26, 4096 }
  0x26   : > { %p6651_p13 = scmp.ne.s32.totalorder %s322_s26, %s6650_s27  ;;  %p6658_p3 = scmp.lt.s32.totalorder %s322_s26, %s322_s26 }
  0x27   : > { %p6659_p10 = scmp.lt.s32.totalorder %s6650_s27, %s6650_s27 }
  0x28   : > { %p6653_p0 = pnand %p6651_p13, %p6615_p12 }
  0x29   : > { %p6660_p7 = por %p6659_p10, %p6658_p3 }
  0x2a   : > { %p6654_p5 = pneg %p6653_p0 }
  0x2b   : > { %5955 = dma.hbm_to_vmem [thread:$0]  (!%p7016_p11), %s8359_s1, 4096, %s293_s23, [#allocation6], %s6890_s15, %s6890_s15, %s6891_s16  }
  0x2c   : > { %p6661_p9 = pnand %p6660_p7, %p6654_p5 }
  0x2e   : > { %6664 = shalt.err (!%p6661_p9)
}
  0x2f   : > { %s8360_s4 = sld [smem:[#allocation105_spill]]  ;;  %s6676_s23 = scalar_lea.vmem %s306_s28, 4096 }
  0x30   : > { %p6677_p6 = scmp.ne.s32.totalorder %s306_s28, %s6676_s23  ;;  %p6684_p3 = scmp.lt.s32.totalorder %s306_s28, %s306_s28 }
  0x31   : > { %p6685_p5 = scmp.lt.s32.totalorder %s6676_s23, %s6676_s23 }
  0x32   : > { %p6679_p13 = pnand %p6677_p6, %p6615_p12 }
  0x33   : > { %p6686_p10 = por %p6685_p5, %p6684_p3 }
  0x34   : > { %p6680_p0 = pneg %p6679_p13 }
  0x35   : > { %5961 = dma.hbm_to_vmem [thread:$0]  (!%p7016_p11), %s8360_s4, 4096, %s322_s26, [#allocation9], %s6890_s15, %s6890_s15, %s6891_s16  }
  0x36   : > { %p6687_p7 = pnand %p6686_p10, %p6680_p0 }
  0x38   : > { %6690 = shalt.err (!%p6687_p7)
}
  0x39   : > { %s8361_s2 = sld [smem:[#allocation104_spill]]  ;;  %s6892_s26 = smov [#allocation10]  }
  0x3a   : > { %s334_s25 = sshll.u32 %s6892_s26, 4  ;;  %s335_s25 = int_to_ptr.vmem [resolvable:$true] %s334_s25 }
  0x3b   : > { %s6702_s27 = scalar_lea.vmem %s335_s25, 4096  ;;  %p6710_p0 = scmp.lt.s32.totalorder %s335_s25, %s335_s25 }
  0x3c   : > { %p6703_p6 = scmp.ne.s32.totalorder %s335_s25, %s6702_s27  ;;  %p6711_p3 = scmp.lt.s32.totalorder %s6702_s27, %s6702_s27 }
  0x3e   : > { %p6705_p9 = pnand %p6703_p6, %p6615_p12  ;;  %p6712_p5 = por %p6711_p3, %p6710_p0 }
  0x3f   : > { %5958 = dma.hbm_to_vmem [thread:$0]  (!%p7016_p11), %s8361_s2, 4096, %s306_s28, [#allocation6], %s6890_s15, %s6890_s15, %s6891_s16  }
  0x40   : > { %p6706_p13 = pneg %p6705_p9 }
  0x42   : > { %p6713_p10 = pnand %p6712_p5, %p6706_p13 }
  0x44   : > { %6716 = shalt.err (!%p6713_p10)
}
  0x45   : > { %s8362_s5 = sld [smem:[#allocation106_spill]]  ;;  %s38_s23 = sadd.s32 1, %s6881_s13 }
  0x46   : > { %s50_s24 = sadd.s32 1, %s6873_s11  ;;  %p39_p12 = scmp.ge.s32.totalorder %s38_s23, 2 }
  0x47   : > { %p57_p7 = scmp.ne.s32.totalorder %s6873_s11, %s6869_s10  ;;  %p58_p6 = scmp.eq.s32.totalorder %s6885_s14, 0 }
  0x48   : > { %p5977_p9 = scmp.lt.s32.totalorder %s6885_s14, 2  ;;  %s8619_s23 = smov (%p39_p12, %s38_s23), 0 }
  0x49   : > { %8363 = sst [smem:[#allocation21_spill]] %s8619_s23  ;;  %p59_p13 = por %p58_p6, %p57_p7 }
  0x4a   : > { %p7076_p0 = por %p6991_p2, %p57_p7  ;;  %s45_s22 = ssub.s32 %s6881_s13, %s8619_s23 }
  0x4b   : > { %5964 = dma.hbm_to_vmem [thread:$0]  (!%p7016_p11), %s8362_s5, 4096, %s335_s25, [#allocation9], %s6890_s15, %s6890_s15, %s6891_s16  }
  0x4c   : > { %s8364_s20 = scalar_select %p7076_p0, 1, 0 }
  0x4d   : > { %s351_s26 = sand.u32 1, %s6873_s11   ;;  %p48_p3 = scmp.eq.s32.totalorder %s45_s22, 0 }
  0x4e   : > { %s5360_s15 = sshll.u32 %s351_s26, 5  ;;  %s5922_s16 = sshll.u32 %s6881_s13, 9 }
  0x4f   : > { %s7085_s25 = scalar_select %p48_p3, %s6873_s11, %s50_s24  }
  0x50   : > { %s362_s29 = scalar_lea.hbm %s8211_s0, %s5922_s16  ;;  %s355_s1 = scalar_lea.vmem [#allocation2], %s5360_s15 }
  0x51   : > { %s363_s2 = sshll.u32 %s355_s1, 4  ;;  %p7092_p11 = pnand %p5977_p9, %p59_p13  ;;  %s364_s2 = int_to_ptr.vmem [resolvable:$true] %s363_s2 }
  0x52   : > { %s352_s5 = scalar_lea.sflag [#allocation3], %s351_s26  ;;  %s6730_s22 = scalar_lea.vmem %s364_s2, 512 }
  0x53   : > { %p6719_p5 = pneg %p7092_p11  ;;  %p6731_p10 = scmp.ne.s32.totalorder %s364_s2, %s6730_s22 }
  0x54   : > { %s6893_s24 = smov [#allocation2]  }
  0x55   : > { %p6733_p12 = pnand %p6731_p10, %p6719_p5  ;;  %s6735_s23 = sshll.u32 %s6893_s24, 4  ;;  %s6736_s23 = int_to_ptr.vmem [resolvable:$false] %s6735_s23 }
  0x56   : > { %s6737_s16 = scalar_lea.vmem %s6736_s23, 1024  ;;  %p6738_p6 = scmp.lt.s32.totalorder %s364_s2, %s6736_s23 }
  0x57   : > { %p6734_p7 = pneg %p6733_p12  ;;  %p6739_p3 = scmp.lt.s32.totalorder %s6737_s16, %s6730_s22 }
  0x59   : > { %p6740_p0 = por %p6739_p3, %p6738_p6 }
  0x5b   : > { %p6741_p9 = pnand %p6740_p0, %p6734_p7 }
  0x5d   : > { %6744 = shalt.err (!%p6741_p9)
}
  0x5e   : > { %s6894_s1 = smov 128   ;;  %s6895_s15 = smov 8  }
  0x5f   : > { %5968 = dma.hbm_to_vmem [thread:$0]  (!%p7092_p11), %s362_s29, 512, %s364_s2, %s352_s5, %s6894_s1, %s6894_s1, %s6895_s15  }
  0x60   : > { %375 = sbr.rel (%p7007_p8) target bundleno = 1680 (0x690), region = 48 }
  0x65   : > { %s7103_s26 = sand.u32 1, %s6869_s10  }
  0x66   : > { %s5364_s27 = sshll.u32 %s7103_s26, 5  ;;  %s378_s23 = scalar_lea.sflag [#allocation3], %s7103_s26 }
  0x67   : > { %s7107_s28 = scalar_lea.vmem [#allocation2], %s5364_s27 }
  0x68   : > { %6844 = dma.done.wait (%p6997_p4), %s378_s23, 512  }
  0x69   : > { %6846 = vsyncadd (%p6997_p4), %s378_s23, 4294966784 }
  0x6a   : > { %6848 = dma.done.wait (%p6987_p1), [#allocation6], 8192  }
  0x6b   : > { %6850 = vsyncadd (%p6987_p1), [#allocation6], 4294959104 }
  0x6c   : > { %6852 = dma.done.wait (%p6987_p1), [#allocation9], 8192  }
  0x6d   : > { %6854 = vsyncadd (%p6987_p1), [#allocation9], 4294959104  ;;  %s7121_s2 = scalar_lea.vmem [#allocation11], %s5364_s27  ;;  %p5370_p8 = scmp.ne.s32.totalorder %s6877_s12, 0 }
  0x6f   : > { %438 = sbr.rel (%p5370_p8) target bundleno = 119 (0x77), region = 72 }
  0x74   : > { %v6896_v0 = vmov 0.0  }
  0x75   : > { %439 = vst [vmem:[#allocation12] sm:$0xff] %v6896_v0  ;;  %440 = vst [vmem:[#allocation12 + $0x8] sm:$0xff] %v6896_v0 }
  0x76   : > { %441 = vst [vmem:[#allocation14] sm:$0xff] %v6896_v0  ;;  %442 = vst [vmem:[#allocation14 + $0x8] sm:$0xff] %v6896_v0 }
  0x77 PF: > { %v6049_v1 = vld [vmem:[#allocation7 + $0xe4] ss:$16 sps:$4 sm:$0xff]   ;;  %v6051_v2 = vld [vmem:[#allocation7 + $0xec] ss:$16 sps:$4 sm:$0xff]   ;;  %v8224_v3 = vmov 0   ;;  %s6898_s21 = smov [#allocation12]  }
  0x78   : > { %706 = vmatprep.mubr.bf16.mxu0 %v8224_v3  ;;  %747 = vmatprep.mubr.bf16.mxu1 %v8224_v3  ;;  %v6053_v4 = vld [vmem:[#allocation7 + $0xe0] ss:$16 sps:$4 sm:$0xff]   ;;  %v6054_v5 = vld [vmem:[#allocation7 + $0xe8] ss:$16 sps:$4 sm:$0xff]   ;;  %v6055_v6 = vld [vmem:[#allocation7 + $0xc4] ss:$16 sps:$4 sm:$0xff]  }
  0x79   : > { %674 = vmatprep.subr.bf16.mxu0 %v6049_v1  ;;  %715 = vmatprep.subr.bf16.mxu1 %v6051_v2  ;;  %v6057_v7 = vld [vmem:[#allocation7 + $0xcc] ss:$16 sps:$4 sm:$0xff]   ;;  %v6059_v8 = vld [vmem:[#allocation7 + $0xc0] ss:$16 sps:$4 sm:$0xff]   ;;  %v6060_v9 = vld [vmem:[#allocation7 + $0xc8] ss:$16 sps:$4 sm:$0xff]  }
  0x7a   : > { %675 = vmatpush1.bf16.msra.mxu0 %v6053_v4  ;;  %716 = vmatpush1.bf16.msra.mxu1 %v6054_v5  ;;  %v6061_v10 = vld [vmem:[#allocation7 + $0xa4] ss:$16 sps:$4 sm:$0xff]   ;;  %v6063_v11 = vld [vmem:[#allocation7 + $0xac] ss:$16 sps:$4 sm:$0xff]   ;;  %v6065_v12 = vld [vmem:[#allocation7 + $0xa0] ss:$16 sps:$4 sm:$0xff]  }
  0x7b   : > { %676 = vmatprep.subr.bf16.mxu0 %v6055_v6  ;;  %717 = vmatprep.subr.bf16.mxu1 %v6057_v7  ;;  %v6066_v13 = vld [vmem:[#allocation7 + $0xa8] ss:$16 sps:$4 sm:$0xff]   ;;  %v6067_v14 = vld [vmem:[#allocation7 + $0x84] ss:$16 sps:$4 sm:$0xff]   ;;  %v6069_v15 = vld [vmem:[#allocation7 + $0x8c] ss:$16 sps:$4 sm:$0xff]  }
  0x7c   : > { %v6071_v16 = vld [vmem:[#allocation7 + $0x80] ss:$16 sps:$4 sm:$0xff]   ;;  %v6072_v17 = vld [vmem:[#allocation7 + $0x88] ss:$16 sps:$4 sm:$0xff]   ;;  %v6073_v18 = vld [vmem:[#allocation7 + $0x64] ss:$16 sps:$4 sm:$0xff]  }
  0x7d   : > { %v6075_v19 = vld [vmem:[#allocation7 + $0x6c] ss:$16 sps:$4 sm:$0xff]   ;;  %v6077_v20 = vld [vmem:[#allocation7 + $0x60] ss:$16 sps:$4 sm:$0xff]   ;;  %v6078_v21 = vld [vmem:[#allocation7 + $0x68] ss:$16 sps:$4 sm:$0xff]  }
  0x7e   : > { %677 = vmatpush1.bf16.msra.mxu0 %v6059_v8  ;;  %718 = vmatpush1.bf16.msra.mxu1 %v6060_v9  ;;  %v6079_v22 = vld [vmem:[#allocation7 + $0x44] ss:$16 sps:$4 sm:$0xff]   ;;  %v6081_v23 = vld [vmem:[#allocation7 + $0x4c] ss:$16 sps:$4 sm:$0xff]   ;;  %v6083_v24 = vld [vmem:[#allocation7 + $0x40] ss:$16 sps:$4 sm:$0xff]  }
  0x7f   : > { %678 = vmatprep.subr.bf16.mxu0 %v6061_v10  ;;  %719 = vmatprep.subr.bf16.mxu1 %v6063_v11  ;;  %v6084_v25 = vld [vmem:[#allocation7 + $0x48] ss:$16 sps:$4 sm:$0xff]   ;;  %v6085_v26 = vld [vmem:[#allocation7 + $0x24] ss:$16 sps:$4 sm:$0xff]   ;;  %v6087_v27 = vld [vmem:[#allocation7 + $0x2c] ss:$16 sps:$4 sm:$0xff]  }
  0x80   : > { %v6089_v28 = vld [vmem:[#allocation7 + $0x20] ss:$16 sps:$4 sm:$0xff]   ;;  %v6090_v29 = vld [vmem:[#allocation7 + $0x28] ss:$16 sps:$4 sm:$0xff]   ;;  %v6091_v30 = vld [vmem:[#allocation7 + $0x4] ss:$16 sps:$4 sm:$0xff]  }
  0x81   : > { %v6093_v31 = vld [vmem:[#allocation7 + $0xc] ss:$16 sps:$4 sm:$0xff]   ;;  %v6095_v32 = vld [vmem:[#allocation7] ss:$16 sps:$4 sm:$0xff]   ;;  %v6096_v33 = vld [vmem:[#allocation7 + $0x8] ss:$16 sps:$4 sm:$0xff]  }
  0x82   : > { %679 = vmatpush1.bf16.msra.mxu0 %v6065_v12  ;;  %720 = vmatpush1.bf16.msra.mxu1 %v6066_v13  ;;  %v446_v34 = vld [vmem:[#allocation12] sm:$0xff]  ;;  %v6102_v36 = vld [vmem:[#allocation5 + $0xec] ss:$16 sps:$4 sm:$0xff]   ;;  %v6100_v39 = vld [vmem:[#allocation5 + $0xe8] ss:$16 sps:$4 sm:$0xff]   ;;  %s5189_s29 = sshll.u32 %s6898_s21, 4  ;;  %s5190_s29 = int_to_ptr.vmem [resolvable:$true] %s5189_s29 }
  0x83   : > { %680 = vmatprep.subr.bf16.mxu0 %v6067_v14  ;;  %721 = vmatprep.subr.bf16.mxu1 %v6069_v15  ;;  %v6099_v35 = vld [vmem:[#allocation5 + $0xe4] ss:$16 sps:$4 sm:$0xff]   ;;  %v481_v37 = vpack.c.bf16 %v446_v34, %v446_v34  ;;  %v6097_v38 = vld [vmem:[#allocation5 + $0xe0] ss:$16 sps:$4 sm:$0xff]   ;;  %v6108_v41 = vld [vmem:[#allocation5 + $0xcc] ss:$16 sps:$4 sm:$0xff]   ;;  %p6752_p0 = scmp.lt.s32.totalorder %s5190_s29, %s5190_s29 }
  0x84   : > { %v6105_v40 = vld [vmem:[#allocation5 + $0xc4] ss:$16 sps:$4 sm:$0xff]   ;;  %v6103_v42 = vld [vmem:[#allocation5 + $0xc0] ss:$16 sps:$4 sm:$0xff]   ;;  %v6106_v43 = vld [vmem:[#allocation5 + $0xc8] ss:$16 sps:$4 sm:$0xff]  }
  0x85   : > { %v6111_v44 = vld [vmem:[#allocation5 + $0xa4] ss:$16 sps:$4 sm:$0xff]   ;;  %v6114_v45 = vld [vmem:[#allocation5 + $0xac] ss:$16 sps:$4 sm:$0xff]   ;;  %v6109_v46 = vld [vmem:[#allocation5 + $0xa0] ss:$16 sps:$4 sm:$0xff]  }
  0x86   : > { %681 = vmatpush1.bf16.msra.mxu0 %v6071_v16  ;;  %722 = vmatpush1.bf16.msra.mxu1 %v6072_v17  ;;  %v7128_v47 = vld [vmem:[#allocation5 + $0xa8] ss:$16 sps:$4 sm:$0xff]   ;;  %v7130_v48 = vld [vmem:[#allocation5 + $0x84] ss:$16 sps:$4 sm:$0xff]   ;;  %v7132_v49 = vld [vmem:[#allocation5 + $0x8c] ss:$16 sps:$4 sm:$0xff]  }
  0x87   : > { %682 = vmatprep.subr.bf16.mxu0 %v6073_v18  ;;  %723 = vmatprep.subr.bf16.mxu1 %v6075_v19  ;;  %v7134_v50 = vld [vmem:[#allocation5 + $0x80] ss:$16 sps:$4 sm:$0xff]   ;;  %v7136_v51 = vld [vmem:[#allocation5 + $0x88] ss:$16 sps:$4 sm:$0xff]   ;;  %v7138_v52 = vld [vmem:[#allocation5 + $0x64] ss:$16 sps:$4 sm:$0xff]  }
  0x88   : > { %v7140_v53 = vld [vmem:[#allocation5 + $0x6c] ss:$16 sps:$4 sm:$0xff]   ;;  %v7145_v54 = vld [vmem:[#allocation5 + $0x60] ss:$16 sps:$4 sm:$0xff]   ;;  %v7147_v55 = vld [vmem:[#allocation5 + $0x68] ss:$16 sps:$4 sm:$0xff]  }
  0x89   : > { %v7149_v56 = vld [vmem:[#allocation5 + $0x44] ss:$16 sps:$4 sm:$0xff]   ;;  %v7151_v57 = vld [vmem:[#allocation5 + $0x4c] ss:$16 sps:$4 sm:$0xff]   ;;  %v7157_v58 = vld [vmem:[#allocation5 + $0x40] ss:$16 sps:$4 sm:$0xff]  }
  0x8a   : > { %683 = vmatpush1.bf16.msra.mxu0 %v6077_v20  ;;  %724 = vmatpush1.bf16.msra.mxu1 %v6078_v21  ;;  %v7159_v59 = vld [vmem:[#allocation5 + $0x48] ss:$16 sps:$4 sm:$0xff]   ;;  %v7161_v60 = vld [vmem:[#allocation5 + $0x24] ss:$16 sps:$4 sm:$0xff]   ;;  %v7163_v61 = vld [vmem:[#allocation5 + $0x2c] ss:$16 sps:$4 sm:$0xff]  }
  0x8b   : > { %684 = vmatprep.subr.bf16.mxu0 %v6079_v22  ;;  %725 = vmatprep.subr.bf16.mxu1 %v6081_v23  ;;  %v7169_v62 = vld [vmem:[#allocation5 + $0x20] ss:$16 sps:$4 sm:$0xff]   ;;  %v7171_v63 = vld [vmem:[#allocation5 + $0x28] ss:$16 sps:$4 sm:$0xff]   ;;  %v7173_v0 = vld [vmem:[#allocation5 + $0x4] ss:$16 sps:$4 sm:$0xff]  }
  0x8c   : > { %v7175_v1 = vld [vmem:[#allocation5 + $0xc] ss:$16 sps:$4 sm:$0xff]   ;;  %v7181_v2 = vld [vmem:[#allocation5] ss:$16 sps:$4 sm:$0xff]   ;;  %v7183_v4 = vld [vmem:[#allocation5 + $0x8] ss:$16 sps:$4 sm:$0xff]  }
  0x8d   : > { %v445_v5 = vld [vmem:[%s7107_s28] sm:$0xff]  ;;  %v7194_v10 = vld [vmem:[#allocation10 + $0xe8] ss:$16 sps:$4 sm:$0xff]   ;;  %v7196_v11 = vld [vmem:[#allocation10 + $0xec] ss:$16 sps:$4 sm:$0xff]   ;;  %s5923_s22 = sshll.u32 %s6877_s12, 9 }
  0x8e   : > { %685 = vmatpush1.bf16.msra.mxu0 %v6083_v24  ;;  %726 = vmatpush1.bf16.msra.mxu1 %v6084_v25  ;;  %v448_v6 = vpack.c.bf16 %v445_v5, %v445_v5  ;;  %v6145_v7 = vld [vmem:[#allocation10 + $0xe0] ss:$16 sps:$4 sm:$0xff]   ;;  %v6147_v8 = vld [vmem:[#allocation10 + $0xe4] ss:$16 sps:$4 sm:$0xff]   ;;  %v7200_v15 = vld [vmem:[#allocation10 + $0xcc] ss:$16 sps:$4 sm:$0xff]   ;;  %s8128_s23 = scalar_lea.hbm %s8218_s7, %s5923_s22 }
  0x8f   : > { %686 = vmatprep.subr.bf16.mxu0 %v6085_v26  ;;  %727 = vmatprep.subr.bf16.mxu1 %v6087_v27  ;;  %v6150_v9 = vld [vmem:[#allocation10 + $0xc4] ss:$16 sps:$4 sm:$0xff]   ;;  %v6148_v12 = vld [vmem:[#allocation10 + $0xc0] ss:$16 sps:$4 sm:$0xff]   ;;  %v7202_v16 = vld [vmem:[#allocation10 + $0xc8] ss:$16 sps:$4 sm:$0xff]  }
  0x90   : > { %v6156_v13 = vld [vmem:[#allocation10 + $0xa4] ss:$16 sps:$4 sm:$0xff]   ;;  %v6154_v14 = vld [vmem:[#allocation10 + $0xa0] ss:$16 sps:$4 sm:$0xff]   ;;  %v7210_v19 = vld [vmem:[#allocation10 + $0xac] ss:$16 sps:$4 sm:$0xff]  }
  0x91   : > { %v7206_v17 = vld [vmem:[#allocation10 + $0x84] ss:$16 sps:$4 sm:$0xff]   ;;  %v7208_v18 = vld [vmem:[#allocation10 + $0x80] ss:$16 sps:$4 sm:$0xff]   ;;  %v7213_v20 = vld [vmem:[#allocation10 + $0xa8] ss:$16 sps:$4 sm:$0xff]  }
  0x92   : > { %687 = vmatpush1.bf16.msra.mxu0 %v6089_v28  ;;  %728 = vmatpush1.bf16.msra.mxu1 %v6090_v29  ;;  %v7218_v21 = vld [vmem:[#allocation10 + $0x64] ss:$16 sps:$4 sm:$0xff]   ;;  %v7220_v22 = vld [vmem:[#allocation10 + $0x60] ss:$16 sps:$4 sm:$0xff]   ;;  %v7222_v23 = vld [vmem:[#allocation10 + $0x8c] ss:$16 sps:$4 sm:$0xff]  }
  0x93   : > { %688 = vmatprep.subr.bf16.mxu0 %v6091_v30  ;;  %729 = vmatprep.subr.bf16.mxu1 %v6093_v31  ;;  %8366 = vst [vmem:[#allocation22_spill] sm:$0xff] %v7220_v22  ;;  %v7225_v24 = vld [vmem:[#allocation10 + $0x88] ss:$16 sps:$4 sm:$0xff]   ;;  %v7230_v25 = vld [vmem:[#allocation10 + $0x44] ss:$16 sps:$4 sm:$0xff]   ;;  %s5174_s24 = sshll.u32 %s7121_s2, 4  ;;  %s8130_s24 = int_to_ptr.vmem [resolvable:$true] %s5174_s24 }
  0x94   : > { %8367 = vst [vmem:[#allocation23_spill] sm:$0xff] %v7230_v25  ;;  %v7232_v26 = vld [vmem:[#allocation10 + $0x40] ss:$16 sps:$4 sm:$0xff]   ;;  %v7234_v27 = vld [vmem:[#allocation10 + $0x6c] ss:$16 sps:$4 sm:$0xff]   ;;  %s6899_s16 = smov [#allocation14]  }
  0x95   : > { %8368 = vst [vmem:[#allocation24_spill] sm:$0xff] %v7232_v26  ;;  %v7237_v28 = vld [vmem:[#allocation10 + $0x68] ss:$16 sps:$4 sm:$0xff]   ;;  %v7242_v29 = vld [vmem:[#allocation10 + $0x24] ss:$16 sps:$4 sm:$0xff]   ;;  %s5204_s1 = sshll.u32 %s6899_s16, 4  ;;  %s8133_s1 = int_to_ptr.vmem [resolvable:$true] %s5204_s1 }
  0x96   : > { %689 = vmatpush1.bf16.msra.mxu0 %v6095_v32  ;;  %730 = vmatpush1.bf16.msra.mxu1 %v6096_v33  ;;  %8369 = vst [vmem:[#allocation25_spill] sm:$0xff] %v7242_v29  ;;  %v7244_v30 = vld [vmem:[#allocation10 + $0x20] ss:$16 sps:$4 sm:$0xff]   ;;  %v7246_v31 = vld [vmem:[#allocation10 + $0x4c] ss:$16 sps:$4 sm:$0xff]  }
  0x97   : > { %916 = vmatprep.subr.bf16.mxu0 %v6099_v35  ;;  %957 = vmatprep.subr.bf16.mxu1 %v6102_v36  ;;  %8370 = vst [vmem:[#allocation26_spill] sm:$0xff] %v7244_v30  ;;  %v7249_v32 = vld [vmem:[#allocation10 + $0x48] ss:$16 sps:$4 sm:$0xff]   ;;  %v7254_v33 = vld [vmem:[#allocation10 + $0x4] ss:$16 sps:$4 sm:$0xff]  }
  0x98   : > { %8371 = vst [vmem:[#allocation27_spill] sm:$0xff] %v7254_v33  ;;  %v7256_v34 = vld [vmem:[#allocation10] ss:$16 sps:$4 sm:$0xff]   ;;  %v7258_v35 = vld [vmem:[#allocation10 + $0x2c] ss:$16 sps:$4 sm:$0xff]  }
  0x99   : > { %707 = vmatmul.mubr.bf16.vlgmr.msra.gmra.mxu0 %v481_v37  ;;  %748 = vmatmul.mubr.bf16.vlgmr.msra.gmra.mxu1 %v481_v37  ;;  %8372 = vst [vmem:[#allocation28_spill] sm:$0xff] %v7256_v34  ;;  %v7261_v36 = vld [vmem:[#allocation10 + $0x28] ss:$16 sps:$4 sm:$0xff]   ;;  %v7290_v5 = vld [vmem:[#allocation8 + $0xc0] ss:$16 sps:$4 sm:$0xff]  }
  0x9a   : > { %917 = vmatpush1.bf16.msra.mxu0 %v6097_v38  ;;  %958 = vmatpush1.bf16.msra.mxu1 %v6100_v39  ;;  %v1050_v37 = vld [vmem:[#allocation12 + $0x8] sm:$0xff]  ;;  %8378 = vst [vmem:[#allocation34_spill] sm:$0xff] %v7290_v5 }
  0x9b   : > { %918 = vmatprep.subr.bf16.mxu0 %v6105_v40  ;;  %959 = vmatprep.subr.bf16.mxu1 %v6108_v41  ;;  %v1086_v38 = vpack.c.bf16 %v1050_v37, %v1050_v37  ;;  %v7266_v39 = vld [vmem:[#allocation10 + $0xc] ss:$16 sps:$4 sm:$0xff]   ;;  %v7268_v40 = vld [vmem:[#allocation10 + $0x8] ss:$16 sps:$4 sm:$0xff]   ;;  %v7273_v41 = vld [vmem:[#allocation8 + $0xe4] ss:$16 sps:$4 sm:$0xff]  }
  0x9c   : > { %948 = vmatprep.mubr.bf16.mxu0 %v8224_v3  ;;  %989 = vmatprep.mubr.bf16.mxu1 %v8224_v3  ;;  %8373 = vst [vmem:[#allocation29_spill] sm:$0xff] %v7273_v41  ;;  %v7314_v37 = vld [vmem:[#allocation8 + $0x80] ss:$16 sps:$4 sm:$0xff]  }
  0x9d   : > { %8386 = vst [vmem:[#allocation42_spill] sm:$0xff] %v7314_v37 }
  0x9e   : > { %919 = vmatpush1.bf16.msra.mxu0 %v6103_v42  ;;  %960 = vmatpush1.bf16.msra.mxu1 %v6106_v43  ;;  %v7275_v42 = vld [vmem:[#allocation8 + $0xec] ss:$16 sps:$4 sm:$0xff]   ;;  %v7277_v43 = vld [vmem:[#allocation8 + $0xe0] ss:$16 sps:$4 sm:$0xff]  }
  0x9f   : > { %920 = vmatprep.subr.bf16.mxu0 %v6111_v44  ;;  %961 = vmatprep.subr.bf16.mxu1 %v6114_v45  ;;  %8374 = vst [vmem:[#allocation30_spill] sm:$0xff] %v7277_v43  ;;  %v7279_v44 = vld [vmem:[#allocation8 + $0xe8] ss:$16 sps:$4 sm:$0xff]   ;;  %v7285_v45 = vld [vmem:[#allocation8 + $0xc4] ss:$16 sps:$4 sm:$0xff]  }
  0xa0   : > { %8375 = vst [vmem:[#allocation31_spill] sm:$0xff] %v7279_v44  ;;  %8376 = vst [vmem:[#allocation32_spill] sm:$0xff] %v7285_v45 }
  0xa2   : > { %921 = vmatpush1.bf16.msra.mxu0 %v6109_v46  ;;  %962 = vmatpush1.bf16.msra.mxu1 %v7128_v47  ;;  %v7287_v46 = vld [vmem:[#allocation8 + $0xcc] ss:$16 sps:$4 sm:$0xff]  }
  0xa3   : > { %922 = vmatprep.subr.bf16.mxu0 %v7130_v48  ;;  %963 = vmatprep.subr.bf16.mxu1 %v7132_v49  ;;  %8377 = vst [vmem:[#allocation33_spill] sm:$0xff] %v7287_v46 }
  0xa6   : > { %923 = vmatpush1.bf16.msra.mxu0 %v7134_v50  ;;  %964 = vmatpush1.bf16.msra.mxu1 %v7136_v51 }
  0xa7   : > { %924 = vmatprep.subr.bf16.mxu0 %v7138_v52  ;;  %965 = vmatprep.subr.bf16.mxu1 %v7140_v53 }
  0xaa   : > { %925 = vmatpush1.bf16.msra.mxu0 %v7145_v54  ;;  %966 = vmatpush1.bf16.msra.mxu1 %v7147_v55 }
  0xab   : > { %926 = vmatprep.subr.bf16.mxu0 %v7149_v56  ;;  %967 = vmatprep.subr.bf16.mxu1 %v7151_v57 }
  0xae   : > { %927 = vmatpush1.bf16.msra.mxu0 %v7157_v58  ;;  %968 = vmatpush1.bf16.msra.mxu1 %v7159_v59 }
  0xaf   : > { %928 = vmatprep.subr.bf16.mxu0 %v7161_v60  ;;  %969 = vmatprep.subr.bf16.mxu1 %v7163_v61 }
  0xb2   : > { %929 = vmatpush1.bf16.msra.mxu0 %v7169_v62  ;;  %970 = vmatpush1.bf16.msra.mxu1 %v7171_v63 }
  0xb3   : > { %930 = vmatprep.subr.bf16.mxu0 %v7173_v0  ;;  %971 = vmatprep.subr.bf16.mxu1 %v7175_v1 }
  0xb6   : > { %931 = vmatpush1.bf16.msra.mxu0 %v7181_v2  ;;  %972 = vmatpush1.bf16.msra.mxu1 %v7183_v4 }
  0xb7   : > { %1279 = vmatprep.subr.bf16.mxu0 %v6147_v8  ;;  %1320 = vmatprep.subr.bf16.mxu1 %v7196_v11  ;;  %v7300_v8 = vld [vmem:[#allocation8 + $0xac] ss:$16 sps:$4 sm:$0xff]  }
  0xb8   : > { %8381 = vst [vmem:[#allocation37_spill] sm:$0xff] %v7300_v8 }
  0xb9   : > { %949 = vmatmul.mubr.bf16.vlgmr.msra.gmra.mxu0 %v448_v6  ;;  %990 = vmatmul.mubr.bf16.vlgmr.msra.gmra.mxu1 %v448_v6  ;;  %v7292_v6 = vld [vmem:[#allocation8 + $0xc8] ss:$16 sps:$4 sm:$0xff]  }
  0xba   : > { %1311 = vmatprep.mubr.bf16.mxu0 %v8224_v3  ;;  %1352 = vmatprep.mubr.bf16.mxu1 %v8224_v3  ;;  %8379 = vst [vmem:[#allocation35_spill] sm:$0xff] %v7292_v6 }
  0xbb   : > { %1280 = vmatpush1.bf16.msra.mxu0 %v6145_v7  ;;  %1321 = vmatpush1.bf16.msra.mxu1 %v7194_v10  ;;  %v7298_v7 = vld [vmem:[#allocation8 + $0xa4] ss:$16 sps:$4 sm:$0xff]  }
  0xbc   : > { %1281 = vmatprep.subr.bf16.mxu0 %v6150_v9  ;;  %1322 = vmatprep.subr.bf16.mxu1 %v7200_v15  ;;  %8380 = vst [vmem:[#allocation36_spill] sm:$0xff] %v7298_v7  ;;  %v7302_v9 = vld [vmem:[#allocation8 + $0xa0] ss:$16 sps:$4 sm:$0xff]  }
  0xbd   : > { %8382 = vst [vmem:[#allocation38_spill] sm:$0xff] %v7302_v9 }
  0xbf   : > { %1282 = vmatpush1.bf16.msra.mxu0 %v6148_v12  ;;  %1323 = vmatpush1.bf16.msra.mxu1 %v7202_v16  ;;  %v7304_v12 = vld [vmem:[#allocation8 + $0xa8] ss:$16 sps:$4 sm:$0xff]  }
  0xc0   : > { %1283 = vmatprep.subr.bf16.mxu0 %v6156_v13  ;;  %1324 = vmatprep.subr.bf16.mxu1 %v7210_v19  ;;  %8383 = vst [vmem:[#allocation39_spill] sm:$0xff] %v7304_v12  ;;  %v7310_v13 = vld [vmem:[#allocation8 + $0x84] ss:$16 sps:$4 sm:$0xff]  }
  0xc1   : > { %8384 = vst [vmem:[#allocation40_spill] sm:$0xff] %v7310_v13 }
  0xc3   : > { %1284 = vmatpush1.bf16.msra.mxu0 %v6154_v14  ;;  %1325 = vmatpush1.bf16.msra.mxu1 %v7213_v20  ;;  %v7312_v14 = vld [vmem:[#allocation8 + $0x8c] ss:$16 sps:$4 sm:$0xff]  }
  0xc4   : > { %1285 = vmatprep.subr.bf16.mxu0 %v7206_v17  ;;  %1326 = vmatprep.subr.bf16.mxu1 %v7222_v23  ;;  %8385 = vst [vmem:[#allocation41_spill] sm:$0xff] %v7312_v14 }
  0xc7   : > { %1286 = vmatpush1.bf16.msra.mxu0 %v7208_v18  ;;  %1327 = vmatpush1.bf16.msra.mxu1 %v7225_v24 }
  0xc8   : > { %1287 = vmatprep.subr.bf16.mxu0 %v7218_v21  ;;  %1328 = vmatprep.subr.bf16.mxu1 %v7234_v27 }
  0xcb   : > { %1288 = vmatpush1.bf16.msra.mxu0 %v7220_v22  ;;  %1329 = vmatpush1.bf16.msra.mxu1 %v7237_v28 }
  0xcc   : > { %1289 = vmatprep.subr.bf16.mxu0 %v7230_v25  ;;  %1330 = vmatprep.subr.bf16.mxu1 %v7246_v31 }
  0xcf   : > { %1290 = vmatpush1.bf16.msra.mxu0 %v7232_v26  ;;  %1331 = vmatpush1.bf16.msra.mxu1 %v7249_v32 }
  0xd0   : > { %1291 = vmatprep.subr.bf16.mxu0 %v7242_v29  ;;  %1332 = vmatprep.subr.bf16.mxu1 %v7258_v35 }
  0xd3   : > { %1292 = vmatpush1.bf16.msra.mxu0 %v7244_v30  ;;  %1333 = vmatpush1.bf16.msra.mxu1 %v7261_v36 }
  0xd4   : > { %1293 = vmatprep.subr.bf16.mxu0 %v7254_v33  ;;  %1334 = vmatprep.subr.bf16.mxu1 %v7266_v39 }
  0xd7   : > { %1294 = vmatpush1.bf16.msra.mxu0 %v7256_v34  ;;  %1335 = vmatpush1.bf16.msra.mxu1 %v7268_v40 }
  0xd8   : > { %1521 = vmatprep.subr.bf16.mxu0 %v7273_v41  ;;  %1562 = vmatprep.subr.bf16.mxu1 %v7275_v42 }
  0xda   : > { %1312 = vmatmul.mubr.bf16.vlgmr.msra.gmra.mxu0 %v1086_v38  ;;  %1353 = vmatmul.mubr.bf16.vlgmr.msra.gmra.mxu1 %v1086_v38  ;;  %v7316_v38 = vld [vmem:[#allocation8 + $0x88] ss:$16 sps:$4 sm:$0xff]  }
  0xdb   : > { %1553 = vmatprep.mubr.bf16.mxu0 %v8224_v3  ;;  %1522 = vmatpush1.bf16.msra.mxu0 %v7277_v43  ;;  %8387 = vst [vmem:[#allocation43_spill] sm:$0xff] %v7316_v38 }
  0xdc   : > { %1563 = vmatpush1.bf16.msra.mxu1 %v7279_v44  ;;  %1594 = vmatprep.mubr.bf16.mxu1 %v8224_v3  ;;  %v7322_v3 = vld [vmem:[#allocation8 + $0x60] ss:$16 sps:$4 sm:$0xff]   ;;  %v999_v44 = vlaneseq }
  0xdd   : > { %1523 = vmatprep.subr.bf16.mxu0 %v7285_v45  ;;  %1564 = vmatprep.subr.bf16.mxu1 %v7287_v46  ;;  %8388 = vst [vmem:[#allocation44_spill] sm:$0xff] %v7322_v3 }
  0xde   : > { %v7370_v43 = vshrl.u32 %v999_v44, 7 }
  0xdf   : > { %1524 = vmatpush1.bf16.msra.mxu0 %v7290_v5 }
  0xe0   : > { %1565 = vmatpush1.bf16.msra.mxu1 %v7292_v6  ;;  %1525 = vmatprep.subr.bf16.mxu0 %v7298_v7  ;;  %v7330_v7 = vld [vmem:[#allocation8 + $0x44] ss:$16 sps:$4 sm:$0xff]   ;;  %v7333_v6 = vld [vmem:[#allocation8 + $0x4c] ss:$16 sps:$4 sm:$0xff]  }
  0xe1   : > { %1566 = vmatprep.subr.bf16.mxu1 %v7300_v8  ;;  %v7328_v8 = vld [vmem:[#allocation8 + $0x6c] ss:$16 sps:$4 sm:$0xff]   ;;  %8392 = vst [vmem:[#allocation48_spill] sm:$0xff] %v7330_v7  ;;  %8393 = vst [vmem:[#allocation49_spill] sm:$0xff] %v7333_v6 }
  0xe2   : > { %8391 = vst [vmem:[#allocation47_spill] sm:$0xff] %v7328_v8 }
  0xe3   : > { %1526 = vmatpush1.bf16.msra.mxu0 %v7302_v9  ;;  %v7324_v9 = vld [vmem:[#allocation8 + $0x64] ss:$16 sps:$4 sm:$0xff]  }
  0xe4   : > { %1567 = vmatpush1.bf16.msra.mxu1 %v7304_v12  ;;  %1527 = vmatprep.subr.bf16.mxu0 %v7310_v13  ;;  %8389 = vst [vmem:[#allocation45_spill] sm:$0xff] %v7324_v9  ;;  %v7326_v12 = vld [vmem:[#allocation8 + $0x68] ss:$16 sps:$4 sm:$0xff]   ;;  %v7346_v13 = vld [vmem:[#allocation8 + $0x2c] ss:$16 sps:$4 sm:$0xff]  }
  0xe5   : > { %1568 = vmatprep.subr.bf16.mxu1 %v7312_v14  ;;  %8390 = vst [vmem:[#allocation46_spill] sm:$0xff] %v7326_v12  ;;  %v7343_v14 = vld [vmem:[#allocation8 + $0x24] ss:$16 sps:$4 sm:$0xff]   ;;  %8397 = vst [vmem:[#allocation53_spill] sm:$0xff] %v7346_v13 }
  0xe6   : > { %8396 = vst [vmem:[#allocation52_spill] sm:$0xff] %v7343_v14 }
  0xe7   : > { %1528 = vmatpush1.bf16.msra.mxu0 %v7314_v37  ;;  %v7337_v37 = vld [vmem:[#allocation8 + $0x40] ss:$16 sps:$4 sm:$0xff]  }
  0xe8   : > { %1569 = vmatpush1.bf16.msra.mxu1 %v7316_v38  ;;  %1529 = vmatprep.subr.bf16.mxu0 %v7324_v9  ;;  %8394 = vst [vmem:[#allocation50_spill] sm:$0xff] %v7337_v37  ;;  %v7341_v38 = vld [vmem:[#allocation8 + $0x48] ss:$16 sps:$4 sm:$0xff]   ;;  %v7349_v9 = vld [vmem:[#allocation8 + $0x20] ss:$16 sps:$4 sm:$0xff]  }
  0xe9   : > { %1570 = vmatprep.subr.bf16.mxu1 %v7328_v8  ;;  %8395 = vst [vmem:[#allocation51_spill] sm:$0xff] %v7341_v38  ;;  %8398 = vst [vmem:[#allocation54_spill] sm:$0xff] %v7349_v9 }
  0xeb   : > { %1530 = vmatpush1.bf16.msra.mxu0 %v7322_v3  ;;  %v7353_v3 = vld [vmem:[#allocation8 + $0x28] ss:$16 sps:$4 sm:$0xff]  }
  0xec   : > { %1571 = vmatpush1.bf16.msra.mxu1 %v7326_v12  ;;  %1531 = vmatprep.subr.bf16.mxu0 %v7330_v7  ;;  %8399 = vst [vmem:[#allocation55_spill] sm:$0xff] %v7353_v3  ;;  %v7355_v12 = vld [vmem:[#allocation8 + $0x4] ss:$16 sps:$4 sm:$0xff]   ;;  %v7358_v7 = vld [vmem:[#allocation8 + $0xc] ss:$16 sps:$4 sm:$0xff]  }
  0xed   : > { %1572 = vmatprep.subr.bf16.mxu1 %v7333_v6  ;;  %8400 = vst [vmem:[#allocation56_spill] sm:$0xff] %v7355_v12  ;;  %8401 = vst [vmem:[#allocation57_spill] sm:$0xff] %v7358_v7  ;;  %v7361_v6 = vld [vmem:[#allocation8] ss:$16 sps:$4 sm:$0xff]  }
  0xee   : > { %8402 = vst [vmem:[#allocation58_spill] sm:$0xff] %v7361_v6 }
  0xef   : > { %1532 = vmatpush1.bf16.msra.mxu0 %v7337_v37  ;;  %v7365_v37 = vld [vmem:[#allocation8 + $0x8] ss:$16 sps:$4 sm:$0xff]  }
  0xf0   : > { %1573 = vmatpush1.bf16.msra.mxu1 %v7341_v38  ;;  %1533 = vmatprep.subr.bf16.mxu0 %v7343_v14  ;;  %8403 = vst [vmem:[#allocation59_spill] sm:$0xff] %v7365_v37  ;;  %v6570_v14 = vld [vmem:[#allocation7 + $0xe4] ss:$16 sps:$4 sm:$0xff]  }
  0xf1   : > { %1574 = vmatprep.subr.bf16.mxu1 %v7346_v13  ;;  %v6571_v13 = vld [vmem:[#allocation7 + $0xec] ss:$16 sps:$4 sm:$0xff]  }
  0xf3   : > { %1534 = vmatpush1.bf16.msra.mxu0 %v7349_v9 }
  0xf4   : > { %1575 = vmatpush1.bf16.msra.mxu1 %v7353_v3  ;;  %1535 = vmatprep.subr.bf16.mxu0 %v7355_v12 }
  0xf5   : > { %1576 = vmatprep.subr.bf16.mxu1 %v7358_v7  ;;  %v8262_v7 = vsub.s32 0, %v7370_v43 }
  0xf7   : > { %1536 = vmatpush1.bf16.msra.mxu0 %v7361_v6 }
  0xf8   : > { %1577 = vmatpush1.bf16.msra.mxu1 %v7365_v37  ;;  %1885 = vmatprep.subr.bf16.mxu0 %v6570_v14  ;;  %v443_v37 = vld [vmem:[%s8214_s3] sm:$0xf]  ;;  %v8265_v14 = vsub.s32 1, %v7370_v43 }
  0xf9   : > { %1926 = vmatprep.subr.bf16.mxu1 %v6571_v13  ;;  %v7379_v13 = vrot.slane %v443_v37, %v8262_v7  ;;  %v1013_v7 = vsub.s32 3, %v7370_v43 }
 0x159   : > { %v708_v38 = vpop.f32.mrf.mxu0  ;;  %v749_v9 = vpop.f32.mrf.mxu1 }
 0x15b   : > { %v710_v8 = vpop.f32.mrf.mxu0  ;;  %v751_v5 = vpop.f32.mrf.mxu1 }
 0x15d   : > { %v712_v46 = vpop.f32.mrf.mxu0  ;;  %v753_v3 = vpop.f32.mrf.mxu1 }
 0x15f   : > { %v713_v45 = vpop.f32.mrf.mxu0  ;;  %v754_v12 = vpop.f32.mrf.mxu1 }
 0x160   : > { %v7383_v45 = vrot.slane %v443_v37, %v8265_v14  ;;  %v7390_v14 = vrot.slane %v443_v37, %v1013_v7 }
 0x179   : > { %v950_v6 = vpop.f32.mrf.mxu0  ;;  %v991_v46 = vpop.f32.mrf.mxu1 }
 0x17a   : > { %v951_v3 = vadd.f32 %v950_v6, %v708_v38 }
 0x17b   : > { %v952_v44 = vpop.f32.mrf.mxu0  ;;  %v993_v12 = vpop.f32.mrf.mxu1 }
 0x17c   : > { %v1019_v41 = vadd.f32 %v7379_v13, %v951_v3  ;;  %v953_v34 = vadd.f32 %v952_v44, %v710_v8  ;;  %v994_v38 = vadd.f32 %v993_v12, %v751_v5  ;;  %v8266_v3 = vsub.s32 2, %v7370_v43  ;;  %v447_v12 = vld [vmem:[#allocation14] sm:$0xff] }
 0x17d   : > { %v954_v33 = vpop.f32.mrf.mxu0  ;;  %v995_v30 = vpop.f32.mrf.mxu1 }
 0x17e   : > { %v5435_v29 = vmul.f32 -1.442695, %v1019_v41  ;;  %v1020_v26 = vadd.f32 %v7383_v45, %v953_v34  ;;  %v1022_v33 = vadd.f32 %v7390_v14, %v994_v38  ;;  %v992_v30 = vadd.f32 %v991_v46, %v749_v9 }
 0x17f   : > { %v955_v25 = vpop.f32.mrf.mxu0  ;;  %v996_v22 = vpop.f32.mrf.mxu1  ;;  %v7396_v34 = vrot.slane %v443_v37, %v8266_v3 }
 0x180   : > { %6442 = vpow2.f32 %v5435_v29  ;;  %v5436_v6 = vmul.f32 -1.442695, %v1020_v26  ;;  %v5437_v41 = vmul.f32 -1.442695, %v1022_v33 }
 0x181   : > { %v1021_v22 = vadd.f32 %v7396_v34, %v992_v30 }
 0x182   : > { %6444 = vpow2.f32 %v5436_v6 }
 0x183   : > { %6446 = vpow2.f32 %v5437_v41 }
 0x18d   : > { %v6443_v25 = vpop.eup %6442 }
 0x18e   : > { %v1026_v26 = vadd.f32 1.0, %v6443_v25 }
 0x18f   : > { %v6445_v29 = vpop.eup %6444 }
 0x190   : > { %6448 = vrcp.f32 %v1026_v26  ;;  %v1032_v5 = vadd.f32 1.0, %v6445_v29  ;;  %v6447_v8 = vpop.eup %6446  ;;  %v6573_v26 = vld [vmem:[#allocation7 + $0xe8] ss:$16 sps:$4 sm:$0xff]   ;;  %v6574_v29 = vld [vmem:[#allocation7 + $0xc4] ss:$16 sps:$4 sm:$0xff]  }
 0x191   : > { %6450 = vtanh.f32 %v1021_v22  ;;  %v1039_v46 = vadd.f32 1.0, %v6447_v8  ;;  %v6572_v22 = vld [vmem:[#allocation7 + $0xe0] ss:$16 sps:$4 sm:$0xff]   ;;  %v8404_v8 = vmov 0  }
 0x192   : > { %6452 = vrcp.f32 %v1032_v5  ;;  %v6575_v5 = vld [vmem:[#allocation7 + $0xcc] ss:$16 sps:$4 sm:$0xff]  }
 0x193   : > { %6454 = vrcp.f32 %v1039_v46  ;;  %v6581_v46 = vld [vmem:[#allocation7 + $0xa8] ss:$16 sps:$4 sm:$0xff]  }
 0x19d   : > { %v6449_v44 = vpop.eup %6448 }
 0x19e   : > { %v6451_v6 = vpop.eup %6450 }
 0x19f   : > { %v6453_v9 = vpop.eup %6452  ;;  %v1043_v38 = vmul.f32 %v6451_v6, %v6449_v44  ;;  %v6577_v44 = vld [vmem:[#allocation7 + $0xc8] ss:$16 sps:$4 sm:$0xff]   ;;  %v6579_v6 = vld [vmem:[#allocation7 + $0xac] ss:$16 sps:$4 sm:$0xff]  }
 0x1a0   : > { %v1042_v37 = vmul.f32 %v6453_v9, %v447_v12  ;;  %v6455_v33 = vpop.eup %6454  ;;  %v6578_v12 = vld [vmem:[#allocation7 + $0xa4] ss:$16 sps:$4 sm:$0xff]   ;;  %v6580_v9 = vld [vmem:[#allocation7 + $0xa0] ss:$16 sps:$4 sm:$0xff]  }
 0x1a2   : > { %v1044_v3 = vadd.f32 %v1043_v38, %v1042_v37  ;;  %v6582_v38 = vld [vmem:[#allocation7 + $0x84] ss:$16 sps:$4 sm:$0xff]   ;;  %v6583_v37 = vld [vmem:[#allocation7 + $0x8c] ss:$16 sps:$4 sm:$0xff]  }
 0x1a4   : > { %1048 = vst [vmem:[#allocation14] sm:$0xff] %v1044_v3  ;;  %6456 = vtanh.f32 %v1044_v3  ;;  %v6576_v3 = vld [vmem:[#allocation7 + $0xc0] ss:$16 sps:$4 sm:$0xff]  }
 0x1b1   : > { %v6457_v30 = vpop.eup %6456 }
 0x1b2   : > { %v1046_v25 = vmul.f32 %v6457_v30, %v6455_v33  ;;  %v6584_v33 = vld [vmem:[#allocation7 + $0x80] ss:$16 sps:$4 sm:$0xff]   ;;  %v6585_v30 = vld [vmem:[#allocation7 + $0x88] ss:$16 sps:$4 sm:$0xff]  }
 0x1b4   : > { %v7399_v41 = vpack.c.bf16 %v1046_v25, %v1046_v25  ;;  %v6586_v25 = vld [vmem:[#allocation7 + $0x64] ss:$16 sps:$4 sm:$0xff]  }
 0x1b6   : > { %1554 = vmatmul.mubr.bf16.vlgmr.msra.gmra.mxu0 %v7399_v41  ;;  %1595 = vmatmul.mubr.bf16.vlgmr.msra.gmra.mxu1 %v7399_v41 }
 0x1b7   : > { %1886 = vmatpush1.bf16.msra.mxu0 %v6572_v22  ;;  %1927 = vmatpush1.bf16.msra.mxu1 %v6573_v26  ;;  %v6587_v22 = vld [vmem:[#allocation7 + $0x6c] ss:$16 sps:$4 sm:$0xff]   ;;  %v6588_v26 = vld [vmem:[#allocation7 + $0x60] ss:$16 sps:$4 sm:$0xff]  }
 0x1b8   : > { %1887 = vmatprep.subr.bf16.mxu0 %v6574_v29  ;;  %1928 = vmatprep.subr.bf16.mxu1 %v6575_v5  ;;  %v6589_v29 = vld [vmem:[#allocation7 + $0x68] ss:$16 sps:$4 sm:$0xff]   ;;  %v6590_v5 = vld [vmem:[#allocation7 + $0x44] ss:$16 sps:$4 sm:$0xff]  }
 0x1b9   : > { %1917 = vmatprep.mubr.bf16.mxu0 %v8404_v8  ;;  %1958 = vmatprep.mubr.bf16.mxu1 %v8404_v8 }
 0x1bb   : > { %1888 = vmatpush1.bf16.msra.mxu0 %v6576_v3  ;;  %1929 = vmatpush1.bf16.msra.mxu1 %v6577_v44  ;;  %v6591_v3 = vld [vmem:[#allocation7 + $0x4c] ss:$16 sps:$4 sm:$0xff]   ;;  %v6592_v44 = vld [vmem:[#allocation7 + $0x40] ss:$16 sps:$4 sm:$0xff]  }
 0x1bc   : > { %1889 = vmatprep.subr.bf16.mxu0 %v6578_v12  ;;  %1930 = vmatprep.subr.bf16.mxu1 %v6579_v6  ;;  %v6593_v12 = vld [vmem:[#allocation7 + $0x48] ss:$16 sps:$4 sm:$0xff]   ;;  %v6594_v6 = vld [vmem:[#allocation7 + $0x24] ss:$16 sps:$4 sm:$0xff]  }
 0x1bf   : > { %1890 = vmatpush1.bf16.msra.mxu0 %v6580_v9  ;;  %1931 = vmatpush1.bf16.msra.mxu1 %v6581_v46  ;;  %v6595_v9 = vld [vmem:[#allocation7 + $0x2c] ss:$16 sps:$4 sm:$0xff]   ;;  %v6596_v46 = vld [vmem:[#allocation7 + $0x20] ss:$16 sps:$4 sm:$0xff]  }
 0x1c0   : > { %1891 = vmatprep.subr.bf16.mxu0 %v6582_v38  ;;  %1932 = vmatprep.subr.bf16.mxu1 %v6583_v37  ;;  %v6597_v38 = vld [vmem:[#allocation7 + $0x28] ss:$16 sps:$4 sm:$0xff]   ;;  %v6598_v37 = vld [vmem:[#allocation7 + $0x4] ss:$16 sps:$4 sm:$0xff]  }
 0x1c3   : > { %1892 = vmatpush1.bf16.msra.mxu0 %v6584_v33  ;;  %1933 = vmatpush1.bf16.msra.mxu1 %v6585_v30  ;;  %v6599_v33 = vld [vmem:[#allocation7 + $0xc] ss:$16 sps:$4 sm:$0xff]   ;;  %v7405_v30 = vpop.f32.mrf.mxu0 }
 0x1c4   : > { %1893 = vmatprep.subr.bf16.mxu0 %v6586_v25  ;;  %1934 = vmatprep.subr.bf16.mxu1 %v6587_v22  ;;  %v6600_v25 = vld [vmem:[#allocation7] ss:$16 sps:$4 sm:$0xff]   ;;  %v6601_v22 = vld [vmem:[#allocation7 + $0x8] ss:$16 sps:$4 sm:$0xff]  }
 0x1c7   : > { %1894 = vmatpush1.bf16.msra.mxu0 %v6588_v26  ;;  %1935 = vmatpush1.bf16.msra.mxu1 %v6589_v29  ;;  %v7407_v26 = vpop.f32.mrf.mxu0  ;;  %v6602_v29 = vld [vmem:[#allocation5 + $0xe4] ss:$16 sps:$4 sm:$0xff]  }
 0x1c8   : > { %1895 = vmatprep.subr.bf16.mxu0 %v6590_v5  ;;  %1936 = vmatprep.subr.bf16.mxu1 %v6591_v3  ;;  %v6603_v5 = vld [vmem:[#allocation5 + $0xec] ss:$16 sps:$4 sm:$0xff]  }
 0x1c9   : > { %v1317_v3 = vpop.f32.mrf.mxu0 }
 0x1ca   : > { %v6612_v3 = vld [vmem:[#allocation5 + $0xa0] ss:$16 sps:$4 sm:$0xff]  }
 0x1cb   : > { %1896 = vmatpush1.bf16.msra.mxu0 %v6592_v44  ;;  %1937 = vmatpush1.bf16.msra.mxu1 %v6593_v12  ;;  %v6604_v44 = vld [vmem:[#allocation5 + $0xe0] ss:$16 sps:$4 sm:$0xff]   ;;  %v6605_v12 = vld [vmem:[#allocation5 + $0xe8] ss:$16 sps:$4 sm:$0xff]  }
 0x1cc   : > { %1897 = vmatprep.subr.bf16.mxu0 %v6594_v6  ;;  %1938 = vmatprep.subr.bf16.mxu1 %v6595_v9  ;;  %v1318_v6 = vpop.f32.mrf.mxu0  ;;  %v7411_v9 = vpop.f32.mrf.mxu1 }
 0x1cf   : > { %1898 = vmatpush1.bf16.msra.mxu0 %v6596_v46  ;;  %1939 = vmatpush1.bf16.msra.mxu1 %v6597_v38  ;;  %v6606_v46 = vld [vmem:[#allocation5 + $0xc4] ss:$16 sps:$4 sm:$0xff]   ;;  %v6607_v38 = vld [vmem:[#allocation5 + $0xcc] ss:$16 sps:$4 sm:$0xff]  }
 0x1d0   : > { %1899 = vmatprep.subr.bf16.mxu0 %v6598_v37  ;;  %1940 = vmatprep.subr.bf16.mxu1 %v6599_v33  ;;  %v7415_v37 = vpop.f32.mrf.mxu1  ;;  %v6608_v33 = vld [vmem:[#allocation5 + $0xc0] ss:$16 sps:$4 sm:$0xff]  }
 0x1d3   : > { %1900 = vmatpush1.bf16.msra.mxu0 %v6600_v25  ;;  %1941 = vmatpush1.bf16.msra.mxu1 %v6601_v22  ;;  %v1358_v25 = vpop.f32.mrf.mxu1  ;;  %v6610_v22 = vld [vmem:[#allocation5 + $0xa4] ss:$16 sps:$4 sm:$0xff]  }
 0x1d4   : > { %2127 = vmatprep.subr.bf16.mxu0 %v6602_v29  ;;  %2168 = vmatprep.subr.bf16.mxu1 %v6603_v5  ;;  %v6611_v29 = vld [vmem:[#allocation5 + $0xac] ss:$16 sps:$4 sm:$0xff]  }
 0x1d5   : > { %v1359_v5 = vpop.f32.mrf.mxu1 }
 0x1d6   : > { %1918 = vmatmul.mubr.bf16.vlgmr.msra.gmra.mxu0 %v7399_v41  ;;  %1959 = vmatmul.mubr.bf16.vlgmr.msra.gmra.mxu1 %v7399_v41  ;;  %v6609_v41 = vld [vmem:[#allocation5 + $0xc8] ss:$16 sps:$4 sm:$0xff]  }
 0x1d7   : > { %2128 = vmatpush1.bf16.msra.mxu0 %v6604_v44  ;;  %2169 = vmatpush1.bf16.msra.mxu1 %v6605_v12 }
 0x1d8   : > { %2129 = vmatprep.subr.bf16.mxu0 %v6606_v46  ;;  %2170 = vmatprep.subr.bf16.mxu1 %v6607_v38 }
 0x1d9   : > { %2159 = vmatprep.mubr.bf16.mxu0 %v8404_v8  ;;  %2200 = vmatprep.mubr.bf16.mxu1 %v8404_v8 }
 0x1db   : > { %2130 = vmatpush1.bf16.msra.mxu0 %v6608_v33  ;;  %2171 = vmatpush1.bf16.msra.mxu1 %v6609_v41  ;;  %v1052_v41 = vld [vmem:[#allocation14 + $0x8] sm:$0xff] }
 0x1dc   : > { %2131 = vmatprep.subr.bf16.mxu0 %v6610_v22  ;;  %2172 = vmatprep.subr.bf16.mxu1 %v6611_v29 }
 0x1df   : > { %2132 = vmatpush1.bf16.msra.mxu0 %v6612_v3  ;;  %2173 = vmatpush1.bf16.msra.mxu1 %v7128_v47  ;;  %v5505_v47 = vld [vmem:[%s7107_s28 + $0x8] sm:$0xff] }
 0x1e0   : > { %2133 = vmatprep.subr.bf16.mxu0 %v7130_v48  ;;  %2174 = vmatprep.subr.bf16.mxu1 %v7132_v49  ;;  %v1659_v48 = vpack.c.bf16 %v5505_v47, %v5505_v47  ;;  %v7456_v49 = vld [vmem:[#allocation10 + $0xe4] ss:$16 sps:$4 sm:$0xff]  }
 0x1e3   : > { %2134 = vmatpush1.bf16.msra.mxu0 %v7134_v50  ;;  %2175 = vmatpush1.bf16.msra.mxu1 %v7136_v51  ;;  %v7458_v50 = vld [vmem:[#allocation10 + $0xe0] ss:$16 sps:$4 sm:$0xff]   ;;  %v7464_v51 = vld [vmem:[#allocation10 + $0xc4] ss:$16 sps:$4 sm:$0xff]  }
 0x1e4   : > { %2135 = vmatprep.subr.bf16.mxu0 %v7138_v52  ;;  %2176 = vmatprep.subr.bf16.mxu1 %v7140_v53  ;;  %v7466_v52 = vld [vmem:[#allocation10 + $0xc0] ss:$16 sps:$4 sm:$0xff]   ;;  %v7470_v53 = vld [vmem:[#allocation10 + $0xa4] ss:$16 sps:$4 sm:$0xff]  }
 0x1e7   : > { %2136 = vmatpush1.bf16.msra.mxu0 %v7145_v54  ;;  %2177 = vmatpush1.bf16.msra.mxu1 %v7147_v55  ;;  %v7472_v54 = vld [vmem:[#allocation10 + $0xa0] ss:$16 sps:$4 sm:$0xff]  }
 0x1e8   : > { %2137 = vmatprep.subr.bf16.mxu0 %v7149_v56  ;;  %2178 = vmatprep.subr.bf16.mxu1 %v7151_v57  ;;  %v8405_v55 = vld [vmem:[#allocation22_spill] sm:$0xff]  ;;  %v8406_v56 = vld [vmem:[#allocation23_spill] sm:$0xff]  ;;  %v8407_v57 = vld [vmem:[#allocation24_spill] sm:$0xff] }
 0x1eb   : > { %2138 = vmatpush1.bf16.msra.mxu0 %v7157_v58  ;;  %2179 = vmatpush1.bf16.msra.mxu1 %v7159_v59  ;;  %v8408_v58 = vld [vmem:[#allocation25_spill] sm:$0xff]  ;;  %v8409_v59 = vld [vmem:[#allocation26_spill] sm:$0xff] }
 0x1ec   : > { %2139 = vmatprep.subr.bf16.mxu0 %v7161_v60  ;;  %2180 = vmatprep.subr.bf16.mxu1 %v7163_v61  ;;  %v8410_v60 = vld [vmem:[#allocation27_spill] sm:$0xff]  ;;  %v8411_v61 = vld [vmem:[#allocation28_spill] sm:$0xff] }
 0x1ef   : > { %2140 = vmatpush1.bf16.msra.mxu0 %v7169_v62  ;;  %2181 = vmatpush1.bf16.msra.mxu1 %v7171_v63  ;;  %v8412_v62 = vld [vmem:[#allocation29_spill] sm:$0xff]  ;;  %v444_v63 = vld [vmem:[%s8217_s6] sm:$0xf] }
 0x1f0   : > { %2141 = vmatprep.subr.bf16.mxu0 %v7173_v0  ;;  %2182 = vmatprep.subr.bf16.mxu1 %v7175_v1  ;;  %v8413_v0 = vsub.s32 0, %v7370_v43 }
 0x1f2   : > { %v7492_v1 = vrot.slane %v444_v63, %v8413_v0  ;;  %v8418_v0 = vld [vmem:[#allocation32_spill] sm:$0xff] }
 0x1f3   : > { %2142 = vmatpush1.bf16.msra.mxu0 %v7181_v2  ;;  %2183 = vmatpush1.bf16.msra.mxu1 %v7183_v4 }
 0x1f4   : > { %2508 = vmatprep.subr.bf16.mxu1 %v7196_v11  ;;  %2467 = vmatprep.subr.bf16.mxu0 %v7456_v49  ;;  %v8414_v11 = vsub.s32 1, %v7370_v43 }
 0x1f6   : > { %2160 = vmatmul.mubr.bf16.vlgmr.msra.gmra.mxu0 %v1659_v48  ;;  %2201 = vmatmul.mubr.bf16.vlgmr.msra.gmra.mxu1 %v1659_v48 }
 0x1f7   : > { %2509 = vmatpush1.bf16.msra.mxu1 %v7194_v10  ;;  %2499 = vmatprep.mubr.bf16.mxu0 %v8404_v8 }
 0x1f8   : > { %2510 = vmatprep.subr.bf16.mxu1 %v7200_v15  ;;  %2540 = vmatprep.mubr.bf16.mxu1 %v8404_v8  ;;  %v7497_v15 = vrot.slane %v444_v63, %v8414_v11 }
 0x1f9   : > { %2468 = vmatpush1.bf16.msra.mxu0 %v7458_v50 }
 0x1fa   : > { %2469 = vmatprep.subr.bf16.mxu0 %v7464_v51 }
 0x1fb   : > { %2511 = vmatpush1.bf16.msra.mxu1 %v7202_v16 }
 0x1fc   : > { %2512 = vmatprep.subr.bf16.mxu1 %v7210_v19 }
 0x1fd   : > { %2470 = vmatpush1.bf16.msra.mxu0 %v7466_v52 }
 0x1fe   : > { %2471 = vmatprep.subr.bf16.mxu0 %v7470_v53 }
 0x1ff   : > { %2513 = vmatpush1.bf16.msra.mxu1 %v7213_v20 }
 0x200   : > { %2514 = vmatprep.subr.bf16.mxu1 %v7222_v23 }
 0x201   : > { %2472 = vmatpush1.bf16.msra.mxu0 %v7472_v54 }
 0x202   : > { %2473 = vmatprep.subr.bf16.mxu0 %v7206_v17 }
 0x203   : > { %2515 = vmatpush1.bf16.msra.mxu1 %v7225_v24 }
 0x204   : > { %2516 = vmatprep.subr.bf16.mxu1 %v7234_v27 }
 0x205   : > { %2474 = vmatpush1.bf16.msra.mxu0 %v7208_v18 }
 0x206   : > { %2475 = vmatprep.subr.bf16.mxu0 %v7218_v21 }
 0x207   : > { %2517 = vmatpush1.bf16.msra.mxu1 %v7237_v28 }
 0x208   : > { %2518 = vmatprep.subr.bf16.mxu1 %v7246_v31 }
 0x209   : > { %2476 = vmatpush1.bf16.msra.mxu0 %v8405_v55 }
 0x20a   : > { %2477 = vmatprep.subr.bf16.mxu0 %v8406_v56 }
 0x20b   : > { %2519 = vmatpush1.bf16.msra.mxu1 %v7249_v32 }
 0x20c   : > { %2520 = vmatprep.subr.bf16.mxu1 %v7258_v35  ;;  %v7505_v35 = vrot.slane %v444_v63, %v1013_v7 }
 0x20d   : > { %2478 = vmatpush1.bf16.msra.mxu0 %v8407_v57 }
 0x20e   : > { %2479 = vmatprep.subr.bf16.mxu0 %v8408_v58 }
 0x20f   : > { %2521 = vmatpush1.bf16.msra.mxu1 %v7261_v36 }
 0x210   : > { %2522 = vmatprep.subr.bf16.mxu1 %v7266_v39 }
 0x211   : > { %2480 = vmatpush1.bf16.msra.mxu0 %v8409_v59 }
 0x212   : > { %2481 = vmatprep.subr.bf16.mxu0 %v8410_v60 }
 0x213   : > { %2523 = vmatpush1.bf16.msra.mxu1 %v7268_v40  ;;  %v8415_v40 = vsub.s32 2, %v7370_v43 }
 0x214   : > { %2750 = vmatprep.subr.bf16.mxu1 %v7275_v42 }
 0x215   : > { %2482 = vmatpush1.bf16.msra.mxu0 %v8411_v61  ;;  %v7511_v42 = vrot.slane %v444_v63, %v8415_v40  ;;  %v8417_v63 = vld [vmem:[#allocation31_spill] sm:$0xff]  ;;  %v8424_v40 = vld [vmem:[#allocation38_spill] sm:$0xff] }
 0x216   : > { %2709 = vmatprep.subr.bf16.mxu0 %v8412_v62  ;;  %v8416_v62 = vld [vmem:[#allocation30_spill] sm:$0xff] }
 0x276   : > { %v1555_v2 = vpop.f32.mrf.mxu0  ;;  %v1596_v4 = vpop.f32.mrf.mxu1 }
 0x277   : > { %v1556_v10 = vadd.f32 %v1555_v2, %v7405_v30  ;;  %v1597_v39 = vadd.f32 %v1596_v4, %v7411_v9  ;;  %v8419_v2 = vld [vmem:[#allocation33_spill] sm:$0xff] }
 0x278   : > { %v1557_v16 = vpop.f32.mrf.mxu0  ;;  %v1598_v17 = vpop.f32.mrf.mxu1 }
 0x279   : > { %v1624_v18 = vadd.f32 %v7492_v1, %v1556_v10  ;;  %v1558_v19 = vadd.f32 %v1557_v16, %v7407_v26  ;;  %v1599_v32 = vadd.f32 %v1598_v17, %v7415_v37  ;;  %v1626_v44 = vadd.f32 %v7511_v42, %v1597_v39 }
 0x27a   : > { %v1559_v20 = vpop.f32.mrf.mxu0  ;;  %v1600_v21 = vpop.f32.mrf.mxu1 }
 0x27b   : > { %v5502_v23 = vmul.f32 -1.442695, %v1624_v18  ;;  %v1625_v24 = vadd.f32 %v7497_v15, %v1558_v19  ;;  %v1627_v36 = vadd.f32 %v7505_v35, %v1599_v32  ;;  %v8420_v18 = vld [vmem:[#allocation34_spill] sm:$0xff]  ;;  %v8421_v19 = vld [vmem:[#allocation35_spill] sm:$0xff] }
 0x27c   : > { %v1560_v27 = vpop.f32.mrf.mxu0  ;;  %v1601_v28 = vpop.f32.mrf.mxu1 }
 0x27d   : > { %6458 = vpow2.f32 %v5502_v23  ;;  %v5503_v31 = vmul.f32 -1.442695, %v1625_v24  ;;  %v5504_v30 = vmul.f32 -1.442695, %v1627_v36  ;;  %v8422_v23 = vld [vmem:[#allocation36_spill] sm:$0xff]  ;;  %v8423_v28 = vld [vmem:[#allocation37_spill] sm:$0xff] }
 0x27f   : > { %6460 = vpow2.f32 %v5503_v31 }
 0x280   : > { %6462 = vpow2.f32 %v5504_v30  ;;  %v8425_v30 = vld [vmem:[#allocation39_spill] sm:$0xff] }
 0x28a   : > { %v6459_v26 = vpop.eup %6458 }
 0x28b   : > { %v1631_v12 = vadd.f32 1.0, %v6459_v26 }
 0x28c   : > { %v6461_v6 = vpop.eup %6460 }
 0x28d   : > { %6464 = vrcp.f32 %v1631_v12  ;;  %v1637_v46 = vadd.f32 1.0, %v6461_v6  ;;  %v6463_v33 = vpop.eup %6462  ;;  %v8427_v12 = vld [vmem:[#allocation41_spill] sm:$0xff] }
 0x28e   : > { %6466 = vtanh.f32 %v1626_v44  ;;  %v1644_v3 = vadd.f32 1.0, %v6463_v33  ;;  %v8426_v44 = vld [vmem:[#allocation40_spill] sm:$0xff]  ;;  %v8431_v33 = vld [vmem:[#allocation47_spill] sm:$0xff] }
 0x28f   : > { %6468 = vrcp.f32 %v1637_v46  ;;  %v8428_v46 = vld [vmem:[#allocation42_spill] sm:$0xff] }
 0x290   : > { %6470 = vrcp.f32 %v1644_v3  ;;  %v8436_v3 = vld [vmem:[#allocation50_spill] sm:$0xff] }
 0x296   : > { %v1919_v7 = vpop.f32.mrf.mxu0  ;;  %v7514_v38 = vpop.f32.mrf.mxu1 }
 0x298   : > { %v1921_v37 = vpop.f32.mrf.mxu0  ;;  %v1962_v9 = vpop.f32.mrf.mxu1 }
 0x29a   : > { %v6465_v43 = vpop.eup %6464  ;;  %v1923_v25 = vpop.f32.mrf.mxu0 }
 0x29b   : > { %v1964_v22 = vpop.f32.mrf.mxu1  ;;  %v6467_v29 = vpop.eup %6466  ;;  %v8433_v25 = vld [vmem:[#allocation46_spill] sm:$0xff] }
 0x29c   : > { %v6469_v5 = vpop.eup %6468  ;;  %v1924_v47 = vpop.f32.mrf.mxu0  ;;  %v1648_v55 = vmul.f32 %v6467_v29, %v6465_v43  ;;  %v8434_v22 = vld [vmem:[#allocation48_spill] sm:$0xff]  ;;  %v8435_v29 = vld [vmem:[#allocation49_spill] sm:$0xff] }
 0x29d   : > { %v1965_v48 = vpop.f32.mrf.mxu1  ;;  %v1647_v56 = vmul.f32 %v6469_v5, %v1052_v41  ;;  %v6471_v58 = vpop.eup %6470  ;;  %v8432_v41 = vld [vmem:[#allocation44_spill] sm:$0xff]  ;;  %v8437_v47 = vld [vmem:[#allocation51_spill] sm:$0xff] }
 0x29e   : > { %v8438_v48 = vld [vmem:[#allocation52_spill] sm:$0xff] }
 0x29f   : > { %v7516_v57 = vadd.f32 %v1648_v55, %v1647_v56  ;;  %v8439_v55 = vld [vmem:[#allocation53_spill] sm:$0xff] }
 0x2a1   : > { %6472 = vtanh.f32 %v7516_v57 }
 0x2ae   : > { %v6473_v59 = vpop.eup %6472 }
 0x2af   : > { %v1651_v60 = vmul.f32 %v6473_v59, %v6471_v58 }
 0x2b1   : > { %1654 = vst [vmem:[%s7121_s2] sm:$0xff] %v1651_v60  ;;  %v2274_v61 = vpack.c.bf16 %v1651_v60, %v1651_v60 }
 0x2b3   : > { %2500 = vmatmul.mubr.bf16.vlgmr.msra.gmra.mxu0 %v2274_v61  ;;  %2541 = vmatmul.mubr.bf16.vlgmr.msra.gmra.mxu1 %v2274_v61  ;;  %v8440_v61 = vld [vmem:[#allocation54_spill] sm:$0xff] }
 0x2b4   : > { %2710 = vmatpush1.bf16.msra.mxu0 %v8416_v62  ;;  %2751 = vmatpush1.bf16.msra.mxu1 %v8417_v63  ;;  %v8441_v62 = vld [vmem:[#allocation55_spill] sm:$0xff]  ;;  %v8442_v63 = vld [vmem:[#allocation56_spill] sm:$0xff] }
 0x2b5   : > { %2711 = vmatprep.subr.bf16.mxu0 %v8418_v0  ;;  %2752 = vmatprep.subr.bf16.mxu1 %v8419_v2  ;;  %v8443_v0 = vld [vmem:[#allocation57_spill] sm:$0xff]  ;;  %v7555_v2 = vld [vmem:[#allocation7 + $0xe4] ss:$16 sps:$4 sm:$0xff]  }
 0x2b6   : > { %v2161_v4 = vpop.f32.mrf.mxu0  ;;  %v2202_v10 = vpop.f32.mrf.mxu1  ;;  %2741 = vmatprep.mubr.bf16.mxu0 %v8404_v8  ;;  %2782 = vmatprep.mubr.bf16.mxu1 %v8404_v8 }
 0x2b7   : > { %v2162_v11 = vadd.f32 %v2161_v4, %v1919_v7  ;;  %v8429_v7 = vld [vmem:[#allocation43_spill] sm:$0xff] }
 0x2b8   : > { %v2163_v16 = vpop.f32.mrf.mxu0  ;;  %v2204_v17 = vpop.f32.mrf.mxu1  ;;  %2712 = vmatpush1.bf16.msra.mxu0 %v8420_v18  ;;  %2753 = vmatpush1.bf16.msra.mxu1 %v8421_v19  ;;  %v7557_v4 = vld [vmem:[#allocation7 + $0xec] ss:$16 sps:$4 sm:$0xff]  }
 0x2b9   : > { %v2209_v20 = vadd.f32 %v2162_v11, %v7379_v13  ;;  %v2164_v21 = vadd.f32 %v2163_v16, %v1921_v37  ;;  %2713 = vmatprep.subr.bf16.mxu0 %v8422_v23  ;;  %2754 = vmatprep.subr.bf16.mxu1 %v8423_v28  ;;  %v2205_v6 = vadd.f32 %v2204_v17, %v1962_v9  ;;  %v8430_v37 = vld [vmem:[#allocation45_spill] sm:$0xff]  ;;  %v8445_v11 = vld [vmem:[#allocation59_spill] sm:$0xff] }
 0x2ba   : > { %v2165_v24 = vpop.f32.mrf.mxu0  ;;  %v2206_v27 = vpop.f32.mrf.mxu1  ;;  %v2203_v9 = vadd.f32 %v2202_v10, %v7514_v38  ;;  %v8444_v10 = vld [vmem:[#allocation58_spill] sm:$0xff] }
 0x2bb   : > { %v5570_v31 = vmul.f32 -1.442695, %v2209_v20  ;;  %v2210_v32 = vadd.f32 %v2164_v21, %v7383_v45  ;;  %v2212_v43 = vadd.f32 %v2205_v6, %v7390_v14  ;;  %v1658_v20 = vld [vmem:[#allocation14] sm:$0xff] }
 0x2bc   : > { %v2166_v36 = vpop.f32.mrf.mxu0  ;;  %v2207_v39 = vpop.f32.mrf.mxu1  ;;  %2714 = vmatpush1.bf16.msra.mxu0 %v8424_v40  ;;  %2755 = vmatpush1.bf16.msra.mxu1 %v8425_v30  ;;  %v2211_v58 = vadd.f32 %v2203_v9, %v7396_v34  ;;  %v7572_v30 = vld [vmem:[#allocation7 + $0xc4] ss:$16 sps:$4 sm:$0xff]   ;;  %v7618_v9 = vld [vmem:[#allocation7 + $0x60] ss:$16 sps:$4 sm:$0xff]  }
 0x2bd   : > { %6474 = vpow2.f32 %v5570_v31  ;;  %v5571_v26 = vmul.f32 -1.442695, %v2210_v32  ;;  %2715 = vmatprep.subr.bf16.mxu0 %v8426_v44  ;;  %2756 = vmatprep.subr.bf16.mxu1 %v8427_v12  ;;  %v5572_v5 = vmul.f32 -1.442695, %v2212_v43  ;;  %v7566_v36 = vld [vmem:[#allocation7 + $0xe0] ss:$16 sps:$4 sm:$0xff]  }
 0x2be   : > { %v7568_v39 = vld [vmem:[#allocation7 + $0xe8] ss:$16 sps:$4 sm:$0xff]   ;;  %v7580_v44 = vld [vmem:[#allocation7 + $0xc0] ss:$16 sps:$4 sm:$0xff]   ;;  %v7586_v6 = vld [vmem:[#allocation7 + $0xa4] ss:$16 sps:$4 sm:$0xff]  }
 0x2bf   : > { %6476 = vpow2.f32 %v5571_v26  ;;  %v7574_v26 = vld [vmem:[#allocation7 + $0xcc] ss:$16 sps:$4 sm:$0xff]   ;;  %v7582_v12 = vld [vmem:[#allocation7 + $0xc8] ss:$16 sps:$4 sm:$0xff]  }
 0x2c0   : > { %2716 = vmatpush1.bf16.msra.mxu0 %v8428_v46  ;;  %2757 = vmatpush1.bf16.msra.mxu1 %v8429_v7  ;;  %6478 = vpow2.f32 %v5572_v5  ;;  %v7588_v46 = vld [vmem:[#allocation7 + $0xac] ss:$16 sps:$4 sm:$0xff]   ;;  %v7594_v7 = vld [vmem:[#allocation7 + $0xa0] ss:$16 sps:$4 sm:$0xff]   ;;  %v7620_v5 = vld [vmem:[#allocation7 + $0x68] ss:$16 sps:$4 sm:$0xff]  }
 0x2c1   : > { %2717 = vmatprep.subr.bf16.mxu0 %v8430_v37  ;;  %2758 = vmatprep.subr.bf16.mxu1 %v8431_v33  ;;  %v7596_v37 = vld [vmem:[#allocation7 + $0xa8] ss:$16 sps:$4 sm:$0xff]   ;;  %v7600_v33 = vld [vmem:[#allocation7 + $0x84] ss:$16 sps:$4 sm:$0xff]   ;;  %v7602_v43 = vld [vmem:[#allocation7 + $0x8c] ss:$16 sps:$4 sm:$0xff]  }
 0x2c4   : > { %2718 = vmatpush1.bf16.msra.mxu0 %v8432_v41  ;;  %2759 = vmatpush1.bf16.msra.mxu1 %v8433_v25  ;;  %v7606_v41 = vld [vmem:[#allocation7 + $0x80] ss:$16 sps:$4 sm:$0xff]   ;;  %v7608_v25 = vld [vmem:[#allocation7 + $0x88] ss:$16 sps:$4 sm:$0xff]  }
 0x2c5   : > { %2719 = vmatprep.subr.bf16.mxu0 %v8434_v22  ;;  %2760 = vmatprep.subr.bf16.mxu1 %v8435_v29  ;;  %v7612_v22 = vld [vmem:[#allocation7 + $0x64] ss:$16 sps:$4 sm:$0xff]   ;;  %v7614_v29 = vld [vmem:[#allocation7 + $0x6c] ss:$16 sps:$4 sm:$0xff]  }
 0x2c8   : > { %2720 = vmatpush1.bf16.msra.mxu0 %v8436_v3  ;;  %2761 = vmatpush1.bf16.msra.mxu1 %v8437_v47  ;;  %v7624_v3 = vld [vmem:[#allocation7 + $0x44] ss:$16 sps:$4 sm:$0xff]   ;;  %v7626_v47 = vld [vmem:[#allocation7 + $0x4c] ss:$16 sps:$4 sm:$0xff]  }
 0x2c9   : > { %2721 = vmatprep.subr.bf16.mxu0 %v8438_v48  ;;  %2762 = vmatprep.subr.bf16.mxu1 %v8439_v55  ;;  %v7630_v48 = vld [vmem:[#allocation7 + $0x40] ss:$16 sps:$4 sm:$0xff]   ;;  %v7632_v55 = vld [vmem:[#allocation7 + $0x48] ss:$16 sps:$4 sm:$0xff]  }
 0x2ca   : > { %v6475_v56 = vpop.eup %6474 }
 0x2cb   : > { %v2216_v59 = vadd.f32 1.0, %v6475_v56  ;;  %v7636_v56 = vld [vmem:[#allocation7 + $0x24] ss:$16 sps:$4 sm:$0xff]  }
 0x2cc   : > { %v6477_v60 = vpop.eup %6476  ;;  %2722 = vmatpush1.bf16.msra.mxu0 %v8440_v61  ;;  %2763 = vmatpush1.bf16.msra.mxu1 %v8441_v62  ;;  %v7648_v61 = vld [vmem:[#allocation7 + $0x4] ss:$16 sps:$4 sm:$0xff]   ;;  %v7650_v62 = vld [vmem:[#allocation7 + $0xc] ss:$16 sps:$4 sm:$0xff]  }
 0x2cd   : > { %6480 = vrcp.f32 %v2216_v59  ;;  %v2222_v38 = vadd.f32 1.0, %v6477_v60  ;;  %2723 = vmatprep.subr.bf16.mxu0 %v8442_v63  ;;  %2764 = vmatprep.subr.bf16.mxu1 %v8443_v0  ;;  %v6479_v16 = vpop.eup %6478  ;;  %v7642_v59 = vld [vmem:[#allocation7 + $0x20] ss:$16 sps:$4 sm:$0xff]   ;;  %v7644_v60 = vld [vmem:[#allocation7 + $0x28] ss:$16 sps:$4 sm:$0xff]  }
 0x2ce   : > { %6482 = vtanh.f32 %v2211_v58  ;;  %v2229_v21 = vadd.f32 1.0, %v6479_v16  ;;  %v7638_v58 = vld [vmem:[#allocation7 + $0x2c] ss:$16 sps:$4 sm:$0xff]   ;;  %v7656_v63 = vld [vmem:[#allocation7 + $0x8] ss:$16 sps:$4 sm:$0xff]  }
 0x2cf   : > { %6484 = vrcp.f32 %v2222_v38  ;;  %v7654_v38 = vld [vmem:[#allocation7] ss:$16 sps:$4 sm:$0xff]   ;;  %8446 = vst [vmem:[#allocation22_spill] sm:$0xff] %v7656_v63  ;;  %v7660_v0 = vld [vmem:[#allocation5 + $0xe4] ss:$16 sps:$4 sm:$0xff]  }
 0x2d0   : > { %2724 = vmatpush1.bf16.msra.mxu0 %v8444_v10  ;;  %2765 = vmatpush1.bf16.msra.mxu1 %v8445_v11  ;;  %6486 = vrcp.f32 %v2229_v21  ;;  %8447 = vst [vmem:[#allocation23_spill] sm:$0xff] %v7660_v0  ;;  %v7662_v10 = vld [vmem:[#allocation5 + $0xec] ss:$16 sps:$4 sm:$0xff]   ;;  %v7666_v11 = vld [vmem:[#allocation5 + $0xe0] ss:$16 sps:$4 sm:$0xff]  }
 0x2d1   : > { %3053 = vmatprep.subr.bf16.mxu0 %v7555_v2  ;;  %3094 = vmatprep.subr.bf16.mxu1 %v7557_v4  ;;  %8448 = vst [vmem:[#allocation24_spill] sm:$0xff] %v7662_v10  ;;  %8449 = vst [vmem:[#allocation25_spill] sm:$0xff] %v7666_v11  ;;  %v7668_v16 = vld [vmem:[#allocation5 + $0xe8] ss:$16 sps:$4 sm:$0xff]   ;;  %v7686_v21 = vld [vmem:[#allocation5 + $0xa4] ss:$16 sps:$4 sm:$0xff]  }
 0x2d2   : > { %8450 = vst [vmem:[#allocation26_spill] sm:$0xff] %v7668_v16  ;;  %8455 = vst [vmem:[#allocation31_spill] sm:$0xff] %v7686_v21 }
 0x2da   : > { %v6481_v17 = vpop.eup %6480 }
 0x2db   : > { %v6483_v18 = vpop.eup %6482 }
 0x2dc   : > { %v6485_v19 = vpop.eup %6484  ;;  %v2233_v23 = vmul.f32 %v6483_v18, %v6481_v17  ;;  %v7672_v17 = vld [vmem:[#allocation5 + $0xc4] ss:$16 sps:$4 sm:$0xff]   ;;  %v7674_v18 = vld [vmem:[#allocation5 + $0xcc] ss:$16 sps:$4 sm:$0xff]  }
 0x2dd   : > { %v2232_v24 = vmul.f32 %v6485_v19, %v1658_v20  ;;  %v6487_v28 = vpop.eup %6486  ;;  %8451 = vst [vmem:[#allocation27_spill] sm:$0xff] %v7672_v17  ;;  %8452 = vst [vmem:[#allocation28_spill] sm:$0xff] %v7674_v18  ;;  %v7680_v19 = vld [vmem:[#allocation5 + $0xc0] ss:$16 sps:$4 sm:$0xff]   ;;  %v7682_v20 = vld [vmem:[#allocation5 + $0xc8] ss:$16 sps:$4 sm:$0xff]  }
 0x2de   : > { %8453 = vst [vmem:[#allocation29_spill] sm:$0xff] %v7680_v19  ;;  %8454 = vst [vmem:[#allocation30_spill] sm:$0xff] %v7682_v20 }
 0x2df   : > { %v7563_v27 = vadd.f32 %v2233_v23, %v2232_v24  ;;  %v7688_v23 = vld [vmem:[#allocation5 + $0xac] ss:$16 sps:$4 sm:$0xff]   ;;  %v7694_v24 = vld [vmem:[#allocation5 + $0xa0] ss:$16 sps:$4 sm:$0xff]  }
 0x2e0   : > { %8456 = vst [vmem:[#allocation32_spill] sm:$0xff] %v7688_v23  ;;  %8457 = vst [vmem:[#allocation33_spill] sm:$0xff] %v7694_v24 }
 0x2e1   : > { %6488 = vtanh.f32 %v7563_v27 }
 0x2ee   : > { %v6489_v31 = vpop.eup %6488 }
 0x2ef   : > { %v2236_v32 = vmul.f32 %v6489_v31, %v6487_v28  ;;  %v7696_v28 = vld [vmem:[#allocation5 + $0xa8] ss:$16 sps:$4 sm:$0xff]   ;;  %v7700_v31 = vld [vmem:[#allocation5 + $0x84] ss:$16 sps:$4 sm:$0xff]  }
 0x2f0   : > { %8458 = vst [vmem:[#allocation34_spill] sm:$0xff] %v7696_v28  ;;  %8459 = vst [vmem:[#allocation35_spill] sm:$0xff] %v7700_v31 }
 0x2f1   : > { %v7570_v40 = vpack.c.bf16 %v2236_v32, %v2236_v32  ;;  %v7702_v32 = vld [vmem:[#allocation5 + $0x8c] ss:$16 sps:$4 sm:$0xff]  }
 0x2f2   : > { %8460 = vst [vmem:[#allocation36_spill] sm:$0xff] %v7702_v32 }
 0x2f3   : > { %2742 = vmatmul.mubr.bf16.vlgmr.msra.gmra.mxu0 %v7570_v40  ;;  %2783 = vmatmul.mubr.bf16.vlgmr.msra.gmra.mxu1 %v7570_v40 }
 0x2f4   : > { %3054 = vmatpush1.bf16.msra.mxu0 %v7566_v36  ;;  %3095 = vmatpush1.bf16.msra.mxu1 %v7568_v39 }
 0x2f5   : > { %3055 = vmatprep.subr.bf16.mxu0 %v7572_v30  ;;  %3096 = vmatprep.subr.bf16.mxu1 %v7574_v26 }
 0x2f6   : > { %3085 = vmatprep.mubr.bf16.mxu0 %v8404_v8  ;;  %3126 = vmatprep.mubr.bf16.mxu1 %v8404_v8 }
 0x2f8   : > { %3056 = vmatpush1.bf16.msra.mxu0 %v7580_v44  ;;  %3097 = vmatpush1.bf16.msra.mxu1 %v7582_v12 }
 0x2f9   : > { %3057 = vmatprep.subr.bf16.mxu0 %v7586_v6  ;;  %3098 = vmatprep.subr.bf16.mxu1 %v7588_v46 }
 0x2fc   : > { %3058 = vmatpush1.bf16.msra.mxu0 %v7594_v7  ;;  %3099 = vmatpush1.bf16.msra.mxu1 %v7596_v37 }
 0x2fd   : > { %3059 = vmatprep.subr.bf16.mxu0 %v7600_v33  ;;  %3100 = vmatprep.subr.bf16.mxu1 %v7602_v43 }
 0x300   : > { %3060 = vmatpush1.bf16.msra.mxu0 %v7606_v41  ;;  %3101 = vmatpush1.bf16.msra.mxu1 %v7608_v25 }
 0x301   : > { %3061 = vmatprep.subr.bf16.mxu0 %v7612_v22  ;;  %3102 = vmatprep.subr.bf16.mxu1 %v7614_v29 }
 0x304   : > { %3062 = vmatpush1.bf16.msra.mxu0 %v7618_v9  ;;  %3103 = vmatpush1.bf16.msra.mxu1 %v7620_v5 }
 0x305   : > { %3063 = vmatprep.subr.bf16.mxu0 %v7624_v3  ;;  %3104 = vmatprep.subr.bf16.mxu1 %v7626_v47 }
 0x308   : > { %3064 = vmatpush1.bf16.msra.mxu0 %v7630_v48  ;;  %3105 = vmatpush1.bf16.msra.mxu1 %v7632_v55 }
 0x309   : > { %3065 = vmatprep.subr.bf16.mxu0 %v7636_v56  ;;  %3106 = vmatprep.subr.bf16.mxu1 %v7638_v58 }
 0x30c   : > { %3066 = vmatpush1.bf16.msra.mxu0 %v7642_v59  ;;  %3107 = vmatpush1.bf16.msra.mxu1 %v7644_v60 }
 0x30d   : > { %3067 = vmatprep.subr.bf16.mxu0 %v7648_v61  ;;  %3108 = vmatprep.subr.bf16.mxu1 %v7650_v62 }
 0x310   : > { %3068 = vmatpush1.bf16.msra.mxu0 %v7654_v38  ;;  %3109 = vmatpush1.bf16.msra.mxu1 %v7656_v63 }
 0x311   : > { %3295 = vmatprep.subr.bf16.mxu0 %v7660_v0  ;;  %3336 = vmatprep.subr.bf16.mxu1 %v7662_v10 }
 0x313   : > { %3086 = vmatmul.mubr.bf16.vlgmr.msra.gmra.mxu0 %v7570_v40  ;;  %3127 = vmatmul.mubr.bf16.vlgmr.msra.gmra.mxu1 %v7570_v40  ;;  %v7706_v40 = vld [vmem:[#allocation5 + $0x80] ss:$16 sps:$4 sm:$0xff]  }
 0x314   : > { %3296 = vmatpush1.bf16.msra.mxu0 %v7666_v11  ;;  %3337 = vmatpush1.bf16.msra.mxu1 %v7668_v16  ;;  %8461 = vst [vmem:[#allocation37_spill] sm:$0xff] %v7706_v40 }
 0x315   : > { %3297 = vmatprep.subr.bf16.mxu0 %v7672_v17  ;;  %3338 = vmatprep.subr.bf16.mxu1 %v7674_v18 }
 0x316   : > { %3327 = vmatprep.mubr.bf16.mxu0 %v8404_v8  ;;  %3368 = vmatprep.mubr.bf16.mxu1 %v8404_v8 }
 0x318   : > { %3298 = vmatpush1.bf16.msra.mxu0 %v7680_v19  ;;  %3339 = vmatpush1.bf16.msra.mxu1 %v7682_v20  ;;  %v7708_v19 = vld [vmem:[#allocation5 + $0x88] ss:$16 sps:$4 sm:$0xff]   ;;  %v7712_v20 = vld [vmem:[#allocation5 + $0x64] ss:$16 sps:$4 sm:$0xff]  }
 0x319   : > { %3299 = vmatprep.subr.bf16.mxu0 %v7686_v21  ;;  %3340 = vmatprep.subr.bf16.mxu1 %v7688_v23  ;;  %8462 = vst [vmem:[#allocation38_spill] sm:$0xff] %v7708_v19  ;;  %8463 = vst [vmem:[#allocation39_spill] sm:$0xff] %v7712_v20  ;;  %v7714_v21 = vld [vmem:[#allocation5 + $0x6c] ss:$16 sps:$4 sm:$0xff]   ;;  %v7718_v23 = vld [vmem:[#allocation5 + $0x60] ss:$16 sps:$4 sm:$0xff]  }
 0x31a   : > { %8464 = vst [vmem:[#allocation40_spill] sm:$0xff] %v7714_v21  ;;  %8465 = vst [vmem:[#allocation41_spill] sm:$0xff] %v7718_v23 }
 0x31c   : > { %3300 = vmatpush1.bf16.msra.mxu0 %v7694_v24  ;;  %3341 = vmatpush1.bf16.msra.mxu1 %v7696_v28  ;;  %v7720_v24 = vld [vmem:[#allocation5 + $0x68] ss:$16 sps:$4 sm:$0xff]   ;;  %v7724_v28 = vld [vmem:[#allocation5 + $0x44] ss:$16 sps:$4 sm:$0xff]  }
 0x31d   : > { %3301 = vmatprep.subr.bf16.mxu0 %v7700_v31  ;;  %3342 = vmatprep.subr.bf16.mxu1 %v7702_v32  ;;  %8466 = vst [vmem:[#allocation42_spill] sm:$0xff] %v7720_v24  ;;  %8467 = vst [vmem:[#allocation43_spill] sm:$0xff] %v7724_v28  ;;  %v7726_v31 = vld [vmem:[#allocation5 + $0x4c] ss:$16 sps:$4 sm:$0xff]   ;;  %v7730_v32 = vld [vmem:[#allocation5 + $0x40] ss:$16 sps:$4 sm:$0xff]  }
 0x31e   : > { %8468 = vst [vmem:[#allocation45_spill] sm:$0xff] %v7726_v31  ;;  %8469 = vst [vmem:[#allocation47_spill] sm:$0xff] %v7730_v32 }
 0x320   : > { %3302 = vmatpush1.bf16.msra.mxu0 %v7706_v40  ;;  %3343 = vmatpush1.bf16.msra.mxu1 %v7708_v19  ;;  %v7732_v40 = vld [vmem:[#allocation5 + $0x48] ss:$16 sps:$4 sm:$0xff]   ;;  %v7750_v19 = vld [vmem:[#allocation5 + $0xc] ss:$16 sps:$4 sm:$0xff]  }
 0x321   : > { %3303 = vmatprep.subr.bf16.mxu0 %v7712_v20  ;;  %3344 = vmatprep.subr.bf16.mxu1 %v7714_v21  ;;  %8470 = vst [vmem:[#allocation44_spill] sm:$0xff] %v7732_v40  ;;  %v7736_v20 = vld [vmem:[#allocation5 + $0x24] ss:$16 sps:$4 sm:$0xff]   ;;  %v7738_v21 = vld [vmem:[#allocation5 + $0x2c] ss:$16 sps:$4 sm:$0xff]   ;;  %8476 = vst [vmem:[#allocation52_spill] sm:$0xff] %v7750_v19 }
 0x322   : > { %8471 = vst [vmem:[#allocation46_spill] sm:$0xff] %v7736_v20  ;;  %8472 = vst [vmem:[#allocation48_spill] sm:$0xff] %v7738_v21 }
 0x324   : > { %3304 = vmatpush1.bf16.msra.mxu0 %v7718_v23  ;;  %3345 = vmatpush1.bf16.msra.mxu1 %v7720_v24  ;;  %v7742_v23 = vld [vmem:[#allocation5 + $0x20] ss:$16 sps:$4 sm:$0xff]   ;;  %v7744_v24 = vld [vmem:[#allocation5 + $0x28] ss:$16 sps:$4 sm:$0xff]  }
 0x325   : > { %3305 = vmatprep.subr.bf16.mxu0 %v7724_v28  ;;  %3346 = vmatprep.subr.bf16.mxu1 %v7726_v31  ;;  %8473 = vst [vmem:[#allocation49_spill] sm:$0xff] %v7742_v23  ;;  %8474 = vst [vmem:[#allocation50_spill] sm:$0xff] %v7744_v24  ;;  %v7748_v28 = vld [vmem:[#allocation5 + $0x4] ss:$16 sps:$4 sm:$0xff]   ;;  %v7754_v31 = vld [vmem:[#allocation5] ss:$16 sps:$4 sm:$0xff]  }
 0x326   : > { %8475 = vst [vmem:[#allocation51_spill] sm:$0xff] %v7748_v28  ;;  %8477 = vst [vmem:[#allocation53_spill] sm:$0xff] %v7754_v31 }
 0x328   : > { %3306 = vmatpush1.bf16.msra.mxu0 %v7730_v32  ;;  %3347 = vmatpush1.bf16.msra.mxu1 %v7732_v40  ;;  %v7756_v32 = vld [vmem:[#allocation5 + $0x8] ss:$16 sps:$4 sm:$0xff]   ;;  %v5641_v40 = vld [vmem:[%s7107_s28 + $0x10] sm:$0xff] }
 0x329   : > { %3307 = vmatprep.subr.bf16.mxu0 %v7736_v20  ;;  %3348 = vmatprep.subr.bf16.mxu1 %v7738_v21  ;;  %8478 = vst [vmem:[#allocation54_spill] sm:$0xff] %v7756_v32  ;;  %v2827_v20 = vpack.c.bf16 %v5641_v40, %v5641_v40  ;;  %v7771_v40 = vld [vmem:[#allocation10 + $0xec] ss:$16 sps:$4 sm:$0xff]  }
 0x32a   : > { %8479 = vst [vmem:[#allocation55_spill] sm:$0xff] %v7771_v40 }
 0x32c   : > { %3308 = vmatpush1.bf16.msra.mxu0 %v7742_v23  ;;  %3349 = vmatpush1.bf16.msra.mxu1 %v7744_v24  ;;  %v7849_v24 = vld [vmem:[#allocation8 + $0xe4] ss:$16 sps:$4 sm:$0xff]   ;;  %v7851_v23 = vld [vmem:[#allocation8 + $0xec] ss:$16 sps:$4 sm:$0xff]  }
 0x32d   : > { %3309 = vmatprep.subr.bf16.mxu0 %v7748_v28  ;;  %3350 = vmatprep.subr.bf16.mxu1 %v7750_v19  ;;  %8505 = vst [vmem:[#allocation81_spill] sm:$0xff] %v7849_v24  ;;  %8506 = vst [vmem:[#allocation82_spill] sm:$0xff] %v7851_v23 }
 0x330   : > { %3310 = vmatpush1.bf16.msra.mxu0 %v7754_v31  ;;  %3351 = vmatpush1.bf16.msra.mxu1 %v7756_v32  ;;  %v7773_v32 = vld [vmem:[#allocation10 + $0xe8] ss:$16 sps:$4 sm:$0xff]  }
 0x331   : > { %3635 = vmatprep.subr.bf16.mxu0 %v7456_v49  ;;  %8480 = vst [vmem:[#allocation56_spill] sm:$0xff] %v7773_v32  ;;  %3676 = vmatprep.subr.bf16.mxu1 %v7771_v40  ;;  %v7777_v49 = vld [vmem:[#allocation10 + $0xcc] ss:$16 sps:$4 sm:$0xff]  }
 0x332   : > { %8481 = vst [vmem:[#allocation57_spill] sm:$0xff] %v7777_v49 }
 0x333   : > { %3328 = vmatmul.mubr.bf16.vlgmr.msra.gmra.mxu0 %v2827_v20  ;;  %3369 = vmatmul.mubr.bf16.vlgmr.msra.gmra.mxu1 %v2827_v20  ;;  %v7793_v20 = vld [vmem:[#allocation10 + $0x80] ss:$16 sps:$4 sm:$0xff]  }
 0x334   : > { %3636 = vmatpush1.bf16.msra.mxu0 %v7458_v50  ;;  %3667 = vmatprep.mubr.bf16.mxu0 %v8404_v8  ;;  %v7779_v50 = vld [vmem:[#allocation10 + $0xc8] ss:$16 sps:$4 sm:$0xff]   ;;  %8487 = vst [vmem:[#allocation63_spill] sm:$0xff] %v7793_v20 }
 0x335   : > { %3637 = vmatprep.subr.bf16.mxu0 %v7464_v51  ;;  %3708 = vmatprep.mubr.bf16.mxu1 %v8404_v8  ;;  %8482 = vst [vmem:[#allocation58_spill] sm:$0xff] %v7779_v50  ;;  %v7783_v51 = vld [vmem:[#allocation10 + $0xac] ss:$16 sps:$4 sm:$0xff]  }
 0x336   : > { %3677 = vmatpush1.bf16.msra.mxu1 %v7773_v32  ;;  %8483 = vst [vmem:[#allocation59_spill] sm:$0xff] %v7783_v51  ;;  %v7795_v32 = vld [vmem:[#allocation10 + $0x88] ss:$16 sps:$4 sm:$0xff]  }
 0x337   : > { %3678 = vmatprep.subr.bf16.mxu1 %v7777_v49  ;;  %8488 = vst [vmem:[#allocation64_spill] sm:$0xff] %v7795_v32  ;;  %v7807_v49 = vld [vmem:[#allocation10 + $0x68] ss:$16 sps:$4 sm:$0xff]  }
 0x338   : > { %3638 = vmatpush1.bf16.msra.mxu0 %v7466_v52  ;;  %v7785_v52 = vld [vmem:[#allocation10 + $0xa8] ss:$16 sps:$4 sm:$0xff]   ;;  %8492 = vst [vmem:[#allocation68_spill] sm:$0xff] %v7807_v49 }
 0x339   : > { %3639 = vmatprep.subr.bf16.mxu0 %v7470_v53  ;;  %8484 = vst [vmem:[#allocation60_spill] sm:$0xff] %v7785_v52  ;;  %v7789_v53 = vld [vmem:[#allocation10 + $0x84] ss:$16 sps:$4 sm:$0xff]  }
 0x33a   : > { %3679 = vmatpush1.bf16.msra.mxu1 %v7779_v50  ;;  %8485 = vst [vmem:[#allocation61_spill] sm:$0xff] %v7789_v53  ;;  %v7801_v50 = vld [vmem:[#allocation10 + $0x64] ss:$16 sps:$4 sm:$0xff]  }
 0x33b   : > { %3680 = vmatprep.subr.bf16.mxu1 %v7783_v51  ;;  %8489 = vst [vmem:[#allocation65_spill] sm:$0xff] %v7801_v50  ;;  %v7803_v51 = vld [vmem:[#allocation10 + $0x6c] ss:$16 sps:$4 sm:$0xff]  }
 0x33c   : > { %3640 = vmatpush1.bf16.msra.mxu0 %v7472_v54  ;;  %v7791_v54 = vld [vmem:[#allocation10 + $0x8c] ss:$16 sps:$4 sm:$0xff]   ;;  %8490 = vst [vmem:[#allocation66_spill] sm:$0xff] %v7803_v51 }
 0x33d   : > { %8486 = vst [vmem:[#allocation62_spill] sm:$0xff] %v7791_v54  ;;  %3641 = vmatprep.subr.bf16.mxu0 %v7789_v53  ;;  %v7813_v53 = vld [vmem:[#allocation10 + $0x44] ss:$16 sps:$4 sm:$0xff]  }
 0x33e   : > { %3681 = vmatpush1.bf16.msra.mxu1 %v7785_v52  ;;  %v7805_v52 = vld [vmem:[#allocation10 + $0x60] ss:$16 sps:$4 sm:$0xff]   ;;  %8493 = vst [vmem:[#allocation69_spill] sm:$0xff] %v7813_v53 }
 0x33f   : > { %3682 = vmatprep.subr.bf16.mxu1 %v7791_v54  ;;  %8491 = vst [vmem:[#allocation67_spill] sm:$0xff] %v7805_v52  ;;  %v7819_v54 = vld [vmem:[#allocation10 + $0x48] ss:$16 sps:$4 sm:$0xff]  }
 0x340   : > { %3642 = vmatpush1.bf16.msra.mxu0 %v7793_v20  ;;  %v7815_v20 = vld [vmem:[#allocation10 + $0x4c] ss:$16 sps:$4 sm:$0xff]   ;;  %8496 = vst [vmem:[#allocation72_spill] sm:$0xff] %v7819_v54 }
 0x341   : > { %3643 = vmatprep.subr.bf16.mxu0 %v7801_v50  ;;  %8494 = vst [vmem:[#allocation70_spill] sm:$0xff] %v7815_v20  ;;  %v7825_v50 = vld [vmem:[#allocation10 + $0x24] ss:$16 sps:$4 sm:$0xff]  }
 0x342   : > { %3683 = vmatpush1.bf16.msra.mxu1 %v7795_v32  ;;  %v7817_v32 = vld [vmem:[#allocation10 + $0x40] ss:$16 sps:$4 sm:$0xff]   ;;  %8497 = vst [vmem:[#allocation73_spill] sm:$0xff] %v7825_v50 }
 0x343   : > { %3684 = vmatprep.subr.bf16.mxu1 %v7803_v51  ;;  %8495 = vst [vmem:[#allocation71_spill] sm:$0xff] %v7817_v32  ;;  %v7831_v51 = vld [vmem:[#allocation10 + $0x28] ss:$16 sps:$4 sm:$0xff]  }
 0x344   : > { %3644 = vmatpush1.bf16.msra.mxu0 %v7805_v52  ;;  %v7827_v52 = vld [vmem:[#allocation10 + $0x2c] ss:$16 sps:$4 sm:$0xff]   ;;  %8500 = vst [vmem:[#allocation76_spill] sm:$0xff] %v7831_v51 }
 0x345   : > { %3645 = vmatprep.subr.bf16.mxu0 %v7813_v53  ;;  %8498 = vst [vmem:[#allocation74_spill] sm:$0xff] %v7827_v52  ;;  %v7837_v53 = vld [vmem:[#allocation10 + $0x4] ss:$16 sps:$4 sm:$0xff]  }
 0x346   : > { %3685 = vmatpush1.bf16.msra.mxu1 %v7807_v49  ;;  %v7829_v49 = vld [vmem:[#allocation10 + $0x20] ss:$16 sps:$4 sm:$0xff]   ;;  %8501 = vst [vmem:[#allocation77_spill] sm:$0xff] %v7837_v53 }
 0x347   : > { %3686 = vmatprep.subr.bf16.mxu1 %v7815_v20  ;;  %8499 = vst [vmem:[#allocation75_spill] sm:$0xff] %v7829_v49  ;;  %v7843_v20 = vld [vmem:[#allocation10 + $0x8] ss:$16 sps:$4 sm:$0xff]  }
 0x348   : > { %3646 = vmatpush1.bf16.msra.mxu0 %v7817_v32  ;;  %v7839_v32 = vld [vmem:[#allocation10 + $0xc] ss:$16 sps:$4 sm:$0xff]   ;;  %8504 = vst [vmem:[#allocation80_spill] sm:$0xff] %v7843_v20 }
 0x349   : > { %3647 = vmatprep.subr.bf16.mxu0 %v7825_v50  ;;  %8502 = vst [vmem:[#allocation78_spill] sm:$0xff] %v7839_v32 }
 0x34a   : > { %3687 = vmatpush1.bf16.msra.mxu1 %v7819_v54  ;;  %v7841_v54 = vld [vmem:[#allocation10] ss:$16 sps:$4 sm:$0xff]  }
 0x34b   : > { %3688 = vmatprep.subr.bf16.mxu1 %v7827_v52  ;;  %8503 = vst [vmem:[#allocation79_spill] sm:$0xff] %v7841_v54 }
 0x34c   : > { %3648 = vmatpush1.bf16.msra.mxu0 %v7829_v49 }
 0x34d   : > { %3649 = vmatprep.subr.bf16.mxu0 %v7837_v53 }
 0x34e   : > { %3689 = vmatpush1.bf16.msra.mxu1 %v7831_v51 }
 0x34f   : > { %3690 = vmatprep.subr.bf16.mxu1 %v7839_v32 }
 0x350   : > { %3650 = vmatpush1.bf16.msra.mxu0 %v7841_v54 }
 0x351   : > { %3877 = vmatprep.subr.bf16.mxu0 %v7849_v24 }
 0x352   : > { %3691 = vmatpush1.bf16.msra.mxu1 %v7843_v20 }
 0x353   : > { %3918 = vmatprep.subr.bf16.mxu1 %v7851_v23 }
 0x373   : > { %v2501_v50 = vpop.f32.mrf.mxu0  ;;  %v2542_v49 = vpop.f32.mrf.mxu1 }
 0x375   : > { %v2503_v52 = vpop.f32.mrf.mxu0  ;;  %v2544_v51 = vpop.f32.mrf.mxu1 }
 0x377   : > { %v2505_v40 = vpop.f32.mrf.mxu0  ;;  %v2546_v31 = vpop.f32.mrf.mxu1 }
 0x379   : > { %v2506_v19 = vpop.f32.mrf.mxu0  ;;  %v2547_v28 = vpop.f32.mrf.mxu1 }
 0x3b3   : > { %v2743_v53 = vpop.f32.mrf.mxu0  ;;  %v2784_v54 = vpop.f32.mrf.mxu1 }
 0x3b4   : > { %v2744_v32 = vadd.f32 %v2743_v53, %v2501_v50  ;;  %v2785_v23 = vadd.f32 %v2784_v54, %v2542_v49 }
 0x3b5   : > { %v2745_v20 = vpop.f32.mrf.mxu0  ;;  %v2786_v21 = vpop.f32.mrf.mxu1 }
 0x3b6   : > { %v2791_v18 = vadd.f32 %v2744_v32, %v7492_v1  ;;  %v2746_v17 = vadd.f32 %v2745_v20, %v2503_v52  ;;  %v2787_v24 = vadd.f32 %v2786_v21, %v2544_v51  ;;  %v2793_v50 = vadd.f32 %v2785_v23, %v7511_v42 }
 0x3b7   : > { %v2747_v40 = vpop.f32.mrf.mxu0  ;;  %v2788_v31 = vpop.f32.mrf.mxu1 }
 0x3b8   : > { %v5637_v19 = vmul.f32 -1.442695, %v2791_v18  ;;  %v2792_v28 = vadd.f32 %v2746_v17, %v7497_v15  ;;  %v2794_v0 = vadd.f32 %v2787_v24, %v7505_v35 }
 0x3b9   : > { %v2748_v16 = vpop.f32.mrf.mxu0  ;;  %v2789_v11 = vpop.f32.mrf.mxu1 }
 0x3ba   : > { %6490 = vpow2.f32 %v5637_v19  ;;  %v5638_v10 = vmul.f32 -1.442695, %v2792_v28  ;;  %v5639_v53 = vmul.f32 -1.442695, %v2794_v0 }
 0x3bc   : > { %6492 = vpow2.f32 %v5638_v10 }
 0x3bd   : > { %6494 = vtanh.f32 %v2793_v50 }
 0x3be   : > { %6496 = vpow2.f32 %v5639_v53 }
 0x3c7   : > { %v6491_v63 = vpop.eup %6490 }
 0x3c8   : > { %v2798_v32 = vadd.f32 1.0, %v6491_v63 }
 0x3c9   : > { %v6493_v52 = vpop.eup %6492 }
 0x3ca   : > { %6498 = vrcp.f32 %v2798_v32  ;;  %v2804_v18 = vadd.f32 1.0, %v6493_v52  ;;  %v6495_v17 = vpop.eup %6494  ;;  %v7867_v32 = vld [vmem:[#allocation8 + $0xe0] ss:$16 sps:$4 sm:$0xff]   ;;  %v7869_v52 = vld [vmem:[#allocation8 + $0xe8] ss:$16 sps:$4 sm:$0xff]  }
 0x3cb   : > { %v6497_v49 = vpop.eup %6496  ;;  %8507 = vst [vmem:[#allocation83_spill] sm:$0xff] %v7869_v52 }
 0x3cc   : > { %6500 = vrcp.f32 %v2804_v18  ;;  %v2811_v54 = vadd.f32 1.0, %v6497_v49  ;;  %v7874_v49 = vld [vmem:[#allocation8 + $0xcc] ss:$16 sps:$4 sm:$0xff]  }
 0x3cd   : > { %8509 = vst [vmem:[#allocation85_spill] sm:$0xff] %v7874_v49 }
 0x3ce   : > { %6502 = vrcp.f32 %v2811_v54 }
 0x3d3   : > { %v3087_v16 = vpop.f32.mrf.mxu0  ;;  %v7859_v11 = vpop.f32.mrf.mxu1 }
 0x3d5   : > { %v3089_v10 = vpop.f32.mrf.mxu0  ;;  %v7861_v21 = vpop.f32.mrf.mxu1 }
 0x3d7   : > { %v6499_v24 = vpop.eup %6498  ;;  %v3091_v51 = vpop.f32.mrf.mxu0 }
 0x3d8   : > { %v3132_v0 = vpop.f32.mrf.mxu1  ;;  %v2815_v23 = vmul.f32 %v6499_v24, %v6495_v17  ;;  %v7872_v17 = vld [vmem:[#allocation8 + $0xc4] ss:$16 sps:$4 sm:$0xff]   ;;  %v7880_v24 = vld [vmem:[#allocation8 + $0xc8] ss:$16 sps:$4 sm:$0xff]  }
 0x3d9   : > { %v6501_v63 = vpop.eup %6500  ;;  %v3092_v20 = vpop.f32.mrf.mxu0  ;;  %8508 = vst [vmem:[#allocation84_spill] sm:$0xff] %v7872_v17  ;;  %8511 = vst [vmem:[#allocation87_spill] sm:$0xff] %v7880_v24  ;;  %v7884_v51 = vld [vmem:[#allocation8 + $0xa4] ss:$16 sps:$4 sm:$0xff]  }
 0x3da   : > { %v3133_v40 = vpop.f32.mrf.mxu1  ;;  %v2814_v31 = vmul.f32 %v6501_v63, %v7516_v57  ;;  %v7878_v57 = vld [vmem:[#allocation8 + $0xc0] ss:$16 sps:$4 sm:$0xff]   ;;  %v7886_v63 = vld [vmem:[#allocation8 + $0xac] ss:$16 sps:$4 sm:$0xff]  }
 0x3db   : > { %v6503_v28 = vpop.eup %6502  ;;  %8510 = vst [vmem:[#allocation86_spill] sm:$0xff] %v7878_v57 }
 0x3dc   : > { %v7864_v19 = vadd.f32 %v2815_v23, %v2814_v31  ;;  %v7892_v31 = vld [vmem:[#allocation8 + $0xa0] ss:$16 sps:$4 sm:$0xff]  }
 0x3de   : > { %6504 = vtanh.f32 %v7864_v19 }
 0x3eb   : > { %v6505_v50 = vpop.eup %6504 }
 0x3ec   : > { %v2818_v53 = vmul.f32 %v6505_v50, %v6503_v28  ;;  %v7894_v28 = vld [vmem:[#allocation8 + $0xa8] ss:$16 sps:$4 sm:$0xff]  }
 0x3ee   : > { %5640 = vst [vmem:[%s7121_s2 + $0x8] sm:$0xff] %v2818_v53  ;;  %v3442_v18 = vpack.c.bf16 %v2818_v53, %v2818_v53 }
 0x3f0   : > { %3668 = vmatmul.mubr.bf16.vlgmr.msra.gmra.mxu0 %v3442_v18  ;;  %3709 = vmatmul.mubr.bf16.vlgmr.msra.gmra.mxu1 %v3442_v18  ;;  %v7898_v18 = vld [vmem:[#allocation8 + $0x84] ss:$16 sps:$4 sm:$0xff]  }
 0x3f1   : > { %3878 = vmatpush1.bf16.msra.mxu0 %v7867_v32  ;;  %3919 = vmatpush1.bf16.msra.mxu1 %v7869_v52 }
 0x3f2   : > { %3879 = vmatprep.subr.bf16.mxu0 %v7872_v17  ;;  %3920 = vmatprep.subr.bf16.mxu1 %v7874_v49  ;;  %v7900_v49 = vld [vmem:[#allocation8 + $0x8c] ss:$16 sps:$4 sm:$0xff]  }
 0x3f3   : > { %v3329_v0 = vpop.f32.mrf.mxu0  ;;  %v3370_v23 = vpop.f32.mrf.mxu1  ;;  %3909 = vmatprep.mubr.bf16.mxu0 %v8404_v8  ;;  %3950 = vmatprep.mubr.bf16.mxu1 %v8404_v8 }
 0x3f4   : > { %v3330_v54 = vadd.f32 %v3329_v0, %v3087_v16 }
 0x3f5   : > { %v3331_v20 = vpop.f32.mrf.mxu0  ;;  %v3372_v40 = vpop.f32.mrf.mxu1  ;;  %3880 = vmatpush1.bf16.msra.mxu0 %v7878_v57  ;;  %3921 = vmatpush1.bf16.msra.mxu1 %v7880_v24 }
 0x3f6   : > { %v3377_v50 = vadd.f32 %v3330_v54, %v7379_v13  ;;  %v3332_v53 = vadd.f32 %v3331_v20, %v3089_v10  ;;  %3881 = vmatprep.subr.bf16.mxu0 %v7884_v51  ;;  %3922 = vmatprep.subr.bf16.mxu1 %v7886_v63  ;;  %v7906_v10 = vld [vmem:[#allocation8 + $0x80] ss:$16 sps:$4 sm:$0xff]   ;;  %v7908_v54 = vld [vmem:[#allocation8 + $0x88] ss:$16 sps:$4 sm:$0xff]  }
 0x3f7   : > { %v3333_v16 = vpop.f32.mrf.mxu0  ;;  %v3374_v0 = vpop.f32.mrf.mxu1  ;;  %8512 = vst [vmem:[#allocation88_spill] sm:$0xff] %v7908_v54 }
 0x3f8   : > { %v5706_v57 = vmul.f32 -1.442695, %v3377_v50  ;;  %v3378_v24 = vadd.f32 %v3332_v53, %v7383_v45  ;;  %v7912_v16 = vld [vmem:[#allocation8 + $0x64] ss:$16 sps:$4 sm:$0xff]   ;;  %v7914_v50 = vld [vmem:[#allocation8 + $0x6c] ss:$16 sps:$4 sm:$0xff]  }
 0x3f9   : > { %v3334_v17 = vpop.f32.mrf.mxu0  ;;  %v3375_v52 = vpop.f32.mrf.mxu1  ;;  %3882 = vmatpush1.bf16.msra.mxu0 %v7892_v31  ;;  %3923 = vmatpush1.bf16.msra.mxu1 %v7894_v28  ;;  %8513 = vst [vmem:[#allocation89_spill] sm:$0xff] %v7912_v16  ;;  %8514 = vst [vmem:[#allocation90_spill] sm:$0xff] %v7914_v50  ;;  %v7921_v53 = vld [vmem:[#allocation8 + $0x68] ss:$16 sps:$4 sm:$0xff]  }
 0x3fa   : > { %6506 = vpow2.f32 %v5706_v57  ;;  %v5707_v20 = vmul.f32 -1.442695, %v3378_v24  ;;  %3883 = vmatprep.subr.bf16.mxu0 %v7898_v18  ;;  %3924 = vmatprep.subr.bf16.mxu1 %v7900_v49  ;;  %v3373_v52 = vadd.f32 %v3372_v40, %v7861_v21  ;;  %v7919_v17 = vld [vmem:[#allocation8 + $0x60] ss:$16 sps:$4 sm:$0xff]   ;;  %8516 = vst [vmem:[#allocation92_spill] sm:$0xff] %v7921_v53 }
 0x3fb   : > { %8515 = vst [vmem:[#allocation91_spill] sm:$0xff] %v7919_v17  ;;  %v7925_v57 = vld [vmem:[#allocation8 + $0x44] ss:$16 sps:$4 sm:$0xff]   ;;  %v7927_v24 = vld [vmem:[#allocation8 + $0x4c] ss:$16 sps:$4 sm:$0xff]  }
 0x3fc   : > { %6508 = vpow2.f32 %v5707_v20  ;;  %8517 = vst [vmem:[#allocation93_spill] sm:$0xff] %v7925_v57  ;;  %8518 = vst [vmem:[#allocation94_spill] sm:$0xff] %v7927_v24  ;;  %v3380_v0 = vadd.f32 %v3373_v52, %v7390_v14  ;;  %v7932_v21 = vld [vmem:[#allocation8 + $0x40] ss:$16 sps:$4 sm:$0xff]   ;;  %v7934_v40 = vld [vmem:[#allocation8 + $0x48] ss:$16 sps:$4 sm:$0xff]  }
 0x3fd   : > { %3884 = vmatpush1.bf16.msra.mxu0 %v7906_v10  ;;  %3925 = vmatpush1.bf16.msra.mxu1 %v7908_v54  ;;  %8519 = vst [vmem:[#allocation95_spill] sm:$0xff] %v7932_v21  ;;  %8520 = vst [vmem:[#allocation96_spill] sm:$0xff] %v7934_v40  ;;  %v7938_v20 = vld [vmem:[#allocation8 + $0x24] ss:$16 sps:$4 sm:$0xff]   ;;  %v7945_v52 = vld [vmem:[#allocation8 + $0x20] ss:$16 sps:$4 sm:$0xff]  }
 0x3fe   : > { %3885 = vmatprep.subr.bf16.mxu0 %v7912_v16  ;;  %3926 = vmatprep.subr.bf16.mxu1 %v7914_v50  ;;  %v7940_v50 = vld [vmem:[#allocation8 + $0x2c] ss:$16 sps:$4 sm:$0xff]   ;;  %v3371_v16 = vadd.f32 %v3370_v23, %v7859_v11  ;;  %v5708_v54 = vmul.f32 -1.442695, %v3380_v0  ;;  %8522 = vst [vmem:[#allocation98_spill] sm:$0xff] %v7945_v52 }
 0x3ff   : > { %8521 = vst [vmem:[#allocation97_spill] sm:$0xff] %v7940_v50 }
 0x400   : > { %v3379_v11 = vadd.f32 %v3371_v16, %v7396_v34  ;;  %6510 = vpow2.f32 %v5708_v54 }
 0x401   : > { %3886 = vmatpush1.bf16.msra.mxu0 %v7919_v17  ;;  %3927 = vmatpush1.bf16.msra.mxu1 %v7921_v53  ;;  %v7947_v53 = vld [vmem:[#allocation8 + $0x28] ss:$16 sps:$4 sm:$0xff]  }
 0x402   : > { %3887 = vmatprep.subr.bf16.mxu0 %v7925_v57  ;;  %3928 = vmatprep.subr.bf16.mxu1 %v7927_v24  ;;  %8523 = vst [vmem:[#allocation99_spill] sm:$0xff] %v7947_v53  ;;  %v7951_v24 = vld [vmem:[#allocation8 + $0x4] ss:$16 sps:$4 sm:$0xff]   ;;  %v7953_v57 = vld [vmem:[#allocation8 + $0xc] ss:$16 sps:$4 sm:$0xff]  }
 0x403   : > { %8524 = vst [vmem:[#allocation100_spill] sm:$0xff] %v7951_v24 }
 0x405   : > { %3888 = vmatpush1.bf16.msra.mxu0 %v7932_v21  ;;  %3929 = vmatpush1.bf16.msra.mxu1 %v7934_v40  ;;  %v7958_v40 = vld [vmem:[#allocation8] ss:$16 sps:$4 sm:$0xff]   ;;  %v7960_v21 = vld [vmem:[#allocation8 + $0x8] ss:$16 sps:$4 sm:$0xff]  }
 0x406   : > { %3889 = vmatprep.subr.bf16.mxu0 %v7938_v20  ;;  %3930 = vmatprep.subr.bf16.mxu1 %v7940_v50  ;;  %8525 = vst [vmem:[#allocation101_spill] sm:$0xff] %v7958_v40  ;;  %8526 = vst [vmem:[#allocation102_spill] sm:$0xff] %v7960_v21 }
 0x407   : > { %v6507_v17 = vpop.eup %6506 }
 0x408   : > { %v3384_v23 = vadd.f32 1.0, %v6507_v17 }
 0x409   : > { %v6509_v0 = vpop.eup %6508  ;;  %3890 = vmatpush1.bf16.msra.mxu0 %v7945_v52  ;;  %3931 = vmatpush1.bf16.msra.mxu1 %v7947_v53 }
 0x40a   : > { %6512 = vrcp.f32 %v3384_v23  ;;  %v3390_v50 = vadd.f32 1.0, %v6509_v0  ;;  %3891 = vmatprep.subr.bf16.mxu0 %v7951_v24  ;;  %3932 = vmatprep.subr.bf16.mxu1 %v7953_v57 }
 0x40b   : > { %6514 = vtanh.f32 %v3379_v11 }
 0x40c   : > { %6516 = vrcp.f32 %v3390_v50 }
 0x40d   : > { %3892 = vmatpush1.bf16.msra.mxu0 %v7958_v40  ;;  %3933 = vmatpush1.bf16.msra.mxu1 %v7960_v21  ;;  %v6511_v54 = vpop.eup %6510 }
 0x40e   : > { %4221 = vmatprep.subr.bf16.mxu0 %v7555_v2  ;;  %4262 = vmatprep.subr.bf16.mxu1 %v7557_v4  ;;  %v3397_v23 = vadd.f32 1.0, %v6511_v54  ;;  %v8527_v2 = vld [vmem:[#allocation22_spill] sm:$0xff]  ;;  %v8528_v4 = vld [vmem:[#allocation23_spill] sm:$0xff]  ;;  %v8561_v54 = vld [vmem:[#allocation56_spill] sm:$0xff] }
 0x410   : > { %6518 = vrcp.f32 %v3397_v23  ;;  %v8564_v23 = vld [vmem:[#allocation59_spill] sm:$0xff] }
 0x417   : > { %v6513_v16 = vpop.eup %6512 }
 0x418   : > { %v6515_v17 = vpop.eup %6514 }
 0x419   : > { %v6517_v53 = vpop.eup %6516  ;;  %v3401_v0 = vmul.f32 %v6515_v17, %v6513_v16  ;;  %v8562_v16 = vld [vmem:[#allocation57_spill] sm:$0xff]  ;;  %v8563_v17 = vld [vmem:[#allocation58_spill] sm:$0xff] }
 0x41a   : > { %v3400_v24 = vmul.f32 %v6517_v53, %v7563_v27  ;;  %v8529_v27 = vld [vmem:[#allocation24_spill] sm:$0xff] }
 0x41c   : > { %v7969_v52 = vadd.f32 %v3401_v0, %v3400_v24  ;;  %v8558_v24 = vld [vmem:[#allocation53_spill] sm:$0xff]  ;;  %v8565_v0 = vld [vmem:[#allocation60_spill] sm:$0xff] }
 0x41d   : > { %v6519_v50 = vpop.eup %6518 }
 0x41e   : > { %6520 = vtanh.f32 %v7969_v52 }
 0x42b   : > { %v6521_v11 = vpop.eup %6520 }
 0x42c   : > { %v3404_v21 = vmul.f32 %v6521_v11, %v6519_v50  ;;  %v8566_v50 = vld [vmem:[#allocation62_spill] sm:$0xff]  ;;  %v8567_v11 = vld [vmem:[#allocation64_spill] sm:$0xff] }
 0x42e   : > { %v3409_v40 = vpack.c.bf16 %v3404_v21, %v3404_v21  ;;  %v8559_v21 = vld [vmem:[#allocation54_spill] sm:$0xff] }
 0x430   : > { %3910 = vmatmul.mubr.bf16.vlgmr.msra.gmra.mxu0 %v3409_v40  ;;  %3951 = vmatmul.mubr.bf16.vlgmr.msra.gmra.mxu1 %v3409_v40 }
 0x431   : > { %4222 = vmatpush1.bf16.msra.mxu0 %v7566_v36  ;;  %4263 = vmatpush1.bf16.msra.mxu1 %v7568_v39  ;;  %v8530_v36 = vld [vmem:[#allocation25_spill] sm:$0xff]  ;;  %v8531_v39 = vld [vmem:[#allocation26_spill] sm:$0xff] }
 0x432   : > { %4223 = vmatprep.subr.bf16.mxu0 %v7572_v30  ;;  %4264 = vmatprep.subr.bf16.mxu1 %v7574_v26  ;;  %v8532_v30 = vld [vmem:[#allocation27_spill] sm:$0xff]  ;;  %v8533_v26 = vld [vmem:[#allocation28_spill] sm:$0xff] }
 0x433   : > { %4253 = vmatprep.mubr.bf16.mxu0 %v8404_v8  ;;  %4294 = vmatprep.mubr.bf16.mxu1 %v8404_v8 }
 0x435   : > { %4224 = vmatpush1.bf16.msra.mxu0 %v7580_v44  ;;  %4265 = vmatpush1.bf16.msra.mxu1 %v7582_v12  ;;  %v8534_v44 = vld [vmem:[#allocation29_spill] sm:$0xff]  ;;  %v8535_v12 = vld [vmem:[#allocation30_spill] sm:$0xff] }
 0x436   : > { %4225 = vmatprep.subr.bf16.mxu0 %v7586_v6  ;;  %4266 = vmatprep.subr.bf16.mxu1 %v7588_v46  ;;  %v8536_v6 = vld [vmem:[#allocation31_spill] sm:$0xff]  ;;  %v8537_v46 = vld [vmem:[#allocation32_spill] sm:$0xff] }
 0x439   : > { %4226 = vmatpush1.bf16.msra.mxu0 %v7594_v7  ;;  %4267 = vmatpush1.bf16.msra.mxu1 %v7596_v37  ;;  %v8538_v7 = vld [vmem:[#allocation33_spill] sm:$0xff]  ;;  %v8539_v37 = vld [vmem:[#allocation34_spill] sm:$0xff] }
 0x43a   : > { %4227 = vmatprep.subr.bf16.mxu0 %v7600_v33  ;;  %4268 = vmatprep.subr.bf16.mxu1 %v7602_v43  ;;  %v8540_v33 = vld [vmem:[#allocation35_spill] sm:$0xff]  ;;  %v8541_v43 = vld [vmem:[#allocation36_spill] sm:$0xff] }
 0x43d   : > { %4228 = vmatpush1.bf16.msra.mxu0 %v7606_v41  ;;  %4269 = vmatpush1.bf16.msra.mxu1 %v7608_v25  ;;  %v8542_v41 = vld [vmem:[#allocation37_spill] sm:$0xff]  ;;  %v8543_v25 = vld [vmem:[#allocation38_spill] sm:$0xff] }
 0x43e   : > { %4229 = vmatprep.subr.bf16.mxu0 %v7612_v22  ;;  %4270 = vmatprep.subr.bf16.mxu1 %v7614_v29  ;;  %v8544_v22 = vld [vmem:[#allocation39_spill] sm:$0xff]  ;;  %v8545_v29 = vld [vmem:[#allocation40_spill] sm:$0xff] }
 0x441   : > { %4230 = vmatpush1.bf16.msra.mxu0 %v7618_v9  ;;  %4271 = vmatpush1.bf16.msra.mxu1 %v7620_v5  ;;  %v8546_v9 = vld [vmem:[#allocation41_spill] sm:$0xff]  ;;  %v8547_v5 = vld [vmem:[#allocation42_spill] sm:$0xff] }
 0x442   : > { %4231 = vmatprep.subr.bf16.mxu0 %v7624_v3  ;;  %4272 = vmatprep.subr.bf16.mxu1 %v7626_v47  ;;  %v8548_v3 = vld [vmem:[#allocation43_spill] sm:$0xff]  ;;  %v8549_v47 = vld [vmem:[#allocation45_spill] sm:$0xff] }
 0x445   : > { %4232 = vmatpush1.bf16.msra.mxu0 %v7630_v48  ;;  %4273 = vmatpush1.bf16.msra.mxu1 %v7632_v55  ;;  %v8550_v48 = vld [vmem:[#allocation47_spill] sm:$0xff]  ;;  %v8551_v55 = vld [vmem:[#allocation44_spill] sm:$0xff] }
 0x446   : > { %4233 = vmatprep.subr.bf16.mxu0 %v7636_v56  ;;  %4274 = vmatprep.subr.bf16.mxu1 %v7638_v58  ;;  %v8552_v56 = vld [vmem:[#allocation46_spill] sm:$0xff]  ;;  %v8553_v58 = vld [vmem:[#allocation48_spill] sm:$0xff] }
 0x449   : > { %4234 = vmatpush1.bf16.msra.mxu0 %v7642_v59  ;;  %4275 = vmatpush1.bf16.msra.mxu1 %v7644_v60  ;;  %v8554_v59 = vld [vmem:[#allocation49_spill] sm:$0xff]  ;;  %v8555_v60 = vld [vmem:[#allocation50_spill] sm:$0xff] }
 0x44a   : > { %4235 = vmatprep.subr.bf16.mxu0 %v7648_v61  ;;  %4276 = vmatprep.subr.bf16.mxu1 %v7650_v62  ;;  %v5777_v61 = vld [vmem:[%s7107_s28 + $0x18] sm:$0xff]  ;;  %v8556_v62 = vld [vmem:[#allocation51_spill] sm:$0xff]  ;;  %s6745_s28 = scalar_lea.vmem %s5190_s29, 256 }
 0x44b   : > { %v3995_v53 = vpack.c.bf16 %v5777_v61, %v5777_v61  ;;  %p6746_p1 = scmp.ne.s32.totalorder %s5190_s29, %s6745_s28  ;;  %p6753_p11 = scmp.lt.s32.totalorder %s6745_s28, %s6745_s28 }
 0x44d   : > { %4236 = vmatpush1.bf16.msra.mxu0 %v7654_v38  ;;  %4277 = vmatpush1.bf16.msra.mxu1 %v8527_v2  ;;  %v8557_v38 = vld [vmem:[#allocation52_spill] sm:$0xff]  ;;  %v8568_v2 = vld [vmem:[#allocation66_spill] sm:$0xff]  ;;  %p6747_p4 = pnand %p6746_p1, %p6991_p2  ;;  %p6754_p5 = por %p6753_p11, %p6752_p0 }
 0x44e   : > { %4463 = vmatprep.subr.bf16.mxu0 %v8528_v4  ;;  %4504 = vmatprep.subr.bf16.mxu1 %v8529_v27  ;;  %v8569_v4 = vld [vmem:[#allocation68_spill] sm:$0xff]  ;;  %v8570_v27 = vld [vmem:[#allocation70_spill] sm:$0xff] }
 0x44f   : > { %p6748_p13 = pneg %p6747_p4 }
 0x450   : > { %4254 = vmatmul.mubr.bf16.vlgmr.msra.gmra.mxu0 %v3409_v40  ;;  %4295 = vmatmul.mubr.bf16.vlgmr.msra.gmra.mxu1 %v3409_v40  ;;  %v8560_v40 = vld [vmem:[#allocation55_spill] sm:$0xff] }
 0x451   : > { %4464 = vmatpush1.bf16.msra.mxu0 %v8530_v36  ;;  %4505 = vmatpush1.bf16.msra.mxu1 %v8531_v39  ;;  %v8571_v36 = vld [vmem:[#allocation72_spill] sm:$0xff]  ;;  %v8572_v39 = vld [vmem:[#allocation74_spill] sm:$0xff]  ;;  %p6755_p10 = pnand %p6754_p5, %p6748_p13 }
 0x452   : > { %4465 = vmatprep.subr.bf16.mxu0 %v8532_v30  ;;  %4506 = vmatprep.subr.bf16.mxu1 %v8533_v26  ;;  %v8573_v30 = vld [vmem:[#allocation76_spill] sm:$0xff]  ;;  %v8574_v26 = vld [vmem:[#allocation78_spill] sm:$0xff] }
 0x453   : > { %4495 = vmatprep.mubr.bf16.mxu0 %v8404_v8  ;;  %4536 = vmatprep.mubr.bf16.mxu1 %v8404_v8 }
 0x455   : > { %4466 = vmatpush1.bf16.msra.mxu0 %v8534_v44  ;;  %4507 = vmatpush1.bf16.msra.mxu1 %v8535_v12  ;;  %v6435_v44 = vld [vmem:[#allocation10 + $0xe4] ss:$16 sps:$4 sm:$0xff]   ;;  %v6433_v12 = vld [vmem:[#allocation10 + $0xe0] ss:$16 sps:$4 sm:$0xff]  }
 0x456   : > { %4467 = vmatprep.subr.bf16.mxu0 %v8536_v6  ;;  %4508 = vmatprep.subr.bf16.mxu1 %v8537_v46  ;;  %v8575_v6 = vld [vmem:[#allocation80_spill] sm:$0xff]  ;;  %v8576_v46 = vld [vmem:[#allocation82_spill] sm:$0xff] }
 0x459   : > { %4468 = vmatpush1.bf16.msra.mxu0 %v8538_v7  ;;  %4509 = vmatpush1.bf16.msra.mxu1 %v8539_v37  ;;  %v6438_v7 = vld [vmem:[#allocation10 + $0xc4] ss:$16 sps:$4 sm:$0xff]   ;;  %v6436_v37 = vld [vmem:[#allocation10 + $0xc0] ss:$16 sps:$4 sm:$0xff]  }
 0x45a   : > { %4469 = vmatprep.subr.bf16.mxu0 %v8540_v33  ;;  %4510 = vmatprep.subr.bf16.mxu1 %v8541_v43  ;;  %v6441_v33 = vld [vmem:[#allocation10 + $0xa4] ss:$16 sps:$4 sm:$0xff]   ;;  %v6439_v43 = vld [vmem:[#allocation10 + $0xa0] ss:$16 sps:$4 sm:$0xff]  }
 0x45d   : > { %4470 = vmatpush1.bf16.msra.mxu0 %v8542_v41  ;;  %4511 = vmatpush1.bf16.msra.mxu1 %v8543_v25  ;;  %v8577_v41 = vld [vmem:[#allocation61_spill] sm:$0xff]  ;;  %v8578_v25 = vld [vmem:[#allocation63_spill] sm:$0xff] }
 0x45e   : > { %4471 = vmatprep.subr.bf16.mxu0 %v8544_v22  ;;  %4512 = vmatprep.subr.bf16.mxu1 %v8545_v29  ;;  %v8579_v22 = vld [vmem:[#allocation65_spill] sm:$0xff]  ;;  %v8580_v29 = vld [vmem:[#allocation67_spill] sm:$0xff] }
 0x461   : > { %4472 = vmatpush1.bf16.msra.mxu0 %v8546_v9  ;;  %4513 = vmatpush1.bf16.msra.mxu1 %v8547_v5  ;;  %v8581_v9 = vld [vmem:[#allocation69_spill] sm:$0xff]  ;;  %v8582_v5 = vld [vmem:[#allocation71_spill] sm:$0xff] }
 0x462   : > { %4473 = vmatprep.subr.bf16.mxu0 %v8548_v3  ;;  %4514 = vmatprep.subr.bf16.mxu1 %v8549_v47  ;;  %v8583_v3 = vld [vmem:[#allocation73_spill] sm:$0xff]  ;;  %v8584_v47 = vld [vmem:[#allocation75_spill] sm:$0xff] }
 0x465   : > { %4474 = vmatpush1.bf16.msra.mxu0 %v8550_v48  ;;  %4515 = vmatpush1.bf16.msra.mxu1 %v8551_v55  ;;  %v8585_v48 = vld [vmem:[#allocation77_spill] sm:$0xff]  ;;  %v8586_v55 = vld [vmem:[#allocation79_spill] sm:$0xff] }
 0x466   : > { %4475 = vmatprep.subr.bf16.mxu0 %v8552_v56  ;;  %4516 = vmatprep.subr.bf16.mxu1 %v8553_v58  ;;  %v8587_v56 = vld [vmem:[#allocation81_spill] sm:$0xff] }
 0x469   : > { %4476 = vmatpush1.bf16.msra.mxu0 %v8554_v59  ;;  %4517 = vmatpush1.bf16.msra.mxu1 %v8555_v60 }
 0x46a   : > { %4477 = vmatprep.subr.bf16.mxu0 %v8556_v62  ;;  %4518 = vmatprep.subr.bf16.mxu1 %v8557_v38 }
 0x46d   : > { %4478 = vmatpush1.bf16.msra.mxu0 %v8558_v24  ;;  %4519 = vmatpush1.bf16.msra.mxu1 %v8559_v21 }
 0x46e   : > { %4844 = vmatprep.subr.bf16.mxu1 %v8560_v40  ;;  %4803 = vmatprep.subr.bf16.mxu0 %v6435_v44 }
 0x470   : > { %4496 = vmatmul.mubr.bf16.vlgmr.msra.gmra.mxu0 %v3995_v53  ;;  %4537 = vmatmul.mubr.bf16.vlgmr.msra.gmra.mxu1 %v3995_v53 }
 0x471   : > { %4845 = vmatpush1.bf16.msra.mxu1 %v8561_v54  ;;  %4835 = vmatprep.mubr.bf16.mxu0 %v8404_v8 }
 0x472   : > { %4846 = vmatprep.subr.bf16.mxu1 %v8562_v16  ;;  %4876 = vmatprep.mubr.bf16.mxu1 %v8404_v8 }
 0x473   : > { %4804 = vmatpush1.bf16.msra.mxu0 %v6433_v12 }
 0x474   : > { %4805 = vmatprep.subr.bf16.mxu0 %v6438_v7 }
 0x475   : > { %4847 = vmatpush1.bf16.msra.mxu1 %v8563_v17 }
 0x476   : > { %4848 = vmatprep.subr.bf16.mxu1 %v8564_v23 }
 0x477   : > { %4806 = vmatpush1.bf16.msra.mxu0 %v6436_v37 }
 0x478   : > { %4807 = vmatprep.subr.bf16.mxu0 %v6441_v33 }
 0x479   : > { %4849 = vmatpush1.bf16.msra.mxu1 %v8565_v0 }
 0x47a   : > { %4850 = vmatprep.subr.bf16.mxu1 %v8566_v50 }
 0x47b   : > { %4808 = vmatpush1.bf16.msra.mxu0 %v6439_v43 }
 0x47c   : > { %4809 = vmatprep.subr.bf16.mxu0 %v8577_v41 }
 0x47d   : > { %4851 = vmatpush1.bf16.msra.mxu1 %v8567_v11 }
 0x47e   : > { %4852 = vmatprep.subr.bf16.mxu1 %v8568_v2 }
 0x47f   : > { %4810 = vmatpush1.bf16.msra.mxu0 %v8578_v25 }
 0x480   : > { %4811 = vmatprep.subr.bf16.mxu0 %v8579_v22 }
 0x481   : > { %4853 = vmatpush1.bf16.msra.mxu1 %v8569_v4 }
 0x482   : > { %4854 = vmatprep.subr.bf16.mxu1 %v8570_v27 }
 0x483   : > { %4812 = vmatpush1.bf16.msra.mxu0 %v8580_v29 }
 0x484   : > { %4813 = vmatprep.subr.bf16.mxu0 %v8581_v9 }
 0x485   : > { %4855 = vmatpush1.bf16.msra.mxu1 %v8571_v36 }
 0x486   : > { %4856 = vmatprep.subr.bf16.mxu1 %v8572_v39 }
 0x487   : > { %4814 = vmatpush1.bf16.msra.mxu0 %v8582_v5 }
 0x488   : > { %4815 = vmatprep.subr.bf16.mxu0 %v8583_v3 }
 0x489   : > { %4857 = vmatpush1.bf16.msra.mxu1 %v8573_v30 }
 0x48a   : > { %4858 = vmatprep.subr.bf16.mxu1 %v8574_v26 }
 0x48b   : > { %4816 = vmatpush1.bf16.msra.mxu0 %v8584_v47 }
 0x48c   : > { %4817 = vmatprep.subr.bf16.mxu0 %v8585_v48 }
 0x48d   : > { %4859 = vmatpush1.bf16.msra.mxu1 %v8575_v6 }
 0x48e   : > { %5086 = vmatprep.subr.bf16.mxu1 %v8576_v46 }
 0x48f   : > { %4818 = vmatpush1.bf16.msra.mxu0 %v8586_v55 }
 0x490   : > { %5045 = vmatprep.subr.bf16.mxu0 %v8587_v56 }
 0x4b0   : > { %v3669_v58 = vpop.f32.mrf.mxu0  ;;  %v3710_v59 = vpop.f32.mrf.mxu1 }
 0x4b2   : > { %v3671_v60 = vpop.f32.mrf.mxu0  ;;  %v3712_v61 = vpop.f32.mrf.mxu1 }
 0x4b4   : > { %v3673_v62 = vpop.f32.mrf.mxu0  ;;  %v3714_v38 = vpop.f32.mrf.mxu1 }
 0x4b6   : > { %v3674_v53 = vpop.f32.mrf.mxu0  ;;  %v3715_v24 = vpop.f32.mrf.mxu1 }
 0x4f0   : > { %v3911_v21 = vpop.f32.mrf.mxu0  ;;  %v3952_v40 = vpop.f32.mrf.mxu1 }
 0x4f1   : > { %v3912_v54 = vadd.f32 %v3911_v21, %v3669_v58  ;;  %v3953_v26 = vadd.f32 %v3952_v40, %v3710_v59  ;;  %v8588_v21 = vld [vmem:[#allocation83_spill] sm:$0xff]  ;;  %v8589_v40 = vld [vmem:[#allocation84_spill] sm:$0xff] }
 0x4f2   : > { %v3913_v16 = vpop.f32.mrf.mxu0  ;;  %v3954_v17 = vpop.f32.mrf.mxu1 }
 0x4f3   : > { %v3959_v23 = vadd.f32 %v3912_v54, %v7492_v1  ;;  %v3914_v0 = vadd.f32 %v3913_v16, %v3671_v60  ;;  %v3955_v30 = vadd.f32 %v3954_v17, %v3712_v61  ;;  %v3961_v12 = vadd.f32 %v3953_v26, %v7511_v42  ;;  %v8590_v54 = vld [vmem:[#allocation85_spill] sm:$0xff] }
 0x4f4   : > { %v3915_v50 = vpop.f32.mrf.mxu0  ;;  %v3956_v11 = vpop.f32.mrf.mxu1 }
 0x4f5   : > { %v5773_v2 = vmul.f32 -1.442695, %v3959_v23  ;;  %v3960_v4 = vadd.f32 %v3914_v0, %v7497_v15  ;;  %v3962_v44 = vadd.f32 %v3955_v30, %v7505_v35  ;;  %v8591_v50 = vld [vmem:[#allocation86_spill] sm:$0xff]  ;;  %v8592_v11 = vld [vmem:[#allocation87_spill] sm:$0xff] }
 0x4f6   : > { %v3916_v27 = vpop.f32.mrf.mxu0  ;;  %v3957_v36 = vpop.f32.mrf.mxu1 }
 0x4f7   : > { %6522 = vpow2.f32 %v5773_v2  ;;  %v5774_v39 = vmul.f32 -1.442695, %v3960_v4  ;;  %v5775_v6 = vmul.f32 -1.442695, %v3962_v44  ;;  %v8596_v44 = vld [vmem:[#allocation91_spill] sm:$0xff] }
 0x4f9   : > { %6524 = vpow2.f32 %v5774_v39 }
 0x4fa   : > { %6526 = vtanh.f32 %v3961_v12  ;;  %v8598_v12 = vld [vmem:[#allocation93_spill] sm:$0xff] }
 0x4fb   : > { %6528 = vpow2.f32 %v5775_v6 }
 0x504   : > { %v6523_v46 = vpop.eup %6522 }
 0x505   : > { %v3966_v7 = vadd.f32 1.0, %v6523_v46  ;;  %v8601_v46 = vld [vmem:[#allocation96_spill] sm:$0xff] }
 0x506   : > { %v6525_v37 = vpop.eup %6524 }
 0x507   : > { %6530 = vrcp.f32 %v3966_v7  ;;  %v3972_v33 = vadd.f32 1.0, %v6525_v37  ;;  %v6527_v25 = vpop.eup %6526  ;;  %v8602_v7 = vld [vmem:[#allocation97_spill] sm:$0xff] }
 0x508   : > { %v6529_v9 = vpop.eup %6528 }
 0x509   : > { %6532 = vrcp.f32 %v3972_v33  ;;  %v3979_v56 = vadd.f32 1.0, %v6529_v9  ;;  %v8607_v9 = vld [vmem:[#allocation102_spill] sm:$0xff] }
 0x50b   : > { %6534 = vrcp.f32 %v3979_v56 }
 0x510   : > { %v4255_v43 = vpop.f32.mrf.mxu0  ;;  %v8073_v41 = vpop.f32.mrf.mxu1 }
 0x512   : > { %v4257_v22 = vpop.f32.mrf.mxu0  ;;  %v4298_v29 = vpop.f32.mrf.mxu1 }
 0x514   : > { %v6531_v5 = vpop.eup %6530  ;;  %v4259_v3 = vpop.f32.mrf.mxu0 }
 0x515   : > { %v4300_v47 = vpop.f32.mrf.mxu1  ;;  %v3983_v48 = vmul.f32 %v6531_v5, %v6527_v25  ;;  %v8603_v25 = vld [vmem:[#allocation98_spill] sm:$0xff] }
 0x516   : > { %v6533_v55 = vpop.eup %6532  ;;  %v4260_v58 = vpop.f32.mrf.mxu0 }
 0x517   : > { %v4301_v59 = vpop.f32.mrf.mxu1  ;;  %v3982_v60 = vmul.f32 %v6533_v55, %v7864_v19 }
 0x518   : > { %v6535_v62 = vpop.eup %6534 }
 0x519   : > { %v8076_v61 = vadd.f32 %v3983_v48, %v3982_v60 }
 0x51b   : > { %6536 = vtanh.f32 %v8076_v61 }
 0x528   : > { %v6537_v38 = vpop.eup %6536 }
 0x529   : > { %v3986_v53 = vmul.f32 %v6537_v38, %v6535_v62 }
 0x52b   : > { %5776 = vst [vmem:[%s7121_s2 + $0x10] sm:$0xff] %v3986_v53  ;;  %v4610_v24 = vpack.c.bf16 %v3986_v53, %v3986_v53 }
 0x52d   : > { %4836 = vmatmul.mubr.bf16.vlgmr.msra.gmra.mxu0 %v4610_v24  ;;  %4877 = vmatmul.mubr.bf16.vlgmr.msra.gmra.mxu1 %v4610_v24 }
 0x52e   : > { %5046 = vmatpush1.bf16.msra.mxu0 %v7867_v32  ;;  %5087 = vmatpush1.bf16.msra.mxu1 %v8588_v21 }
 0x52f   : > { %5047 = vmatprep.subr.bf16.mxu0 %v8589_v40  ;;  %5088 = vmatprep.subr.bf16.mxu1 %v8590_v54 }
 0x530   : > { %v4497_v19 = vpop.f32.mrf.mxu0  ;;  %v4538_v16 = vpop.f32.mrf.mxu1  ;;  %5077 = vmatprep.mubr.bf16.mxu0 %v8404_v8  ;;  %5118 = vmatprep.mubr.bf16.mxu1 %v8404_v8 }
 0x531   : > { %v4498_v17 = vadd.f32 %v4497_v19, %v4255_v43 }
 0x532   : > { %v4499_v23 = vpop.f32.mrf.mxu0  ;;  %v4540_v0 = vpop.f32.mrf.mxu1  ;;  %5048 = vmatpush1.bf16.msra.mxu0 %v8591_v50  ;;  %5089 = vmatpush1.bf16.msra.mxu1 %v8592_v11 }
 0x533   : > { %v4545_v32 = vadd.f32 %v4498_v17, %v7379_v13  ;;  %v4500_v2 = vadd.f32 %v4499_v23, %v4257_v22  ;;  %5049 = vmatprep.subr.bf16.mxu0 %v7884_v51  ;;  %5090 = vmatprep.subr.bf16.mxu1 %v7886_v63  ;;  %v4541_v13 = vadd.f32 %v4540_v0, %v4298_v29  ;;  %v8593_v51 = vld [vmem:[#allocation88_spill] sm:$0xff]  ;;  %v8594_v63 = vld [vmem:[#allocation89_spill] sm:$0xff]  ;;  %v8604_v22 = vld [vmem:[#allocation99_spill] sm:$0xff] }
 0x534   : > { %v4501_v4 = vpop.f32.mrf.mxu0  ;;  %v4542_v27 = vpop.f32.mrf.mxu1  ;;  %v8605_v29 = vld [vmem:[#allocation100_spill] sm:$0xff] }
 0x535   : > { %v5842_v36 = vmul.f32 -1.442695, %v4545_v32  ;;  %v4546_v39 = vadd.f32 %v4500_v2, %v7383_v45  ;;  %v8595_v45 = vld [vmem:[#allocation90_spill] sm:$0xff] }
 0x536   : > { %v4502_v8 = vpop.f32.mrf.mxu0  ;;  %v4543_v30 = vpop.f32.mrf.mxu1  ;;  %5050 = vmatpush1.bf16.msra.mxu0 %v7892_v31  ;;  %5091 = vmatpush1.bf16.msra.mxu1 %v7894_v28  ;;  %v4548_v31 = vadd.f32 %v4541_v13, %v7390_v14  ;;  %v8597_v28 = vld [vmem:[#allocation92_spill] sm:$0xff] }
 0x537   : > { %6538 = vpow2.f32 %v5842_v36  ;;  %v5843_v26 = vmul.f32 -1.442695, %v4546_v39  ;;  %5051 = vmatprep.subr.bf16.mxu0 %v7898_v18  ;;  %5092 = vmatprep.subr.bf16.mxu1 %v7900_v49  ;;  %v8599_v18 = vld [vmem:[#allocation94_spill] sm:$0xff]  ;;  %v4539_v49 = vadd.f32 %v4538_v16, %v8073_v41 }
 0x538   : > { %v5844_v6 = vmul.f32 -1.442695, %v4548_v31 }
 0x539   : > { %6540 = vpow2.f32 %v5843_v26  ;;  %v4547_v37 = vadd.f32 %v4539_v49, %v7396_v34 }
 0x53a   : > { %5052 = vmatpush1.bf16.msra.mxu0 %v7906_v10  ;;  %5093 = vmatpush1.bf16.msra.mxu1 %v8593_v51  ;;  %v8600_v10 = vld [vmem:[#allocation95_spill] sm:$0xff]  ;;  %6542 = vpow2.f32 %v5844_v6 }
 0x53b   : > { %5053 = vmatprep.subr.bf16.mxu0 %v8594_v63  ;;  %5094 = vmatprep.subr.bf16.mxu1 %v8595_v45 }
 0x53e   : > { %5054 = vmatpush1.bf16.msra.mxu0 %v8596_v44  ;;  %5095 = vmatpush1.bf16.msra.mxu1 %v8597_v28 }
 0x53f   : > { %5055 = vmatprep.subr.bf16.mxu0 %v8598_v12  ;;  %5096 = vmatprep.subr.bf16.mxu1 %v8599_v18 }
 0x542   : > { %5056 = vmatpush1.bf16.msra.mxu0 %v8600_v10  ;;  %5097 = vmatpush1.bf16.msra.mxu1 %v8601_v46 }
 0x543   : > { %5057 = vmatprep.subr.bf16.mxu0 %v7938_v20  ;;  %5098 = vmatprep.subr.bf16.mxu1 %v8602_v7  ;;  %v8606_v20 = vld [vmem:[#allocation101_spill] sm:$0xff] }
 0x544   : > { %v6539_v14 = vpop.eup %6538 }
 0x545   : > { %v4552_v33 = vadd.f32 1.0, %v6539_v14 }
 0x546   : > { %v6541_v43 = vpop.eup %6540  ;;  %5058 = vmatpush1.bf16.msra.mxu0 %v8603_v25  ;;  %5099 = vmatpush1.bf16.msra.mxu1 %v8604_v22 }
 0x547   : > { %6544 = vrcp.f32 %v4552_v33  ;;  %v4558_v41 = vadd.f32 1.0, %v6541_v43  ;;  %5059 = vmatprep.subr.bf16.mxu0 %v8605_v29  ;;  %5100 = vmatprep.subr.bf16.mxu1 %v7953_v57  ;;  %v6543_v34 = vpop.eup %6542 }
 0x548   : > { %6546 = vtanh.f32 %v4547_v37  ;;  %v4565_v48 = vadd.f32 1.0, %v6543_v34 }
 0x549   : > { %6548 = vrcp.f32 %v4558_v41 }
 0x54a   : > { %5060 = vmatpush1.bf16.msra.mxu0 %v8606_v20  ;;  %5101 = vmatpush1.bf16.msra.mxu1 %v8607_v9  ;;  %6550 = vrcp.f32 %v4565_v48 }
 0x554   : > { %v6545_v5 = vpop.eup %6544 }
 0x555   : > { %v6547_v3 = vpop.eup %6546 }
 0x556   : > { %v6549_v47 = vpop.eup %6548  ;;  %v4569_v55 = vmul.f32 %v6547_v3, %v6545_v5 }
 0x557   : > { %v4568_v56 = vmul.f32 %v6549_v47, %v7969_v52  ;;  %v6551_v59 = vpop.eup %6550 }
 0x559   : > { %v4570_v58 = vadd.f32 %v4569_v55, %v4568_v56 }
 0x55b   : > { %4574 = vst [vmem:[#allocation14] sm:$0xff] %v4570_v58  ;;  %6552 = vtanh.f32 %v4570_v58 }
 0x568   : > { %v6553_v57 = vpop.eup %6552 }
 0x569   : > { %v4572_v60 = vmul.f32 %v6553_v57, %v6551_v59 }
 0x56b   : > { %v4577_v62 = vpack.c.bf16 %v4572_v60, %v4572_v60  ;;  %4573 = vst [vmem:[#allocation12] sm:$0xff] %v4572_v60 }
 0x56d   : > { %5078 = vmatmul.mubr.bf16.vlgmr.msra.gmra.mxu0 %v4577_v62  ;;  %5119 = vmatmul.mubr.bf16.vlgmr.msra.gmra.mxu1 %v4577_v62 }
 0x5ed   : > { %v4837_v38 = vpop.f32.mrf.mxu0  ;;  %v4878_v53 = vpop.f32.mrf.mxu1 }
 0x5ef   : > { %v4839_v24 = vpop.f32.mrf.mxu0  ;;  %v4880_v21 = vpop.f32.mrf.mxu1 }
 0x5f1   : > { %v4841_v40 = vpop.f32.mrf.mxu0  ;;  %v4882_v54 = vpop.f32.mrf.mxu1 }
 0x5f3   : > { %v4842_v19 = vpop.f32.mrf.mxu0  ;;  %v4883_v16 = vpop.f32.mrf.mxu1 }
 0x62d   : > { %v5079_v52 = vpop.f32.mrf.mxu0  ;;  %v5120_v17 = vpop.f32.mrf.mxu1 }
 0x62e   : > { %v5080_v23 = vadd.f32 %v5079_v52, %v4837_v38  ;;  %v5121_v13 = vadd.f32 %v5120_v17, %v4878_v53 }
 0x62f   : > { %v5081_v0 = vpop.f32.mrf.mxu0  ;;  %v5122_v50 = vpop.f32.mrf.mxu1 }
 0x630   : > { %v5127_v11 = vadd.f32 %v5080_v23, %v7492_v1  ;;  %v5082_v32 = vadd.f32 %v5081_v0, %v4839_v24  ;;  %v5123_v26 = vadd.f32 %v5122_v50, %v4880_v21  ;;  %v5129_v63 = vadd.f32 %v5121_v13, %v7511_v42 }
 0x631   : > { %v5083_v2 = vpop.f32.mrf.mxu0  ;;  %v5124_v4 = vpop.f32.mrf.mxu1 }
 0x632   : > { %v5909_v27 = vmul.f32 -1.442695, %v5127_v11  ;;  %v5128_v36 = vadd.f32 %v5082_v32, %v7497_v15  ;;  %v5130_v51 = vadd.f32 %v5123_v26, %v7505_v35 }
 0x633   : > { %v5084_v39 = vpop.f32.mrf.mxu0  ;;  %v5125_v8 = vpop.f32.mrf.mxu1 }
 0x634   : > { %6554 = vpow2.f32 %v5909_v27  ;;  %v5910_v30 = vmul.f32 -1.442695, %v5128_v36  ;;  %v5911_v45 = vmul.f32 -1.442695, %v5130_v51 }
 0x636   : > { %6556 = vpow2.f32 %v5910_v30 }
 0x637   : > { %6558 = vtanh.f32 %v5129_v63 }
 0x638   : > { %6560 = vpow2.f32 %v5911_v45 }
 0x641   : > { %v6555_v31 = vpop.eup %6554 }
 0x642   : > { %v5134_v1 = vadd.f32 1.0, %v6555_v31 }
 0x643   : > { %v6557_v44 = vpop.eup %6556 }
 0x644   : > { %6562 = vrcp.f32 %v5134_v1  ;;  %v5140_v28 = vadd.f32 1.0, %v6557_v44  ;;  %v6559_v15 = vpop.eup %6558 }
 0x645   : > { %v6561_v12 = vpop.eup %6560 }
 0x646   : > { %6564 = vrcp.f32 %v5140_v28  ;;  %v5147_v10 = vadd.f32 1.0, %v6561_v12 }
 0x648   : > { %6566 = vrcp.f32 %v5147_v10 }
 0x651   : > { %v6563_v18 = vpop.eup %6562 }
 0x652   : > { %v5151_v49 = vmul.f32 %v6563_v18, %v6559_v15 }
 0x653   : > { %v6565_v6 = vpop.eup %6564 }
 0x654   : > { %v5150_v35 = vmul.f32 %v6565_v6, %v8076_v61 }
 0x655   : > { %v6567_v46 = vpop.eup %6566 }
 0x656   : > { %v5152_v42 = vadd.f32 %v5151_v49, %v5150_v35 }
 0x658   : > { %5156 = vst [vmem:[#allocation14 + $0x8] sm:$0xff] %v5152_v42  ;;  %6568 = vtanh.f32 %v5152_v42 }
 0x665   : > { %v6569_v7 = vpop.eup %6568 }
 0x666   : > { %v5154_v14 = vmul.f32 %v6569_v7, %v6567_v46 }
 0x668   : > { %5155 = vst [vmem:[#allocation12 + $0x8] sm:$0xff] %v5154_v14  ;;  %5912 = vst [vmem:[%s7121_s2 + $0x18] sm:$0xff] %v5154_v14 }
 0x669   : > { %6758 = shalt.err (!%p6755_p10)
}
 0x66a   : > { %s6900_s12 = smov 128   ;;  %s6901_s2 = smov 8  }
 0x66b   : > { %5944 = dma.vmem_to_hbm [thread:$0]  (%p6991_p2), %s5190_s29, 256, %s8219_s8, [#allocation13], %s6900_s12, %s6900_s12, %s6901_s2  }
 0x66c   : > { %s5160_s17 = scalar_lea.sflag [#allocation4], %s7103_s26  ;;  %s6769_s19 = scalar_lea.vmem %s8130_s24, 512 }
 0x66d   : > { %p6770_p12 = scmp.ne.s32.totalorder %s8130_s24, %s6769_s19  ;;  %p8608_p7 = scmp.ne.s32.totalorder %s8364_s20, 0 }
 0x66e   : > { %s6902_s21 = smov [#allocation11]  }
 0x66f   : > { %p6771_p6 = pnand %p6770_p12, %p8608_p7  ;;  %s6773_s22 = sshll.u32 %s6902_s21, 4  ;;  %s6774_s22 = int_to_ptr.vmem [resolvable:$false] %s6773_s22 }
 0x670   : > { %s6775_s16 = scalar_lea.vmem %s6774_s22, 1024  ;;  %p6776_p9 = scmp.lt.s32.totalorder %s8130_s24, %s6774_s22 }
 0x671   : > { %p6772_p3 = pneg %p6771_p6  ;;  %p6777_p8 = scmp.lt.s32.totalorder %s6775_s16, %s6769_s19 }
 0x673   : > { %p6778_p1 = por %p6777_p8, %p6776_p9 }
 0x675   : > { %p6779_p4 = pnand %p6778_p1, %p6772_p3 }
 0x677   : > { %6782 = shalt.err (!%p6779_p4)
}
 0x678   : > { %s6783_s29 = scalar_lea.hbm %s8128_s23, 512  ;;  %s6787_s27 = scalar_lea.hbm %s8218_s7, 1024 }
 0x679   : > { %p6784_p13 = scmp.ne.s32.totalorder %s8128_s23, %s6783_s29  ;;  %p6788_p5 = scmp.lt.s32.totalorder %s8128_s23, %s8218_s7 }
 0x67a   : > { %p6789_p10 = scmp.lt.s32.totalorder %s6787_s27, %s6783_s29 }
 0x67b   : > { %p6785_p0 = pnand %p6784_p13, %p8608_p7 }
 0x67c   : > { %p6790_p12 = por %p6789_p10, %p6788_p5 }
 0x67d   : > { %p6786_p11 = pneg %p6785_p0 }
 0x67f   : > { %p6791_p6 = pnand %p6790_p12, %p6786_p11 }
 0x681   : > { %6794 = shalt.err (!%p6791_p6)
}
 0x682   : > { %5942 = dma.vmem_to_hbm [thread:$0]  (%p8608_p7), %s8130_s24, 512, %s8128_s23, %s5160_s17, %s6900_s12, %s6900_s12, %s6901_s2  }
 0x683   : > { %s6795_s5 = scalar_lea.vmem %s8133_s1, 256  ;;  %p6802_p1 = scmp.lt.s32.totalorder %s8133_s1, %s8133_s1 }
 0x684   : > { %p6796_p3 = scmp.ne.s32.totalorder %s8133_s1, %s6795_s5  ;;  %p6803_p4 = scmp.lt.s32.totalorder %s6795_s5, %s6795_s5 }
 0x686   : > { %p6797_p9 = pnand %p6796_p3, %p6991_p2  ;;  %p6804_p13 = por %p6803_p4, %p6802_p1 }
 0x688   : > { %p6798_p8 = pneg %p6797_p9 }
 0x68a   : > { %p6805_p0 = pnand %p6804_p13, %p6798_p8 }
 0x68c   : > { %6808 = shalt.err (!%p6805_p0)
}
 0x68d   : > { %5946 = dma.vmem_to_hbm [thread:$0]  (%p6991_p2), %s8133_s1, 256, %s8220_s9, [#allocation13], %s6900_s12, %s6900_s12, %s6901_s2  }
 0x68e   : > { %6856 = dma.done.wait (%p6991_p2), [#allocation13], 512  }
 0x68f   : > { %6858 = vsyncadd (%p6991_p2), [#allocation13], 4294966784 }
 0x690 PF: > { %s8609_s24 = sld [smem:[#allocation20_spill]]  ;;  %s5227_s23 = sand.u32 1, %s6865_s30  }
 0x691   : > { %p8611_p11 = scmp.ge.s32.totalorder %s6885_s14, 2  ;;  %s5228_s17 = scalar_lea.sflag [#allocation4], %s5227_s23 }
 0x696   : > { %p8610_p7 = scmp.ne.s32.totalorder %s8609_s24, 0 }
 0x698   : > { %p5970_p5 = pnand %p8611_p11, %p8610_p7 }
 0x69a   : > { %p5971_p10 = pneg %p5970_p5 }
 0x69c   : > { %6860 = dma.done.wait (%p5971_p10), %s5228_s17, 512  }
 0x69d   : > { %6862 = vsyncadd (%p5971_p10), %s5228_s17, 4294966784  ;;  %s29_s14 = sadd.s32 1, %s6885_s14   ;;  %s8612_s18 = sld [smem:[#allocation21_spill]] }
 0x69e   : > { %p26_p12 = scmp.ge.s32.totalorder %s29_s14, 4   ;;  %s8613_s30 = smov %s6869_s10 }
 0x69f   : > { %s8614_s10 = smov %s6873_s11  ;;  %s8615_s11 = smov %s7085_s25 }
 0x6a0   : > { %s8616_s12 = smov %s6881_s13  ;;  %28 = sbr.rel (!%p26_p12) target bundleno = 14 (0xe), region = 139 }
 0x6a3   : > { %s8617_s13 = smov %s8612_s18 }
 0x6a5   :  { %5233 = vsyncpa [#allocation3], 1 }
 0x6a6   :  { %5235 = vsyncpa [#allocation3 + $0x1], 1 }
 0x6a7   :  { %5236 = vsyncpa [#allocation6], 1 }
 0x6a8   :  { %5237 = vsyncpa [#allocation9], 1 }
 0x6a9   :  { %5238 = vsyncpa [#allocation4], 1 }
 0x6aa   :  { %5240 = vsyncpa [#allocation4 + $0x1], 1 }
 0x6ab   :  { %5241 = vsyncpa [#allocation13], 1 }

</bundles_post_ra>
